<compile_context>
chip_gen: v6e
topology: v6e:2x2x1
jax: 0.10.0
libtpu: 0.0.40
codegen_flags: <defaults>
</compile_context>

<pallas_src>
import functools

import jax
import jax.numpy as jnp
from jax import lax
from jax.experimental import pallas as pl
from jax.experimental.pallas import tpu as pltpu


def rnn_textgen_kernel(ids_ref, tbl_ref, h0_ref, whh_ref, wout_ref, bout_ref,
                       out_ref, hlast_ref,
                       xt_ref, *, seq_len, batch):
    """Whole-sequence RNN forward in one invocation.

    ids_ref:   (B*S,)  int32 token ids in SMEM (index b*S + t)
    tbl_ref:   (V, H)  folded table: ebd @ W_ih + (b_ih + b_hh)
    h0_ref:    (B, H)  initial hidden state
    whh_ref:   (H, H)  hidden->hidden weight (transposed vs. torch)
    wout_ref:  (H, V)  output projection weight (transposed vs. torch)
    bout_ref:  (1, V)  output bias
    out_ref:   (S*B, V) logits, time-major rows
    hlast_ref: (B, H)  final hidden state
    xt_ref:    (B, H)  VMEM scratch for the current step's gathered rows
    """

    def step(t, h):
        # In-kernel embedding gather for time step t: B dynamic row copies from
        # the folded table (each row is already x_t @ W_ih + b).
        for b in range(batch):                       # B = 8, static unroll
            tok = ids_ref[b * seq_len + t]
            xt_ref[pl.ds(b, 1), :] = tbl_ref[pl.ds(tok, 1), :]

        # Serial recurrence: only h @ W_hh sits on the critical path.
        pre = xt_ref[...] + jnp.dot(h, whh_ref[...],
                                    preferred_element_type=jnp.float32)
        h_new = jnp.tanh(pre)

        # Output projection fused into the loop: off the h->h critical path, so
        # it hides under the MXU stalls between dependent recurrence matmuls.
        row = pl.multiple_of(t * batch, batch)       # sublane-aligned (B = 8)
        out_ref[pl.ds(row, batch), :] = (
            jnp.dot(h_new, wout_ref[...], preferred_element_type=jnp.float32)
            + bout_ref[...]).astype(out_ref.dtype)

        return h_new

    h_last = lax.fori_loop(0, seq_len, step, h0_ref[...], unroll=True)
    hlast_ref[...] = h_last.astype(hlast_ref.dtype)


def prepare_fused_params(params):
    """Fold W_ih and the combined RNN bias into the embedding table (once)."""
    tbl = params["ebd"] @ params["w_ih"] + params["b"]      # (V, H)
    return {"tbl": tbl, "w_hh": params["w_hh"],
            "w_out": params["w_out"], "b_out": params["b_out"]}


def text_generator_forward(inputs, hidden, fused):
    """Mirror of TextGenerator.forward.

    inputs: (batch, seq) int32 token ids
    hidden: (1, batch, 256) float32
    returns (output (seq*batch, vocab), hidden (1, batch, 256))
    """
    tbl, w_hh, w_out, b_out = (fused["tbl"], fused["w_hh"],
                               fused["w_out"], fused["b_out"])
    B, S = inputs.shape
    H = w_hh.shape[0]
    V = w_out.shape[1]

    ids = inputs.reshape(-1).astype(jnp.int32)       # (B*S,), idx = b*S + t
    h0 = hidden[0]                                   # (B, H)

    kernel = functools.partial(rnn_textgen_kernel, seq_len=S, batch=B)

    # Single invocation, no grid: everything (≈0.8 MiB of weights/activations)
    # is resident in VMEM; token ids live in SMEM for cheap scalar indexing.
    out, h_last = pl.pallas_call(
        kernel,
        out_shape=(jax.ShapeDtypeStruct((S * B, V), jnp.float32),
                   jax.ShapeDtypeStruct((B, H), jnp.float32)),
        in_specs=[
            pl.BlockSpec(memory_space=pltpu.MemorySpace.SMEM),   # ids
            pl.BlockSpec(memory_space=pltpu.MemorySpace.VMEM),   # folded table
            pl.BlockSpec(memory_space=pltpu.MemorySpace.VMEM),   # h0
            pl.BlockSpec(memory_space=pltpu.MemorySpace.VMEM),   # w_hh
            pl.BlockSpec(memory_space=pltpu.MemorySpace.VMEM),   # w_out
            pl.BlockSpec(memory_space=pltpu.MemorySpace.VMEM),   # b_out
        ],
        out_specs=(pl.BlockSpec(memory_space=pltpu.MemorySpace.VMEM),
                   pl.BlockSpec(memory_space=pltpu.MemorySpace.VMEM)),
        scratch_shapes=[pltpu.VMEM((B, H), jnp.float32)],
    )(ids, tbl, h0, w_hh, w_out, b_out)

    return out, h_last[None, :, :]


def reference_forward(inputs, hidden, params):
    """Pure-JAX reference (lax.scan) matching PyTorch RNN semantics."""
    emb_table, w_ih, w_hh, b_comb, w_out, b_out = (
        params["ebd"], params["w_ih"], params["w_hh"],
        params["b"], params["w_out"], params["b_out"])
    x = jnp.take(emb_table, inputs, axis=0)          # (B, S, E)
    x = jnp.transpose(x, (1, 0, 2))                  # (S, B, E)
    h0 = hidden[0]

    def step(h, x_t):
        h_new = jnp.tanh(x_t @ w_ih + h @ w_hh + b_comb)
        return h_new, h_new

    h_last, hs = lax.scan(step, h0, x)
    S, B, H = hs.shape
    out = hs.reshape(S * B, H) @ w_out + b_out
    return out, h_last[None, :, :]


def init_params(key, vocab, embed=128, hidden=256):
    ks = jax.random.split(key, 7)
    scale = 0.05
    return {
        "ebd":   scale * jax.random.normal(ks[0], (vocab, embed), jnp.float32),
        # stored pre-transposed: (in, out)
        "w_ih":  scale * jax.random.normal(ks[1], (embed, hidden), jnp.float32),
        "w_hh":  scale * jax.random.normal(ks[2], (hidden, hidden), jnp.float32),
        # b_ih + b_hh folded into one (1, hidden) bias
        "b":     scale * jax.random.normal(ks[3], (1, hidden), jnp.float32),
        "w_out": scale * jax.random.normal(ks[4], (hidden, vocab), jnp.float32),
        "b_out": scale * jax.random.normal(ks[5], (1, vocab), jnp.float32),
    }


if __name__ == "__main__":
    key = jax.random.PRNGKey(0)
    VOCAB, EMBED, HIDDEN = 256, 128, 256
    BATCH, SEQ = 8, 8

    params = init_params(key, VOCAB, EMBED, HIDDEN)
    fused = prepare_fused_params(params)             # fold W_ih + bias once

    k_in = jax.random.fold_in(key, 123)
    inputs = jax.random.randint(k_in, (BATCH, SEQ), 0, VOCAB, dtype=jnp.int32)
    hidden = jnp.zeros((1, BATCH, HIDDEN), jnp.float32)   # init_hidden(bs)

    out, h_last = jax.jit(text_generator_forward)(inputs, hidden, fused)
    jax.block_until_ready((out, h_last))

    ref_out, ref_h = reference_forward(inputs, hidden, params)
    assert out.shape == (SEQ * BATCH, VOCAB)
    assert h_last.shape == (1, BATCH, HIDDEN)
    assert jnp.allclose(out, ref_out, atol=1e-4, rtol=1e-4)
    assert jnp.allclose(h_last, ref_h, atol=1e-4, rtol=1e-4)

    print("KERNEL_OK")
</pallas_src>

<mosaic_0001>
module attributes {stable_mosaic.version = 11 : i64} {
  func.func @rnn_textgen_kernel(%arg0: memref<64xi32, #tpu.memory_space<smem>>, %arg1: memref<256x256xf32, #tpu.memory_space<vmem>>, %arg2: memref<8x256xf32, #tpu.memory_space<vmem>>, %arg3: memref<256x256xf32, #tpu.memory_space<vmem>>, %arg4: memref<256x256xf32, #tpu.memory_space<vmem>>, %arg5: memref<1x256xf32, #tpu.memory_space<vmem>>, %arg6: memref<64x256xf32, #tpu.memory_space<vmem>>, %arg7: memref<8x256xf32, #tpu.memory_space<vmem>>, %arg8: memref<8x256xf32, #tpu.memory_space<vmem>>) attributes {dimension_semantics = [], scalar_prefetch = 0 : i64, scratch_operands = 1 : i64, tpu.core_type = #tpu.core_type<tc>} {
    %c0 = arith.constant 0 : index
    %c0_0 = arith.constant 0 : index
    %0 = vector.load %arg2[%c0, %c0_0] : memref<8x256xf32, #tpu.memory_space<vmem>>, vector<8x256xf32>
    %c0_i32 = arith.constant 0 : i32
    %c0_i32_1 = arith.constant 0 : i32
    %1 = arith.addi %c0_i32_1, %c0_i32 : i32
    %2 = arith.index_cast %1 : i32 to index
    %3 = memref.load %arg0[%2] : memref<64xi32, #tpu.memory_space<smem>>
    %4 = arith.index_cast %3 : i32 to index
    %c0_2 = arith.constant 0 : index
    %5 = vector.load %arg1[%4, %c0_2] : memref<256x256xf32, #tpu.memory_space<vmem>>, vector<1x256xf32>
    %c0_3 = arith.constant 0 : index
    %c0_4 = arith.constant 0 : index
    %6 = vector.load %arg8[%c0_3, %c0_4] : memref<8x256xf32, #tpu.memory_space<vmem>>, vector<1x256xf32>
    tpu.vector_store %arg8[%c0_3, %c0_4], %5 {strides = array<i32>} : memref<8x256xf32, #tpu.memory_space<vmem>>, vector<1x256xf32>,
    %c8_i32 = arith.constant 8 : i32
    %7 = arith.addi %c8_i32, %c0_i32 : i32
    %8 = arith.index_cast %7 : i32 to index
    %9 = memref.load %arg0[%8] : memref<64xi32, #tpu.memory_space<smem>>
    %10 = arith.index_cast %9 : i32 to index
    %c0_5 = arith.constant 0 : index
    %11 = vector.load %arg1[%10, %c0_5] : memref<256x256xf32, #tpu.memory_space<vmem>>, vector<1x256xf32>
    %c1 = arith.constant 1 : index
    %c0_6 = arith.constant 0 : index
    %12 = vector.load %arg8[%c1, %c0_6] : memref<8x256xf32, #tpu.memory_space<vmem>>, vector<1x256xf32>
    tpu.vector_store %arg8[%c1, %c0_6], %11 {strides = array<i32>} : memref<8x256xf32, #tpu.memory_space<vmem>>, vector<1x256xf32>,
    %c16_i32 = arith.constant 16 : i32
    %13 = arith.addi %c16_i32, %c0_i32 : i32
    %14 = arith.index_cast %13 : i32 to index
    %15 = memref.load %arg0[%14] : memref<64xi32, #tpu.memory_space<smem>>
    %16 = arith.index_cast %15 : i32 to index
    %c0_7 = arith.constant 0 : index
    %17 = vector.load %arg1[%16, %c0_7] : memref<256x256xf32, #tpu.memory_space<vmem>>, vector<1x256xf32>
    %c2 = arith.constant 2 : index
    %c0_8 = arith.constant 0 : index
    %18 = vector.load %arg8[%c2, %c0_8] : memref<8x256xf32, #tpu.memory_space<vmem>>, vector<1x256xf32>
    tpu.vector_store %arg8[%c2, %c0_8], %17 {strides = array<i32>} : memref<8x256xf32, #tpu.memory_space<vmem>>, vector<1x256xf32>,
    %c24_i32 = arith.constant 24 : i32
    %19 = arith.addi %c24_i32, %c0_i32 : i32
    %20 = arith.index_cast %19 : i32 to index
    %21 = memref.load %arg0[%20] : memref<64xi32, #tpu.memory_space<smem>>
    %22 = arith.index_cast %21 : i32 to index
    %c0_9 = arith.constant 0 : index
    %23 = vector.load %arg1[%22, %c0_9] : memref<256x256xf32, #tpu.memory_space<vmem>>, vector<1x256xf32>
    %c3 = arith.constant 3 : index
    %c0_10 = arith.constant 0 : index
    %24 = vector.load %arg8[%c3, %c0_10] : memref<8x256xf32, #tpu.memory_space<vmem>>, vector<1x256xf32>
    tpu.vector_store %arg8[%c3, %c0_10], %23 {strides = array<i32>} : memref<8x256xf32, #tpu.memory_space<vmem>>, vector<1x256xf32>,
    %c32_i32 = arith.constant 32 : i32
    %25 = arith.addi %c32_i32, %c0_i32 : i32
    %26 = arith.index_cast %25 : i32 to index
    %27 = memref.load %arg0[%26] : memref<64xi32, #tpu.memory_space<smem>>
    %28 = arith.index_cast %27 : i32 to index
    %c0_11 = arith.constant 0 : index
    %29 = vector.load %arg1[%28, %c0_11] : memref<256x256xf32, #tpu.memory_space<vmem>>, vector<1x256xf32>
    %c4 = arith.constant 4 : index
    %c0_12 = arith.constant 0 : index
    %30 = vector.load %arg8[%c4, %c0_12] : memref<8x256xf32, #tpu.memory_space<vmem>>, vector<1x256xf32>
    tpu.vector_store %arg8[%c4, %c0_12], %29 {strides = array<i32>} : memref<8x256xf32, #tpu.memory_space<vmem>>, vector<1x256xf32>,
    %c40_i32 = arith.constant 40 : i32
    %31 = arith.addi %c40_i32, %c0_i32 : i32
    %32 = arith.index_cast %31 : i32 to index
    %33 = memref.load %arg0[%32] : memref<64xi32, #tpu.memory_space<smem>>
    %34 = arith.index_cast %33 : i32 to index
    %c0_13 = arith.constant 0 : index
    %35 = vector.load %arg1[%34, %c0_13] : memref<256x256xf32, #tpu.memory_space<vmem>>, vector<1x256xf32>
    %c5 = arith.constant 5 : index
    %c0_14 = arith.constant 0 : index
    %36 = vector.load %arg8[%c5, %c0_14] : memref<8x256xf32, #tpu.memory_space<vmem>>, vector<1x256xf32>
    tpu.vector_store %arg8[%c5, %c0_14], %35 {strides = array<i32>} : memref<8x256xf32, #tpu.memory_space<vmem>>, vector<1x256xf32>,
    %c48_i32 = arith.constant 48 : i32
    %37 = arith.addi %c48_i32, %c0_i32 : i32
    %38 = arith.index_cast %37 : i32 to index
    %39 = memref.load %arg0[%38] : memref<64xi32, #tpu.memory_space<smem>>
    %40 = arith.index_cast %39 : i32 to index
    %c0_15 = arith.constant 0 : index
    %41 = vector.load %arg1[%40, %c0_15] : memref<256x256xf32, #tpu.memory_space<vmem>>, vector<1x256xf32>
    %c6 = arith.constant 6 : index
    %c0_16 = arith.constant 0 : index
    %42 = vector.load %arg8[%c6, %c0_16] : memref<8x256xf32, #tpu.memory_space<vmem>>, vector<1x256xf32>
    tpu.vector_store %arg8[%c6, %c0_16], %41 {strides = array<i32>} : memref<8x256xf32, #tpu.memory_space<vmem>>, vector<1x256xf32>,
    %c56_i32 = arith.constant 56 : i32
    %43 = arith.addi %c56_i32, %c0_i32 : i32
    %44 = arith.index_cast %43 : i32 to index
    %45 = memref.load %arg0[%44] : memref<64xi32, #tpu.memory_space<smem>>
    %46 = arith.index_cast %45 : i32 to index
    %c0_17 = arith.constant 0 : index
    %47 = vector.load %arg1[%46, %c0_17] : memref<256x256xf32, #tpu.memory_space<vmem>>, vector<1x256xf32>
    %c7 = arith.constant 7 : index
    %c0_18 = arith.constant 0 : index
    %48 = vector.load %arg8[%c7, %c0_18] : memref<8x256xf32, #tpu.memory_space<vmem>>, vector<1x256xf32>
    tpu.vector_store %arg8[%c7, %c0_18], %47 {strides = array<i32>} : memref<8x256xf32, #tpu.memory_space<vmem>>, vector<1x256xf32>,
    %c0_19 = arith.constant 0 : index
    %c0_20 = arith.constant 0 : index
    %49 = vector.load %arg8[%c0_19, %c0_20] : memref<8x256xf32, #tpu.memory_space<vmem>>, vector<8x256xf32>
    %c0_21 = arith.constant 0 : index
    %c0_22 = arith.constant 0 : index
    %50 = vector.load %arg3[%c0_21, %c0_22] : memref<256x256xf32, #tpu.memory_space<vmem>>, vector<256x256xf32>
    %cst = arith.constant dense<0.000000e+00> : vector<8x256xf32>
    %51 = tpu.matmul %0, %50, %cst {dimension_numbers = #tpu.dot_dimension_numbers<[1], [0], [0], [1], [0, 0, 1, 1], [], []>} : vector<8x256xf32>, vector<256x256xf32>, vector<8x256xf32> -> vector<8x256xf32>
    %52 = arith.addf %49, %51 : vector<8x256xf32>
    %53 = math.tanh %52 : vector<8x256xf32>
    %c8_i32_23 = arith.constant 8 : i32
    %54 = arith.muli %c0_i32, %c8_i32_23 : i32
    %55 = tpu.assume_multiple %54, 8 : i32
    %c0_24 = arith.constant 0 : index
    %c0_25 = arith.constant 0 : index
    %56 = vector.load %arg4[%c0_24, %c0_25] : memref<256x256xf32, #tpu.memory_space<vmem>>, vector<256x256xf32>
    %cst_26 = arith.constant dense<0.000000e+00> : vector<8x256xf32>
    %57 = tpu.matmul %53, %56, %cst_26 {dimension_numbers = #tpu.dot_dimension_numbers<[1], [0], [0], [1], [0, 0, 1, 1], [], []>} : vector<8x256xf32>, vector<256x256xf32>, vector<8x256xf32> -> vector<8x256xf32>
    %c0_27 = arith.constant 0 : index
    %c0_28 = arith.constant 0 : index
    %58 = vector.load %arg5[%c0_27, %c0_28] : memref<1x256xf32, #tpu.memory_space<vmem>>, vector<1x256xf32>
    %59 = vector.broadcast %58 : vector<1x256xf32> to vector<8x256xf32>
    %60 = arith.addf %57, %59 : vector<8x256xf32>
    %61 = arith.index_cast %55 : i32 to index
    %c0_29 = arith.constant 0 : index
    %62 = vector.load %arg6[%61, %c0_29] : memref<64x256xf32, #tpu.memory_space<vmem>>, vector<8x256xf32>
    tpu.vector_store %arg6[%61, %c0_29], %60 {strides = array<i32>} : memref<64x256xf32, #tpu.memory_space<vmem>>, vector<8x256xf32>,
    %c1_i32 = arith.constant 1 : i32
    %c0_i32_30 = arith.constant 0 : i32
    %63 = arith.addi %c0_i32_30, %c1_i32 : i32
    %64 = arith.index_cast %63 : i32 to index
    %65 = memref.load %arg0[%64] : memref<64xi32, #tpu.memory_space<smem>>
    %66 = arith.index_cast %65 : i32 to index
    %c0_31 = arith.constant 0 : index
    %67 = vector.load %arg1[%66, %c0_31] : memref<256x256xf32, #tpu.memory_space<vmem>>, vector<1x256xf32>
    %c0_32 = arith.constant 0 : index
    %c0_33 = arith.constant 0 : index
    %68 = vector.load %arg8[%c0_32, %c0_33] : memref<8x256xf32, #tpu.memory_space<vmem>>, vector<1x256xf32>
    tpu.vector_store %arg8[%c0_32, %c0_33], %67 {strides = array<i32>} : memref<8x256xf32, #tpu.memory_space<vmem>>, vector<1x256xf32>,
    %c8_i32_34 = arith.constant 8 : i32
    %69 = arith.addi %c8_i32_34, %c1_i32 : i32
    %70 = arith.index_cast %69 : i32 to index
    %71 = memref.load %arg0[%70] : memref<64xi32, #tpu.memory_space<smem>>
    %72 = arith.index_cast %71 : i32 to index
    %c0_35 = arith.constant 0 : index
    %73 = vector.load %arg1[%72, %c0_35] : memref<256x256xf32, #tpu.memory_space<vmem>>, vector<1x256xf32>
    %c1_36 = arith.constant 1 : index
    %c0_37 = arith.constant 0 : index
    %74 = vector.load %arg8[%c1_36, %c0_37] : memref<8x256xf32, #tpu.memory_space<vmem>>, vector<1x256xf32>
    tpu.vector_store %arg8[%c1_36, %c0_37], %73 {strides = array<i32>} : memref<8x256xf32, #tpu.memory_space<vmem>>, vector<1x256xf32>,
    %c16_i32_38 = arith.constant 16 : i32
    %75 = arith.addi %c16_i32_38, %c1_i32 : i32
    %76 = arith.index_cast %75 : i32 to index
    %77 = memref.load %arg0[%76] : memref<64xi32, #tpu.memory_space<smem>>
    %78 = arith.index_cast %77 : i32 to index
    %c0_39 = arith.constant 0 : index
    %79 = vector.load %arg1[%78, %c0_39] : memref<256x256xf32, #tpu.memory_space<vmem>>, vector<1x256xf32>
    %c2_40 = arith.constant 2 : index
    %c0_41 = arith.constant 0 : index
    %80 = vector.load %arg8[%c2_40, %c0_41] : memref<8x256xf32, #tpu.memory_space<vmem>>, vector<1x256xf32>
    tpu.vector_store %arg8[%c2_40, %c0_41], %79 {strides = array<i32>} : memref<8x256xf32, #tpu.memory_space<vmem>>, vector<1x256xf32>,
    %c24_i32_42 = arith.constant 24 : i32
    %81 = arith.addi %c24_i32_42, %c1_i32 : i32
    %82 = arith.index_cast %81 : i32 to index
    %83 = memref.load %arg0[%82] : memref<64xi32, #tpu.memory_space<smem>>
    %84 = arith.index_cast %83 : i32 to index
    %c0_43 = arith.constant 0 : index
    %85 = vector.load %arg1[%84, %c0_43] : memref<256x256xf32, #tpu.memory_space<vmem>>, vector<1x256xf32>
    %c3_44 = arith.constant 3 : index
    %c0_45 = arith.constant 0 : index
    %86 = vector.load %arg8[%c3_44, %c0_45] : memref<8x256xf32, #tpu.memory_space<vmem>>, vector<1x256xf32>
    tpu.vector_store %arg8[%c3_44, %c0_45], %85 {strides = array<i32>} : memref<8x256xf32, #tpu.memory_space<vmem>>, vector<1x256xf32>,
    %c32_i32_46 = arith.constant 32 : i32
    %87 = arith.addi %c32_i32_46, %c1_i32 : i32
    %88 = arith.index_cast %87 : i32 to index
    %89 = memref.load %arg0[%88] : memref<64xi32, #tpu.memory_space<smem>>
    %90 = arith.index_cast %89 : i32 to index
    %c0_47 = arith.constant 0 : index
    %91 = vector.load %arg1[%90, %c0_47] : memref<256x256xf32, #tpu.memory_space<vmem>>, vector<1x256xf32>
    %c4_48 = arith.constant 4 : index
    %c0_49 = arith.constant 0 : index
    %92 = vector.load %arg8[%c4_48, %c0_49] : memref<8x256xf32, #tpu.memory_space<vmem>>, vector<1x256xf32>
    tpu.vector_store %arg8[%c4_48, %c0_49], %91 {strides = array<i32>} : memref<8x256xf32, #tpu.memory_space<vmem>>, vector<1x256xf32>,
    %c40_i32_50 = arith.constant 40 : i32
    %93 = arith.addi %c40_i32_50, %c1_i32 : i32
    %94 = arith.index_cast %93 : i32 to index
    %95 = memref.load %arg0[%94] : memref<64xi32, #tpu.memory_space<smem>>
    %96 = arith.index_cast %95 : i32 to index
    %c0_51 = arith.constant 0 : index
    %97 = vector.load %arg1[%96, %c0_51] : memref<256x256xf32, #tpu.memory_space<vmem>>, vector<1x256xf32>
    %c5_52 = arith.constant 5 : index
    %c0_53 = arith.constant 0 : index
    %98 = vector.load %arg8[%c5_52, %c0_53] : memref<8x256xf32, #tpu.memory_space<vmem>>, vector<1x256xf32>
    tpu.vector_store %arg8[%c5_52, %c0_53], %97 {strides = array<i32>} : memref<8x256xf32, #tpu.memory_space<vmem>>, vector<1x256xf32>,
    %c48_i32_54 = arith.constant 48 : i32
    %99 = arith.addi %c48_i32_54, %c1_i32 : i32
    %100 = arith.index_cast %99 : i32 to index
    %101 = memref.load %arg0[%100] : memref<64xi32, #tpu.memory_space<smem>>
    %102 = arith.index_cast %101 : i32 to index
    %c0_55 = arith.constant 0 : index
    %103 = vector.load %arg1[%102, %c0_55] : memref<256x256xf32, #tpu.memory_space<vmem>>, vector<1x256xf32>
    %c6_56 = arith.constant 6 : index
    %c0_57 = arith.constant 0 : index
    %104 = vector.load %arg8[%c6_56, %c0_57] : memref<8x256xf32, #tpu.memory_space<vmem>>, vector<1x256xf32>
    tpu.vector_store %arg8[%c6_56, %c0_57], %103 {strides = array<i32>} : memref<8x256xf32, #tpu.memory_space<vmem>>, vector<1x256xf32>,
    %c56_i32_58 = arith.constant 56 : i32
    %105 = arith.addi %c56_i32_58, %c1_i32 : i32
    %106 = arith.index_cast %105 : i32 to index
    %107 = memref.load %arg0[%106] : memref<64xi32, #tpu.memory_space<smem>>
    %108 = arith.index_cast %107 : i32 to index
    %c0_59 = arith.constant 0 : index
    %109 = vector.load %arg1[%108, %c0_59] : memref<256x256xf32, #tpu.memory_space<vmem>>, vector<1x256xf32>
    %c7_60 = arith.constant 7 : index
    %c0_61 = arith.constant 0 : index
    %110 = vector.load %arg8[%c7_60, %c0_61] : memref<8x256xf32, #tpu.memory_space<vmem>>, vector<1x256xf32>
    tpu.vector_store %arg8[%c7_60, %c0_61], %109 {strides = array<i32>} : memref<8x256xf32, #tpu.memory_space<vmem>>, vector<1x256xf32>,
    %c0_62 = arith.constant 0 : index
    %c0_63 = arith.constant 0 : index
    %111 = vector.load %arg8[%c0_62, %c0_63] : memref<8x256xf32, #tpu.memory_space<vmem>>, vector<8x256xf32>
    %c0_64 = arith.constant 0 : index
    %c0_65 = arith.constant 0 : index
    %112 = vector.load %arg3[%c0_64, %c0_65] : memref<256x256xf32, #tpu.memory_space<vmem>>, vector<256x256xf32>
    %cst_66 = arith.constant dense<0.000000e+00> : vector<8x256xf32>
    %113 = tpu.matmul %53, %112, %cst_66 {dimension_numbers = #tpu.dot_dimension_numbers<[1], [0], [0], [1], [0, 0, 1, 1], [], []>} : vector<8x256xf32>, vector<256x256xf32>, vector<8x256xf32> -> vector<8x256xf32>
    %114 = arith.addf %111, %113 : vector<8x256xf32>
    %115 = math.tanh %114 : vector<8x256xf32>
    %c8_i32_67 = arith.constant 8 : i32
    %116 = arith.muli %c1_i32, %c8_i32_67 : i32
    %117 = tpu.assume_multiple %116, 8 : i32
    %c0_68 = arith.constant 0 : index
    %c0_69 = arith.constant 0 : index
    %118 = vector.load %arg4[%c0_68, %c0_69] : memref<256x256xf32, #tpu.memory_space<vmem>>, vector<256x256xf32>
    %cst_70 = arith.constant dense<0.000000e+00> : vector<8x256xf32>
    %119 = tpu.matmul %115, %118, %cst_70 {dimension_numbers = #tpu.dot_dimension_numbers<[1], [0], [0], [1], [0, 0, 1, 1], [], []>} : vector<8x256xf32>, vector<256x256xf32>, vector<8x256xf32> -> vector<8x256xf32>
    %c0_71 = arith.constant 0 : index
    %c0_72 = arith.constant 0 : index
    %120 = vector.load %arg5[%c0_71, %c0_72] : memref<1x256xf32, #tpu.memory_space<vmem>>, vector<1x256xf32>
    %121 = vector.broadcast %120 : vector<1x256xf32> to vector<8x256xf32>
    %122 = arith.addf %119, %121 : vector<8x256xf32>
    %123 = arith.index_cast %117 : i32 to index
    %c0_73 = arith.constant 0 : index
    %124 = vector.load %arg6[%123, %c0_73] : memref<64x256xf32, #tpu.memory_space<vmem>>, vector<8x256xf32>
    tpu.vector_store %arg6[%123, %c0_73], %122 {strides = array<i32>} : memref<64x256xf32, #tpu.memory_space<vmem>>, vector<8x256xf32>,
    %c2_i32 = arith.constant 2 : i32
    %c0_i32_74 = arith.constant 0 : i32
    %125 = arith.addi %c0_i32_74, %c2_i32 : i32
    %126 = arith.index_cast %125 : i32 to index
    %127 = memref.load %arg0[%126] : memref<64xi32, #tpu.memory_space<smem>>
    %128 = arith.index_cast %127 : i32 to index
    %c0_75 = arith.constant 0 : index
    %129 = vector.load %arg1[%128, %c0_75] : memref<256x256xf32, #tpu.memory_space<vmem>>, vector<1x256xf32>
    %c0_76 = arith.constant 0 : index
    %c0_77 = arith.constant 0 : index
    %130 = vector.load %arg8[%c0_76, %c0_77] : memref<8x256xf32, #tpu.memory_space<vmem>>, vector<1x256xf32>
    tpu.vector_store %arg8[%c0_76, %c0_77], %129 {strides = array<i32>} : memref<8x256xf32, #tpu.memory_space<vmem>>, vector<1x256xf32>,
    %c8_i32_78 = arith.constant 8 : i32
    %131 = arith.addi %c8_i32_78, %c2_i32 : i32
    %132 = arith.index_cast %131 : i32 to index
    %133 = memref.load %arg0[%132] : memref<64xi32, #tpu.memory_space<smem>>
    %134 = arith.index_cast %133 : i32 to index
    %c0_79 = arith.constant 0 : index
    %135 = vector.load %arg1[%134, %c0_79] : memref<256x256xf32, #tpu.memory_space<vmem>>, vector<1x256xf32>
    %c1_80 = arith.constant 1 : index
    %c0_81 = arith.constant 0 : index
    %136 = vector.load %arg8[%c1_80, %c0_81] : memref<8x256xf32, #tpu.memory_space<vmem>>, vector<1x256xf32>
    tpu.vector_store %arg8[%c1_80, %c0_81], %135 {strides = array<i32>} : memref<8x256xf32, #tpu.memory_space<vmem>>, vector<1x256xf32>,
    %c16_i32_82 = arith.constant 16 : i32
    %137 = arith.addi %c16_i32_82, %c2_i32 : i32
    %138 = arith.index_cast %137 : i32 to index
    %139 = memref.load %arg0[%138] : memref<64xi32, #tpu.memory_space<smem>>
    %140 = arith.index_cast %139 : i32 to index
    %c0_83 = arith.constant 0 : index
    %141 = vector.load %arg1[%140, %c0_83] : memref<256x256xf32, #tpu.memory_space<vmem>>, vector<1x256xf32>
    %c2_84 = arith.constant 2 : index
    %c0_85 = arith.constant 0 : index
    %142 = vector.load %arg8[%c2_84, %c0_85] : memref<8x256xf32, #tpu.memory_space<vmem>>, vector<1x256xf32>
    tpu.vector_store %arg8[%c2_84, %c0_85], %141 {strides = array<i32>} : memref<8x256xf32, #tpu.memory_space<vmem>>, vector<1x256xf32>,
    %c24_i32_86 = arith.constant 24 : i32
    %143 = arith.addi %c24_i32_86, %c2_i32 : i32
    %144 = arith.index_cast %143 : i32 to index
    %145 = memref.load %arg0[%144] : memref<64xi32, #tpu.memory_space<smem>>
    %146 = arith.index_cast %145 : i32 to index
    %c0_87 = arith.constant 0 : index
    %147 = vector.load %arg1[%146, %c0_87] : memref<256x256xf32, #tpu.memory_space<vmem>>, vector<1x256xf32>
    %c3_88 = arith.constant 3 : index
    %c0_89 = arith.constant 0 : index
    %148 = vector.load %arg8[%c3_88, %c0_89] : memref<8x256xf32, #tpu.memory_space<vmem>>, vector<1x256xf32>
    tpu.vector_store %arg8[%c3_88, %c0_89], %147 {strides = array<i32>} : memref<8x256xf32, #tpu.memory_space<vmem>>, vector<1x256xf32>,
    %c32_i32_90 = arith.constant 32 : i32
    %149 = arith.addi %c32_i32_90, %c2_i32 : i32
    %150 = arith.index_cast %149 : i32 to index
    %151 = memref.load %arg0[%150] : memref<64xi32, #tpu.memory_space<smem>>
    %152 = arith.index_cast %151 : i32 to index
    %c0_91 = arith.constant 0 : index
    %153 = vector.load %arg1[%152, %c0_91] : memref<256x256xf32, #tpu.memory_space<vmem>>, vector<1x256xf32>
    %c4_92 = arith.constant 4 : index
    %c0_93 = arith.constant 0 : index
    %154 = vector.load %arg8[%c4_92, %c0_93] : memref<8x256xf32, #tpu.memory_space<vmem>>, vector<1x256xf32>
    tpu.vector_store %arg8[%c4_92, %c0_93], %153 {strides = array<i32>} : memref<8x256xf32, #tpu.memory_space<vmem>>, vector<1x256xf32>,
    %c40_i32_94 = arith.constant 40 : i32
    %155 = arith.addi %c40_i32_94, %c2_i32 : i32
    %156 = arith.index_cast %155 : i32 to index
    %157 = memref.load %arg0[%156] : memref<64xi32, #tpu.memory_space<smem>>
    %158 = arith.index_cast %157 : i32 to index
    %c0_95 = arith.constant 0 : index
    %159 = vector.load %arg1[%158, %c0_95] : memref<256x256xf32, #tpu.memory_space<vmem>>, vector<1x256xf32>
    %c5_96 = arith.constant 5 : index
    %c0_97 = arith.constant 0 : index
    %160 = vector.load %arg8[%c5_96, %c0_97] : memref<8x256xf32, #tpu.memory_space<vmem>>, vector<1x256xf32>
    tpu.vector_store %arg8[%c5_96, %c0_97], %159 {strides = array<i32>} : memref<8x256xf32, #tpu.memory_space<vmem>>, vector<1x256xf32>,
    %c48_i32_98 = arith.constant 48 : i32
    %161 = arith.addi %c48_i32_98, %c2_i32 : i32
    %162 = arith.index_cast %161 : i32 to index
    %163 = memref.load %arg0[%162] : memref<64xi32, #tpu.memory_space<smem>>
    %164 = arith.index_cast %163 : i32 to index
    %c0_99 = arith.constant 0 : index
    %165 = vector.load %arg1[%164, %c0_99] : memref<256x256xf32, #tpu.memory_space<vmem>>, vector<1x256xf32>
    %c6_100 = arith.constant 6 : index
    %c0_101 = arith.constant 0 : index
    %166 = vector.load %arg8[%c6_100, %c0_101] : memref<8x256xf32, #tpu.memory_space<vmem>>, vector<1x256xf32>
    tpu.vector_store %arg8[%c6_100, %c0_101], %165 {strides = array<i32>} : memref<8x256xf32, #tpu.memory_space<vmem>>, vector<1x256xf32>,
    %c56_i32_102 = arith.constant 56 : i32
    %167 = arith.addi %c56_i32_102, %c2_i32 : i32
    %168 = arith.index_cast %167 : i32 to index
    %169 = memref.load %arg0[%168] : memref<64xi32, #tpu.memory_space<smem>>
    %170 = arith.index_cast %169 : i32 to index
    %c0_103 = arith.constant 0 : index
    %171 = vector.load %arg1[%170, %c0_103] : memref<256x256xf32, #tpu.memory_space<vmem>>, vector<1x256xf32>
    %c7_104 = arith.constant 7 : index
    %c0_105 = arith.constant 0 : index
    %172 = vector.load %arg8[%c7_104, %c0_105] : memref<8x256xf32, #tpu.memory_space<vmem>>, vector<1x256xf32>
    tpu.vector_store %arg8[%c7_104, %c0_105], %171 {strides = array<i32>} : memref<8x256xf32, #tpu.memory_space<vmem>>, vector<1x256xf32>,
    %c0_106 = arith.constant 0 : index
    %c0_107 = arith.constant 0 : index
    %173 = vector.load %arg8[%c0_106, %c0_107] : memref<8x256xf32, #tpu.memory_space<vmem>>, vector<8x256xf32>
    %c0_108 = arith.constant 0 : index
    %c0_109 = arith.constant 0 : index
    %174 = vector.load %arg3[%c0_108, %c0_109] : memref<256x256xf32, #tpu.memory_space<vmem>>, vector<256x256xf32>
    %cst_110 = arith.constant dense<0.000000e+00> : vector<8x256xf32>
    %175 = tpu.matmul %115, %174, %cst_110 {dimension_numbers = #tpu.dot_dimension_numbers<[1], [0], [0], [1], [0, 0, 1, 1], [], []>} : vector<8x256xf32>, vector<256x256xf32>, vector<8x256xf32> -> vector<8x256xf32>
    %176 = arith.addf %173, %175 : vector<8x256xf32>
    %177 = math.tanh %176 : vector<8x256xf32>
    %c8_i32_111 = arith.constant 8 : i32
    %178 = arith.muli %c2_i32, %c8_i32_111 : i32
    %179 = tpu.assume_multiple %178, 8 : i32
    %c0_112 = arith.constant 0 : index
    %c0_113 = arith.constant 0 : index
    %180 = vector.load %arg4[%c0_112, %c0_113] : memref<256x256xf32, #tpu.memory_space<vmem>>, vector<256x256xf32>
    %cst_114 = arith.constant dense<0.000000e+00> : vector<8x256xf32>
    %181 = tpu.matmul %177, %180, %cst_114 {dimension_numbers = #tpu.dot_dimension_numbers<[1], [0], [0], [1], [0, 0, 1, 1], [], []>} : vector<8x256xf32>, vector<256x256xf32>, vector<8x256xf32> -> vector<8x256xf32>
    %c0_115 = arith.constant 0 : index
    %c0_116 = arith.constant 0 : index
    %182 = vector.load %arg5[%c0_115, %c0_116] : memref<1x256xf32, #tpu.memory_space<vmem>>, vector<1x256xf32>
    %183 = vector.broadcast %182 : vector<1x256xf32> to vector<8x256xf32>
    %184 = arith.addf %181, %183 : vector<8x256xf32>
    %185 = arith.index_cast %179 : i32 to index
    %c0_117 = arith.constant 0 : index
    %186 = vector.load %arg6[%185, %c0_117] : memref<64x256xf32, #tpu.memory_space<vmem>>, vector<8x256xf32>
    tpu.vector_store %arg6[%185, %c0_117], %184 {strides = array<i32>} : memref<64x256xf32, #tpu.memory_space<vmem>>, vector<8x256xf32>,
    %c3_i32 = arith.constant 3 : i32
    %c0_i32_118 = arith.constant 0 : i32
    %187 = arith.addi %c0_i32_118, %c3_i32 : i32
    %188 = arith.index_cast %187 : i32 to index
    %189 = memref.load %arg0[%188] : memref<64xi32, #tpu.memory_space<smem>>
    %190 = arith.index_cast %189 : i32 to index
    %c0_119 = arith.constant 0 : index
    %191 = vector.load %arg1[%190, %c0_119] : memref<256x256xf32, #tpu.memory_space<vmem>>, vector<1x256xf32>
    %c0_120 = arith.constant 0 : index
    %c0_121 = arith.constant 0 : index
    %192 = vector.load %arg8[%c0_120, %c0_121] : memref<8x256xf32, #tpu.memory_space<vmem>>, vector<1x256xf32>
    tpu.vector_store %arg8[%c0_120, %c0_121], %191 {strides = array<i32>} : memref<8x256xf32, #tpu.memory_space<vmem>>, vector<1x256xf32>,
    %c8_i32_122 = arith.constant 8 : i32
    %193 = arith.addi %c8_i32_122, %c3_i32 : i32
    %194 = arith.index_cast %193 : i32 to index
    %195 = memref.load %arg0[%194] : memref<64xi32, #tpu.memory_space<smem>>
    %196 = arith.index_cast %195 : i32 to index
    %c0_123 = arith.constant 0 : index
    %197 = vector.load %arg1[%196, %c0_123] : memref<256x256xf32, #tpu.memory_space<vmem>>, vector<1x256xf32>
    %c1_124 = arith.constant 1 : index
    %c0_125 = arith.constant 0 : index
    %198 = vector.load %arg8[%c1_124, %c0_125] : memref<8x256xf32, #tpu.memory_space<vmem>>, vector<1x256xf32>
    tpu.vector_store %arg8[%c1_124, %c0_125], %197 {strides = array<i32>} : memref<8x256xf32, #tpu.memory_space<vmem>>, vector<1x256xf32>,
    %c16_i32_126 = arith.constant 16 : i32
    %199 = arith.addi %c16_i32_126, %c3_i32 : i32
    %200 = arith.index_cast %199 : i32 to index
    %201 = memref.load %arg0[%200] : memref<64xi32, #tpu.memory_space<smem>>
    %202 = arith.index_cast %201 : i32 to index
    %c0_127 = arith.constant 0 : index
    %203 = vector.load %arg1[%202, %c0_127] : memref<256x256xf32, #tpu.memory_space<vmem>>, vector<1x256xf32>
    %c2_128 = arith.constant 2 : index
    %c0_129 = arith.constant 0 : index
    %204 = vector.load %arg8[%c2_128, %c0_129] : memref<8x256xf32, #tpu.memory_space<vmem>>, vector<1x256xf32>
    tpu.vector_store %arg8[%c2_128, %c0_129], %203 {strides = array<i32>} : memref<8x256xf32, #tpu.memory_space<vmem>>, vector<1x256xf32>,
    %c24_i32_130 = arith.constant 24 : i32
    %205 = arith.addi %c24_i32_130, %c3_i32 : i32
    %206 = arith.index_cast %205 : i32 to index
    %207 = memref.load %arg0[%206] : memref<64xi32, #tpu.memory_space<smem>>
    %208 = arith.index_cast %207 : i32 to index
    %c0_131 = arith.constant 0 : index
    %209 = vector.load %arg1[%208, %c0_131] : memref<256x256xf32, #tpu.memory_space<vmem>>, vector<1x256xf32>
    %c3_132 = arith.constant 3 : index
    %c0_133 = arith.constant 0 : index
    %210 = vector.load %arg8[%c3_132, %c0_133] : memref<8x256xf32, #tpu.memory_space<vmem>>, vector<1x256xf32>
    tpu.vector_store %arg8[%c3_132, %c0_133], %209 {strides = array<i32>} : memref<8x256xf32, #tpu.memory_space<vmem>>, vector<1x256xf32>,
    %c32_i32_134 = arith.constant 32 : i32
    %211 = arith.addi %c32_i32_134, %c3_i32 : i32
    %212 = arith.index_cast %211 : i32 to index
    %213 = memref.load %arg0[%212] : memref<64xi32, #tpu.memory_space<smem>>
    %214 = arith.index_cast %213 : i32 to index
    %c0_135 = arith.constant 0 : index
    %215 = vector.load %arg1[%214, %c0_135] : memref<256x256xf32, #tpu.memory_space<vmem>>, vector<1x256xf32>
    %c4_136 = arith.constant 4 : index
    %c0_137 = arith.constant 0 : index
    %216 = vector.load %arg8[%c4_136, %c0_137] : memref<8x256xf32, #tpu.memory_space<vmem>>, vector<1x256xf32>
    tpu.vector_store %arg8[%c4_136, %c0_137], %215 {strides = array<i32>} : memref<8x256xf32, #tpu.memory_space<vmem>>, vector<1x256xf32>,
    %c40_i32_138 = arith.constant 40 : i32
    %217 = arith.addi %c40_i32_138, %c3_i32 : i32
    %218 = arith.index_cast %217 : i32 to index
    %219 = memref.load %arg0[%218] : memref<64xi32, #tpu.memory_space<smem>>
    %220 = arith.index_cast %219 : i32 to index
    %c0_139 = arith.constant 0 : index
    %221 = vector.load %arg1[%220, %c0_139] : memref<256x256xf32, #tpu.memory_space<vmem>>, vector<1x256xf32>
    %c5_140 = arith.constant 5 : index
    %c0_141 = arith.constant 0 : index
    %222 = vector.load %arg8[%c5_140, %c0_141] : memref<8x256xf32, #tpu.memory_space<vmem>>, vector<1x256xf32>
    tpu.vector_store %arg8[%c5_140, %c0_141], %221 {strides = array<i32>} : memref<8x256xf32, #tpu.memory_space<vmem>>, vector<1x256xf32>,
    %c48_i32_142 = arith.constant 48 : i32
    %223 = arith.addi %c48_i32_142, %c3_i32 : i32
    %224 = arith.index_cast %223 : i32 to index
    %225 = memref.load %arg0[%224] : memref<64xi32, #tpu.memory_space<smem>>
    %226 = arith.index_cast %225 : i32 to index
    %c0_143 = arith.constant 0 : index
    %227 = vector.load %arg1[%226, %c0_143] : memref<256x256xf32, #tpu.memory_space<vmem>>, vector<1x256xf32>
    %c6_144 = arith.constant 6 : index
    %c0_145 = arith.constant 0 : index
    %228 = vector.load %arg8[%c6_144, %c0_145] : memref<8x256xf32, #tpu.memory_space<vmem>>, vector<1x256xf32>
    tpu.vector_store %arg8[%c6_144, %c0_145], %227 {strides = array<i32>} : memref<8x256xf32, #tpu.memory_space<vmem>>, vector<1x256xf32>,
    %c56_i32_146 = arith.constant 56 : i32
    %229 = arith.addi %c56_i32_146, %c3_i32 : i32
    %230 = arith.index_cast %229 : i32 to index
    %231 = memref.load %arg0[%230] : memref<64xi32, #tpu.memory_space<smem>>
    %232 = arith.index_cast %231 : i32 to index
    %c0_147 = arith.constant 0 : index
    %233 = vector.load %arg1[%232, %c0_147] : memref<256x256xf32, #tpu.memory_space<vmem>>, vector<1x256xf32>
    %c7_148 = arith.constant 7 : index
    %c0_149 = arith.constant 0 : index
    %234 = vector.load %arg8[%c7_148, %c0_149] : memref<8x256xf32, #tpu.memory_space<vmem>>, vector<1x256xf32>
    tpu.vector_store %arg8[%c7_148, %c0_149], %233 {strides = array<i32>} : memref<8x256xf32, #tpu.memory_space<vmem>>, vector<1x256xf32>,
    %c0_150 = arith.constant 0 : index
    %c0_151 = arith.constant 0 : index
    %235 = vector.load %arg8[%c0_150, %c0_151] : memref<8x256xf32, #tpu.memory_space<vmem>>, vector<8x256xf32>
    %c0_152 = arith.constant 0 : index
    %c0_153 = arith.constant 0 : index
    %236 = vector.load %arg3[%c0_152, %c0_153] : memref<256x256xf32, #tpu.memory_space<vmem>>, vector<256x256xf32>
    %cst_154 = arith.constant dense<0.000000e+00> : vector<8x256xf32>
    %237 = tpu.matmul %177, %236, %cst_154 {dimension_numbers = #tpu.dot_dimension_numbers<[1], [0], [0], [1], [0, 0, 1, 1], [], []>} : vector<8x256xf32>, vector<256x256xf32>, vector<8x256xf32> -> vector<8x256xf32>
    %238 = arith.addf %235, %237 : vector<8x256xf32>
    %239 = math.tanh %238 : vector<8x256xf32>
    %c8_i32_155 = arith.constant 8 : i32
    %240 = arith.muli %c3_i32, %c8_i32_155 : i32
    %241 = tpu.assume_multiple %240, 8 : i32
    %c0_156 = arith.constant 0 : index
    %c0_157 = arith.constant 0 : index
    %242 = vector.load %arg4[%c0_156, %c0_157] : memref<256x256xf32, #tpu.memory_space<vmem>>, vector<256x256xf32>
    %cst_158 = arith.constant dense<0.000000e+00> : vector<8x256xf32>
    %243 = tpu.matmul %239, %242, %cst_158 {dimension_numbers = #tpu.dot_dimension_numbers<[1], [0], [0], [1], [0, 0, 1, 1], [], []>} : vector<8x256xf32>, vector<256x256xf32>, vector<8x256xf32> -> vector<8x256xf32>
    %c0_159 = arith.constant 0 : index
    %c0_160 = arith.constant 0 : index
    %244 = vector.load %arg5[%c0_159, %c0_160] : memref<1x256xf32, #tpu.memory_space<vmem>>, vector<1x256xf32>
    %245 = vector.broadcast %244 : vector<1x256xf32> to vector<8x256xf32>
    %246 = arith.addf %243, %245 : vector<8x256xf32>
    %247 = arith.index_cast %241 : i32 to index
    %c0_161 = arith.constant 0 : index
    %248 = vector.load %arg6[%247, %c0_161] : memref<64x256xf32, #tpu.memory_space<vmem>>, vector<8x256xf32>
    tpu.vector_store %arg6[%247, %c0_161], %246 {strides = array<i32>} : memref<64x256xf32, #tpu.memory_space<vmem>>, vector<8x256xf32>,
    %c4_i32 = arith.constant 4 : i32
    %c0_i32_162 = arith.constant 0 : i32
    %249 = arith.addi %c0_i32_162, %c4_i32 : i32
    %250 = arith.index_cast %249 : i32 to index
    %251 = memref.load %arg0[%250] : memref<64xi32, #tpu.memory_space<smem>>
    %252 = arith.index_cast %251 : i32 to index
    %c0_163 = arith.constant 0 : index
    %253 = vector.load %arg1[%252, %c0_163] : memref<256x256xf32, #tpu.memory_space<vmem>>, vector<1x256xf32>
    %c0_164 = arith.constant 0 : index
    %c0_165 = arith.constant 0 : index
    %254 = vector.load %arg8[%c0_164, %c0_165] : memref<8x256xf32, #tpu.memory_space<vmem>>, vector<1x256xf32>
    tpu.vector_store %arg8[%c0_164, %c0_165], %253 {strides = array<i32>} : memref<8x256xf32, #tpu.memory_space<vmem>>, vector<1x256xf32>,
    %c8_i32_166 = arith.constant 8 : i32
    %255 = arith.addi %c8_i32_166, %c4_i32 : i32
    %256 = arith.index_cast %255 : i32 to index
    %257 = memref.load %arg0[%256] : memref<64xi32, #tpu.memory_space<smem>>
    %258 = arith.index_cast %257 : i32 to index
    %c0_167 = arith.constant 0 : index
    %259 = vector.load %arg1[%258, %c0_167] : memref<256x256xf32, #tpu.memory_space<vmem>>, vector<1x256xf32>
    %c1_168 = arith.constant 1 : index
    %c0_169 = arith.constant 0 : index
    %260 = vector.load %arg8[%c1_168, %c0_169] : memref<8x256xf32, #tpu.memory_space<vmem>>, vector<1x256xf32>
    tpu.vector_store %arg8[%c1_168, %c0_169], %259 {strides = array<i32>} : memref<8x256xf32, #tpu.memory_space<vmem>>, vector<1x256xf32>,
    %c16_i32_170 = arith.constant 16 : i32
    %261 = arith.addi %c16_i32_170, %c4_i32 : i32
    %262 = arith.index_cast %261 : i32 to index
    %263 = memref.load %arg0[%262] : memref<64xi32, #tpu.memory_space<smem>>
    %264 = arith.index_cast %263 : i32 to index
    %c0_171 = arith.constant 0 : index
    %265 = vector.load %arg1[%264, %c0_171] : memref<256x256xf32, #tpu.memory_space<vmem>>, vector<1x256xf32>
    %c2_172 = arith.constant 2 : index
    %c0_173 = arith.constant 0 : index
    %266 = vector.load %arg8[%c2_172, %c0_173] : memref<8x256xf32, #tpu.memory_space<vmem>>, vector<1x256xf32>
    tpu.vector_store %arg8[%c2_172, %c0_173], %265 {strides = array<i32>} : memref<8x256xf32, #tpu.memory_space<vmem>>, vector<1x256xf32>,
    %c24_i32_174 = arith.constant 24 : i32
    %267 = arith.addi %c24_i32_174, %c4_i32 : i32
    %268 = arith.index_cast %267 : i32 to index
    %269 = memref.load %arg0[%268] : memref<64xi32, #tpu.memory_space<smem>>
    %270 = arith.index_cast %269 : i32 to index
    %c0_175 = arith.constant 0 : index
    %271 = vector.load %arg1[%270, %c0_175] : memref<256x256xf32, #tpu.memory_space<vmem>>, vector<1x256xf32>
    %c3_176 = arith.constant 3 : index
    %c0_177 = arith.constant 0 : index
    %272 = vector.load %arg8[%c3_176, %c0_177] : memref<8x256xf32, #tpu.memory_space<vmem>>, vector<1x256xf32>
    tpu.vector_store %arg8[%c3_176, %c0_177], %271 {strides = array<i32>} : memref<8x256xf32, #tpu.memory_space<vmem>>, vector<1x256xf32>,
    %c32_i32_178 = arith.constant 32 : i32
    %273 = arith.addi %c32_i32_178, %c4_i32 : i32
    %274 = arith.index_cast %273 : i32 to index
    %275 = memref.load %arg0[%274] : memref<64xi32, #tpu.memory_space<smem>>
    %276 = arith.index_cast %275 : i32 to index
    %c0_179 = arith.constant 0 : index
    %277 = vector.load %arg1[%276, %c0_179] : memref<256x256xf32, #tpu.memory_space<vmem>>, vector<1x256xf32>
    %c4_180 = arith.constant 4 : index
    %c0_181 = arith.constant 0 : index
    %278 = vector.load %arg8[%c4_180, %c0_181] : memref<8x256xf32, #tpu.memory_space<vmem>>, vector<1x256xf32>
    tpu.vector_store %arg8[%c4_180, %c0_181], %277 {strides = array<i32>} : memref<8x256xf32, #tpu.memory_space<vmem>>, vector<1x256xf32>,
    %c40_i32_182 = arith.constant 40 : i32
    %279 = arith.addi %c40_i32_182, %c4_i32 : i32
    %280 = arith.index_cast %279 : i32 to index
    %281 = memref.load %arg0[%280] : memref<64xi32, #tpu.memory_space<smem>>
    %282 = arith.index_cast %281 : i32 to index
    %c0_183 = arith.constant 0 : index
    %283 = vector.load %arg1[%282, %c0_183] : memref<256x256xf32, #tpu.memory_space<vmem>>, vector<1x256xf32>
    %c5_184 = arith.constant 5 : index
    %c0_185 = arith.constant 0 : index
    %284 = vector.load %arg8[%c5_184, %c0_185] : memref<8x256xf32, #tpu.memory_space<vmem>>, vector<1x256xf32>
    tpu.vector_store %arg8[%c5_184, %c0_185], %283 {strides = array<i32>} : memref<8x256xf32, #tpu.memory_space<vmem>>, vector<1x256xf32>,
    %c48_i32_186 = arith.constant 48 : i32
    %285 = arith.addi %c48_i32_186, %c4_i32 : i32
    %286 = arith.index_cast %285 : i32 to index
    %287 = memref.load %arg0[%286] : memref<64xi32, #tpu.memory_space<smem>>
    %288 = arith.index_cast %287 : i32 to index
    %c0_187 = arith.constant 0 : index
    %289 = vector.load %arg1[%288, %c0_187] : memref<256x256xf32, #tpu.memory_space<vmem>>, vector<1x256xf32>
    %c6_188 = arith.constant 6 : index
    %c0_189 = arith.constant 0 : index
    %290 = vector.load %arg8[%c6_188, %c0_189] : memref<8x256xf32, #tpu.memory_space<vmem>>, vector<1x256xf32>
    tpu.vector_store %arg8[%c6_188, %c0_189], %289 {strides = array<i32>} : memref<8x256xf32, #tpu.memory_space<vmem>>, vector<1x256xf32>,
    %c56_i32_190 = arith.constant 56 : i32
    %291 = arith.addi %c56_i32_190, %c4_i32 : i32
    %292 = arith.index_cast %291 : i32 to index
    %293 = memref.load %arg0[%292] : memref<64xi32, #tpu.memory_space<smem>>
    %294 = arith.index_cast %293 : i32 to index
    %c0_191 = arith.constant 0 : index
    %295 = vector.load %arg1[%294, %c0_191] : memref<256x256xf32, #tpu.memory_space<vmem>>, vector<1x256xf32>
    %c7_192 = arith.constant 7 : index
    %c0_193 = arith.constant 0 : index
    %296 = vector.load %arg8[%c7_192, %c0_193] : memref<8x256xf32, #tpu.memory_space<vmem>>, vector<1x256xf32>
    tpu.vector_store %arg8[%c7_192, %c0_193], %295 {strides = array<i32>} : memref<8x256xf32, #tpu.memory_space<vmem>>, vector<1x256xf32>,
    %c0_194 = arith.constant 0 : index
    %c0_195 = arith.constant 0 : index
    %297 = vector.load %arg8[%c0_194, %c0_195] : memref<8x256xf32, #tpu.memory_space<vmem>>, vector<8x256xf32>
    %c0_196 = arith.constant 0 : index
    %c0_197 = arith.constant 0 : index
    %298 = vector.load %arg3[%c0_196, %c0_197] : memref<256x256xf32, #tpu.memory_space<vmem>>, vector<256x256xf32>
    %cst_198 = arith.constant dense<0.000000e+00> : vector<8x256xf32>
    %299 = tpu.matmul %239, %298, %cst_198 {dimension_numbers = #tpu.dot_dimension_numbers<[1], [0], [0], [1], [0, 0, 1, 1], [], []>} : vector<8x256xf32>, vector<256x256xf32>, vector<8x256xf32> -> vector<8x256xf32>
    %300 = arith.addf %297, %299 : vector<8x256xf32>
    %301 = math.tanh %300 : vector<8x256xf32>
    %c8_i32_199 = arith.constant 8 : i32
    %302 = arith.muli %c4_i32, %c8_i32_199 : i32
    %303 = tpu.assume_multiple %302, 8 : i32
    %c0_200 = arith.constant 0 : index
    %c0_201 = arith.constant 0 : index
    %304 = vector.load %arg4[%c0_200, %c0_201] : memref<256x256xf32, #tpu.memory_space<vmem>>, vector<256x256xf32>
    %cst_202 = arith.constant dense<0.000000e+00> : vector<8x256xf32>
    %305 = tpu.matmul %301, %304, %cst_202 {dimension_numbers = #tpu.dot_dimension_numbers<[1], [0], [0], [1], [0, 0, 1, 1], [], []>} : vector<8x256xf32>, vector<256x256xf32>, vector<8x256xf32> -> vector<8x256xf32>
    %c0_203 = arith.constant 0 : index
    %c0_204 = arith.constant 0 : index
    %306 = vector.load %arg5[%c0_203, %c0_204] : memref<1x256xf32, #tpu.memory_space<vmem>>, vector<1x256xf32>
    %307 = vector.broadcast %306 : vector<1x256xf32> to vector<8x256xf32>
    %308 = arith.addf %305, %307 : vector<8x256xf32>
    %309 = arith.index_cast %303 : i32 to index
    %c0_205 = arith.constant 0 : index
    %310 = vector.load %arg6[%309, %c0_205] : memref<64x256xf32, #tpu.memory_space<vmem>>, vector<8x256xf32>
    tpu.vector_store %arg6[%309, %c0_205], %308 {strides = array<i32>} : memref<64x256xf32, #tpu.memory_space<vmem>>, vector<8x256xf32>,
    %c5_i32 = arith.constant 5 : i32
    %c0_i32_206 = arith.constant 0 : i32
    %311 = arith.addi %c0_i32_206, %c5_i32 : i32
    %312 = arith.index_cast %311 : i32 to index
    %313 = memref.load %arg0[%312] : memref<64xi32, #tpu.memory_space<smem>>
    %314 = arith.index_cast %313 : i32 to index
    %c0_207 = arith.constant 0 : index
    %315 = vector.load %arg1[%314, %c0_207] : memref<256x256xf32, #tpu.memory_space<vmem>>, vector<1x256xf32>
    %c0_208 = arith.constant 0 : index
    %c0_209 = arith.constant 0 : index
    %316 = vector.load %arg8[%c0_208, %c0_209] : memref<8x256xf32, #tpu.memory_space<vmem>>, vector<1x256xf32>
    tpu.vector_store %arg8[%c0_208, %c0_209], %315 {strides = array<i32>} : memref<8x256xf32, #tpu.memory_space<vmem>>, vector<1x256xf32>,
    %c8_i32_210 = arith.constant 8 : i32
    %317 = arith.addi %c8_i32_210, %c5_i32 : i32
    %318 = arith.index_cast %317 : i32 to index
    %319 = memref.load %arg0[%318] : memref<64xi32, #tpu.memory_space<smem>>
    %320 = arith.index_cast %319 : i32 to index
    %c0_211 = arith.constant 0 : index
    %321 = vector.load %arg1[%320, %c0_211] : memref<256x256xf32, #tpu.memory_space<vmem>>, vector<1x256xf32>
    %c1_212 = arith.constant 1 : index
    %c0_213 = arith.constant 0 : index
    %322 = vector.load %arg8[%c1_212, %c0_213] : memref<8x256xf32, #tpu.memory_space<vmem>>, vector<1x256xf32>
    tpu.vector_store %arg8[%c1_212, %c0_213], %321 {strides = array<i32>} : memref<8x256xf32, #tpu.memory_space<vmem>>, vector<1x256xf32>,
    %c16_i32_214 = arith.constant 16 : i32
    %323 = arith.addi %c16_i32_214, %c5_i32 : i32
    %324 = arith.index_cast %323 : i32 to index
    %325 = memref.load %arg0[%324] : memref<64xi32, #tpu.memory_space<smem>>
    %326 = arith.index_cast %325 : i32 to index
    %c0_215 = arith.constant 0 : index
    %327 = vector.load %arg1[%326, %c0_215] : memref<256x256xf32, #tpu.memory_space<vmem>>, vector<1x256xf32>
    %c2_216 = arith.constant 2 : index
    %c0_217 = arith.constant 0 : index
    %328 = vector.load %arg8[%c2_216, %c0_217] : memref<8x256xf32, #tpu.memory_space<vmem>>, vector<1x256xf32>
    tpu.vector_store %arg8[%c2_216, %c0_217], %327 {strides = array<i32>} : memref<8x256xf32, #tpu.memory_space<vmem>>, vector<1x256xf32>,
    %c24_i32_218 = arith.constant 24 : i32
    %329 = arith.addi %c24_i32_218, %c5_i32 : i32
    %330 = arith.index_cast %329 : i32 to index
    %331 = memref.load %arg0[%330] : memref<64xi32, #tpu.memory_space<smem>>
    %332 = arith.index_cast %331 : i32 to index
    %c0_219 = arith.constant 0 : index
    %333 = vector.load %arg1[%332, %c0_219] : memref<256x256xf32, #tpu.memory_space<vmem>>, vector<1x256xf32>
    %c3_220 = arith.constant 3 : index
    %c0_221 = arith.constant 0 : index
    %334 = vector.load %arg8[%c3_220, %c0_221] : memref<8x256xf32, #tpu.memory_space<vmem>>, vector<1x256xf32>
    tpu.vector_store %arg8[%c3_220, %c0_221], %333 {strides = array<i32>} : memref<8x256xf32, #tpu.memory_space<vmem>>, vector<1x256xf32>,
    %c32_i32_222 = arith.constant 32 : i32
    %335 = arith.addi %c32_i32_222, %c5_i32 : i32
    %336 = arith.index_cast %335 : i32 to index
    %337 = memref.load %arg0[%336] : memref<64xi32, #tpu.memory_space<smem>>
    %338 = arith.index_cast %337 : i32 to index
    %c0_223 = arith.constant 0 : index
    %339 = vector.load %arg1[%338, %c0_223] : memref<256x256xf32, #tpu.memory_space<vmem>>, vector<1x256xf32>
    %c4_224 = arith.constant 4 : index
    %c0_225 = arith.constant 0 : index
    %340 = vector.load %arg8[%c4_224, %c0_225] : memref<8x256xf32, #tpu.memory_space<vmem>>, vector<1x256xf32>
    tpu.vector_store %arg8[%c4_224, %c0_225], %339 {strides = array<i32>} : memref<8x256xf32, #tpu.memory_space<vmem>>, vector<1x256xf32>,
    %c40_i32_226 = arith.constant 40 : i32
    %341 = arith.addi %c40_i32_226, %c5_i32 : i32
    %342 = arith.index_cast %341 : i32 to index
    %343 = memref.load %arg0[%342] : memref<64xi32, #tpu.memory_space<smem>>
    %344 = arith.index_cast %343 : i32 to index
    %c0_227 = arith.constant 0 : index
    %345 = vector.load %arg1[%344, %c0_227] : memref<256x256xf32, #tpu.memory_space<vmem>>, vector<1x256xf32>
    %c5_228 = arith.constant 5 : index
    %c0_229 = arith.constant 0 : index
    %346 = vector.load %arg8[%c5_228, %c0_229] : memref<8x256xf32, #tpu.memory_space<vmem>>, vector<1x256xf32>
    tpu.vector_store %arg8[%c5_228, %c0_229], %345 {strides = array<i32>} : memref<8x256xf32, #tpu.memory_space<vmem>>, vector<1x256xf32>,
    %c48_i32_230 = arith.constant 48 : i32
    %347 = arith.addi %c48_i32_230, %c5_i32 : i32
    %348 = arith.index_cast %347 : i32 to index
    %349 = memref.load %arg0[%348] : memref<64xi32, #tpu.memory_space<smem>>
    %350 = arith.index_cast %349 : i32 to index
    %c0_231 = arith.constant 0 : index
    %351 = vector.load %arg1[%350, %c0_231] : memref<256x256xf32, #tpu.memory_space<vmem>>, vector<1x256xf32>
    %c6_232 = arith.constant 6 : index
    %c0_233 = arith.constant 0 : index
    %352 = vector.load %arg8[%c6_232, %c0_233] : memref<8x256xf32, #tpu.memory_space<vmem>>, vector<1x256xf32>
    tpu.vector_store %arg8[%c6_232, %c0_233], %351 {strides = array<i32>} : memref<8x256xf32, #tpu.memory_space<vmem>>, vector<1x256xf32>,
    %c56_i32_234 = arith.constant 56 : i32
    %353 = arith.addi %c56_i32_234, %c5_i32 : i32
    %354 = arith.index_cast %353 : i32 to index
    %355 = memref.load %arg0[%354] : memref<64xi32, #tpu.memory_space<smem>>
    %356 = arith.index_cast %355 : i32 to index
    %c0_235 = arith.constant 0 : index
    %357 = vector.load %arg1[%356, %c0_235] : memref<256x256xf32, #tpu.memory_space<vmem>>, vector<1x256xf32>
    %c7_236 = arith.constant 7 : index
    %c0_237 = arith.constant 0 : index
    %358 = vector.load %arg8[%c7_236, %c0_237] : memref<8x256xf32, #tpu.memory_space<vmem>>, vector<1x256xf32>
    tpu.vector_store %arg8[%c7_236, %c0_237], %357 {strides = array<i32>} : memref<8x256xf32, #tpu.memory_space<vmem>>, vector<1x256xf32>,
    %c0_238 = arith.constant 0 : index
    %c0_239 = arith.constant 0 : index
    %359 = vector.load %arg8[%c0_238, %c0_239] : memref<8x256xf32, #tpu.memory_space<vmem>>, vector<8x256xf32>
    %c0_240 = arith.constant 0 : index
    %c0_241 = arith.constant 0 : index
    %360 = vector.load %arg3[%c0_240, %c0_241] : memref<256x256xf32, #tpu.memory_space<vmem>>, vector<256x256xf32>
    %cst_242 = arith.constant dense<0.000000e+00> : vector<8x256xf32>
    %361 = tpu.matmul %301, %360, %cst_242 {dimension_numbers = #tpu.dot_dimension_numbers<[1], [0], [0], [1], [0, 0, 1, 1], [], []>} : vector<8x256xf32>, vector<256x256xf32>, vector<8x256xf32> -> vector<8x256xf32>
    %362 = arith.addf %359, %361 : vector<8x256xf32>
    %363 = math.tanh %362 : vector<8x256xf32>
    %c8_i32_243 = arith.constant 8 : i32
    %364 = arith.muli %c5_i32, %c8_i32_243 : i32
    %365 = tpu.assume_multiple %364, 8 : i32
    %c0_244 = arith.constant 0 : index
    %c0_245 = arith.constant 0 : index
    %366 = vector.load %arg4[%c0_244, %c0_245] : memref<256x256xf32, #tpu.memory_space<vmem>>, vector<256x256xf32>
    %cst_246 = arith.constant dense<0.000000e+00> : vector<8x256xf32>
    %367 = tpu.matmul %363, %366, %cst_246 {dimension_numbers = #tpu.dot_dimension_numbers<[1], [0], [0], [1], [0, 0, 1, 1], [], []>} : vector<8x256xf32>, vector<256x256xf32>, vector<8x256xf32> -> vector<8x256xf32>
    %c0_247 = arith.constant 0 : index
    %c0_248 = arith.constant 0 : index
    %368 = vector.load %arg5[%c0_247, %c0_248] : memref<1x256xf32, #tpu.memory_space<vmem>>, vector<1x256xf32>
    %369 = vector.broadcast %368 : vector<1x256xf32> to vector<8x256xf32>
    %370 = arith.addf %367, %369 : vector<8x256xf32>
    %371 = arith.index_cast %365 : i32 to index
    %c0_249 = arith.constant 0 : index
    %372 = vector.load %arg6[%371, %c0_249] : memref<64x256xf32, #tpu.memory_space<vmem>>, vector<8x256xf32>
    tpu.vector_store %arg6[%371, %c0_249], %370 {strides = array<i32>} : memref<64x256xf32, #tpu.memory_space<vmem>>, vector<8x256xf32>,
    %c6_i32 = arith.constant 6 : i32
    %c0_i32_250 = arith.constant 0 : i32
    %373 = arith.addi %c0_i32_250, %c6_i32 : i32
    %374 = arith.index_cast %373 : i32 to index
    %375 = memref.load %arg0[%374] : memref<64xi32, #tpu.memory_space<smem>>
    %376 = arith.index_cast %375 : i32 to index
    %c0_251 = arith.constant 0 : index
    %377 = vector.load %arg1[%376, %c0_251] : memref<256x256xf32, #tpu.memory_space<vmem>>, vector<1x256xf32>
    %c0_252 = arith.constant 0 : index
    %c0_253 = arith.constant 0 : index
    %378 = vector.load %arg8[%c0_252, %c0_253] : memref<8x256xf32, #tpu.memory_space<vmem>>, vector<1x256xf32>
    tpu.vector_store %arg8[%c0_252, %c0_253], %377 {strides = array<i32>} : memref<8x256xf32, #tpu.memory_space<vmem>>, vector<1x256xf32>,
    %c8_i32_254 = arith.constant 8 : i32
    %379 = arith.addi %c8_i32_254, %c6_i32 : i32
    %380 = arith.index_cast %379 : i32 to index
    %381 = memref.load %arg0[%380] : memref<64xi32, #tpu.memory_space<smem>>
    %382 = arith.index_cast %381 : i32 to index
    %c0_255 = arith.constant 0 : index
    %383 = vector.load %arg1[%382, %c0_255] : memref<256x256xf32, #tpu.memory_space<vmem>>, vector<1x256xf32>
    %c1_256 = arith.constant 1 : index
    %c0_257 = arith.constant 0 : index
    %384 = vector.load %arg8[%c1_256, %c0_257] : memref<8x256xf32, #tpu.memory_space<vmem>>, vector<1x256xf32>
    tpu.vector_store %arg8[%c1_256, %c0_257], %383 {strides = array<i32>} : memref<8x256xf32, #tpu.memory_space<vmem>>, vector<1x256xf32>,
    %c16_i32_258 = arith.constant 16 : i32
    %385 = arith.addi %c16_i32_258, %c6_i32 : i32
    %386 = arith.index_cast %385 : i32 to index
    %387 = memref.load %arg0[%386] : memref<64xi32, #tpu.memory_space<smem>>
    %388 = arith.index_cast %387 : i32 to index
    %c0_259 = arith.constant 0 : index
    %389 = vector.load %arg1[%388, %c0_259] : memref<256x256xf32, #tpu.memory_space<vmem>>, vector<1x256xf32>
    %c2_260 = arith.constant 2 : index
    %c0_261 = arith.constant 0 : index
    %390 = vector.load %arg8[%c2_260, %c0_261] : memref<8x256xf32, #tpu.memory_space<vmem>>, vector<1x256xf32>
    tpu.vector_store %arg8[%c2_260, %c0_261], %389 {strides = array<i32>} : memref<8x256xf32, #tpu.memory_space<vmem>>, vector<1x256xf32>,
    %c24_i32_262 = arith.constant 24 : i32
    %391 = arith.addi %c24_i32_262, %c6_i32 : i32
    %392 = arith.index_cast %391 : i32 to index
    %393 = memref.load %arg0[%392] : memref<64xi32, #tpu.memory_space<smem>>
    %394 = arith.index_cast %393 : i32 to index
    %c0_263 = arith.constant 0 : index
    %395 = vector.load %arg1[%394, %c0_263] : memref<256x256xf32, #tpu.memory_space<vmem>>, vector<1x256xf32>
    %c3_264 = arith.constant 3 : index
    %c0_265 = arith.constant 0 : index
    %396 = vector.load %arg8[%c3_264, %c0_265] : memref<8x256xf32, #tpu.memory_space<vmem>>, vector<1x256xf32>
    tpu.vector_store %arg8[%c3_264, %c0_265], %395 {strides = array<i32>} : memref<8x256xf32, #tpu.memory_space<vmem>>, vector<1x256xf32>,
    %c32_i32_266 = arith.constant 32 : i32
    %397 = arith.addi %c32_i32_266, %c6_i32 : i32
    %398 = arith.index_cast %397 : i32 to index
    %399 = memref.load %arg0[%398] : memref<64xi32, #tpu.memory_space<smem>>
    %400 = arith.index_cast %399 : i32 to index
    %c0_267 = arith.constant 0 : index
    %401 = vector.load %arg1[%400, %c0_267] : memref<256x256xf32, #tpu.memory_space<vmem>>, vector<1x256xf32>
    %c4_268 = arith.constant 4 : index
    %c0_269 = arith.constant 0 : index
    %402 = vector.load %arg8[%c4_268, %c0_269] : memref<8x256xf32, #tpu.memory_space<vmem>>, vector<1x256xf32>
    tpu.vector_store %arg8[%c4_268, %c0_269], %401 {strides = array<i32>} : memref<8x256xf32, #tpu.memory_space<vmem>>, vector<1x256xf32>,
    %c40_i32_270 = arith.constant 40 : i32
    %403 = arith.addi %c40_i32_270, %c6_i32 : i32
    %404 = arith.index_cast %403 : i32 to index
    %405 = memref.load %arg0[%404] : memref<64xi32, #tpu.memory_space<smem>>
    %406 = arith.index_cast %405 : i32 to index
    %c0_271 = arith.constant 0 : index
    %407 = vector.load %arg1[%406, %c0_271] : memref<256x256xf32, #tpu.memory_space<vmem>>, vector<1x256xf32>
    %c5_272 = arith.constant 5 : index
    %c0_273 = arith.constant 0 : index
    %408 = vector.load %arg8[%c5_272, %c0_273] : memref<8x256xf32, #tpu.memory_space<vmem>>, vector<1x256xf32>
    tpu.vector_store %arg8[%c5_272, %c0_273], %407 {strides = array<i32>} : memref<8x256xf32, #tpu.memory_space<vmem>>, vector<1x256xf32>,
    %c48_i32_274 = arith.constant 48 : i32
    %409 = arith.addi %c48_i32_274, %c6_i32 : i32
    %410 = arith.index_cast %409 : i32 to index
    %411 = memref.load %arg0[%410] : memref<64xi32, #tpu.memory_space<smem>>
    %412 = arith.index_cast %411 : i32 to index
    %c0_275 = arith.constant 0 : index
    %413 = vector.load %arg1[%412, %c0_275] : memref<256x256xf32, #tpu.memory_space<vmem>>, vector<1x256xf32>
    %c6_276 = arith.constant 6 : index
    %c0_277 = arith.constant 0 : index
    %414 = vector.load %arg8[%c6_276, %c0_277] : memref<8x256xf32, #tpu.memory_space<vmem>>, vector<1x256xf32>
    tpu.vector_store %arg8[%c6_276, %c0_277], %413 {strides = array<i32>} : memref<8x256xf32, #tpu.memory_space<vmem>>, vector<1x256xf32>,
    %c56_i32_278 = arith.constant 56 : i32
    %415 = arith.addi %c56_i32_278, %c6_i32 : i32
    %416 = arith.index_cast %415 : i32 to index
    %417 = memref.load %arg0[%416] : memref<64xi32, #tpu.memory_space<smem>>
    %418 = arith.index_cast %417 : i32 to index
    %c0_279 = arith.constant 0 : index
    %419 = vector.load %arg1[%418, %c0_279] : memref<256x256xf32, #tpu.memory_space<vmem>>, vector<1x256xf32>
    %c7_280 = arith.constant 7 : index
    %c0_281 = arith.constant 0 : index
    %420 = vector.load %arg8[%c7_280, %c0_281] : memref<8x256xf32, #tpu.memory_space<vmem>>, vector<1x256xf32>
    tpu.vector_store %arg8[%c7_280, %c0_281], %419 {strides = array<i32>} : memref<8x256xf32, #tpu.memory_space<vmem>>, vector<1x256xf32>,
    %c0_282 = arith.constant 0 : index
    %c0_283 = arith.constant 0 : index
    %421 = vector.load %arg8[%c0_282, %c0_283] : memref<8x256xf32, #tpu.memory_space<vmem>>, vector<8x256xf32>
    %c0_284 = arith.constant 0 : index
    %c0_285 = arith.constant 0 : index
    %422 = vector.load %arg3[%c0_284, %c0_285] : memref<256x256xf32, #tpu.memory_space<vmem>>, vector<256x256xf32>
    %cst_286 = arith.constant dense<0.000000e+00> : vector<8x256xf32>
    %423 = tpu.matmul %363, %422, %cst_286 {dimension_numbers = #tpu.dot_dimension_numbers<[1], [0], [0], [1], [0, 0, 1, 1], [], []>} : vector<8x256xf32>, vector<256x256xf32>, vector<8x256xf32> -> vector<8x256xf32>
    %424 = arith.addf %421, %423 : vector<8x256xf32>
    %425 = math.tanh %424 : vector<8x256xf32>
    %c8_i32_287 = arith.constant 8 : i32
    %426 = arith.muli %c6_i32, %c8_i32_287 : i32
    %427 = tpu.assume_multiple %426, 8 : i32
    %c0_288 = arith.constant 0 : index
    %c0_289 = arith.constant 0 : index
    %428 = vector.load %arg4[%c0_288, %c0_289] : memref<256x256xf32, #tpu.memory_space<vmem>>, vector<256x256xf32>
    %cst_290 = arith.constant dense<0.000000e+00> : vector<8x256xf32>
    %429 = tpu.matmul %425, %428, %cst_290 {dimension_numbers = #tpu.dot_dimension_numbers<[1], [0], [0], [1], [0, 0, 1, 1], [], []>} : vector<8x256xf32>, vector<256x256xf32>, vector<8x256xf32> -> vector<8x256xf32>
    %c0_291 = arith.constant 0 : index
    %c0_292 = arith.constant 0 : index
    %430 = vector.load %arg5[%c0_291, %c0_292] : memref<1x256xf32, #tpu.memory_space<vmem>>, vector<1x256xf32>
    %431 = vector.broadcast %430 : vector<1x256xf32> to vector<8x256xf32>
    %432 = arith.addf %429, %431 : vector<8x256xf32>
    %433 = arith.index_cast %427 : i32 to index
    %c0_293 = arith.constant 0 : index
    %434 = vector.load %arg6[%433, %c0_293] : memref<64x256xf32, #tpu.memory_space<vmem>>, vector<8x256xf32>
    tpu.vector_store %arg6[%433, %c0_293], %432 {strides = array<i32>} : memref<64x256xf32, #tpu.memory_space<vmem>>, vector<8x256xf32>,
    %c7_i32 = arith.constant 7 : i32
    %c0_i32_294 = arith.constant 0 : i32
    %435 = arith.addi %c0_i32_294, %c7_i32 : i32
    %436 = arith.index_cast %435 : i32 to index
    %437 = memref.load %arg0[%436] : memref<64xi32, #tpu.memory_space<smem>>
    %438 = arith.index_cast %437 : i32 to index
    %c0_295 = arith.constant 0 : index
    %439 = vector.load %arg1[%438, %c0_295] : memref<256x256xf32, #tpu.memory_space<vmem>>, vector<1x256xf32>
    %c0_296 = arith.constant 0 : index
    %c0_297 = arith.constant 0 : index
    %440 = vector.load %arg8[%c0_296, %c0_297] : memref<8x256xf32, #tpu.memory_space<vmem>>, vector<1x256xf32>
    tpu.vector_store %arg8[%c0_296, %c0_297], %439 {strides = array<i32>} : memref<8x256xf32, #tpu.memory_space<vmem>>, vector<1x256xf32>,
    %c8_i32_298 = arith.constant 8 : i32
    %441 = arith.addi %c8_i32_298, %c7_i32 : i32
    %442 = arith.index_cast %441 : i32 to index
    %443 = memref.load %arg0[%442] : memref<64xi32, #tpu.memory_space<smem>>
    %444 = arith.index_cast %443 : i32 to index
    %c0_299 = arith.constant 0 : index
    %445 = vector.load %arg1[%444, %c0_299] : memref<256x256xf32, #tpu.memory_space<vmem>>, vector<1x256xf32>
    %c1_300 = arith.constant 1 : index
    %c0_301 = arith.constant 0 : index
    %446 = vector.load %arg8[%c1_300, %c0_301] : memref<8x256xf32, #tpu.memory_space<vmem>>, vector<1x256xf32>
    tpu.vector_store %arg8[%c1_300, %c0_301], %445 {strides = array<i32>} : memref<8x256xf32, #tpu.memory_space<vmem>>, vector<1x256xf32>,
    %c16_i32_302 = arith.constant 16 : i32
    %447 = arith.addi %c16_i32_302, %c7_i32 : i32
    %448 = arith.index_cast %447 : i32 to index
    %449 = memref.load %arg0[%448] : memref<64xi32, #tpu.memory_space<smem>>
    %450 = arith.index_cast %449 : i32 to index
    %c0_303 = arith.constant 0 : index
    %451 = vector.load %arg1[%450, %c0_303] : memref<256x256xf32, #tpu.memory_space<vmem>>, vector<1x256xf32>
    %c2_304 = arith.constant 2 : index
    %c0_305 = arith.constant 0 : index
    %452 = vector.load %arg8[%c2_304, %c0_305] : memref<8x256xf32, #tpu.memory_space<vmem>>, vector<1x256xf32>
    tpu.vector_store %arg8[%c2_304, %c0_305], %451 {strides = array<i32>} : memref<8x256xf32, #tpu.memory_space<vmem>>, vector<1x256xf32>,
    %c24_i32_306 = arith.constant 24 : i32
    %453 = arith.addi %c24_i32_306, %c7_i32 : i32
    %454 = arith.index_cast %453 : i32 to index
    %455 = memref.load %arg0[%454] : memref<64xi32, #tpu.memory_space<smem>>
    %456 = arith.index_cast %455 : i32 to index
    %c0_307 = arith.constant 0 : index
    %457 = vector.load %arg1[%456, %c0_307] : memref<256x256xf32, #tpu.memory_space<vmem>>, vector<1x256xf32>
    %c3_308 = arith.constant 3 : index
    %c0_309 = arith.constant 0 : index
    %458 = vector.load %arg8[%c3_308, %c0_309] : memref<8x256xf32, #tpu.memory_space<vmem>>, vector<1x256xf32>
    tpu.vector_store %arg8[%c3_308, %c0_309], %457 {strides = array<i32>} : memref<8x256xf32, #tpu.memory_space<vmem>>, vector<1x256xf32>,
    %c32_i32_310 = arith.constant 32 : i32
    %459 = arith.addi %c32_i32_310, %c7_i32 : i32
    %460 = arith.index_cast %459 : i32 to index
    %461 = memref.load %arg0[%460] : memref<64xi32, #tpu.memory_space<smem>>
    %462 = arith.index_cast %461 : i32 to index
    %c0_311 = arith.constant 0 : index
    %463 = vector.load %arg1[%462, %c0_311] : memref<256x256xf32, #tpu.memory_space<vmem>>, vector<1x256xf32>
    %c4_312 = arith.constant 4 : index
    %c0_313 = arith.constant 0 : index
    %464 = vector.load %arg8[%c4_312, %c0_313] : memref<8x256xf32, #tpu.memory_space<vmem>>, vector<1x256xf32>
    tpu.vector_store %arg8[%c4_312, %c0_313], %463 {strides = array<i32>} : memref<8x256xf32, #tpu.memory_space<vmem>>, vector<1x256xf32>,
    %c40_i32_314 = arith.constant 40 : i32
    %465 = arith.addi %c40_i32_314, %c7_i32 : i32
    %466 = arith.index_cast %465 : i32 to index
    %467 = memref.load %arg0[%466] : memref<64xi32, #tpu.memory_space<smem>>
    %468 = arith.index_cast %467 : i32 to index
    %c0_315 = arith.constant 0 : index
    %469 = vector.load %arg1[%468, %c0_315] : memref<256x256xf32, #tpu.memory_space<vmem>>, vector<1x256xf32>
    %c5_316 = arith.constant 5 : index
    %c0_317 = arith.constant 0 : index
    %470 = vector.load %arg8[%c5_316, %c0_317] : memref<8x256xf32, #tpu.memory_space<vmem>>, vector<1x256xf32>
    tpu.vector_store %arg8[%c5_316, %c0_317], %469 {strides = array<i32>} : memref<8x256xf32, #tpu.memory_space<vmem>>, vector<1x256xf32>,
    %c48_i32_318 = arith.constant 48 : i32
    %471 = arith.addi %c48_i32_318, %c7_i32 : i32
    %472 = arith.index_cast %471 : i32 to index
    %473 = memref.load %arg0[%472] : memref<64xi32, #tpu.memory_space<smem>>
    %474 = arith.index_cast %473 : i32 to index
    %c0_319 = arith.constant 0 : index
    %475 = vector.load %arg1[%474, %c0_319] : memref<256x256xf32, #tpu.memory_space<vmem>>, vector<1x256xf32>
    %c6_320 = arith.constant 6 : index
    %c0_321 = arith.constant 0 : index
    %476 = vector.load %arg8[%c6_320, %c0_321] : memref<8x256xf32, #tpu.memory_space<vmem>>, vector<1x256xf32>
    tpu.vector_store %arg8[%c6_320, %c0_321], %475 {strides = array<i32>} : memref<8x256xf32, #tpu.memory_space<vmem>>, vector<1x256xf32>,
    %c56_i32_322 = arith.constant 56 : i32
    %477 = arith.addi %c56_i32_322, %c7_i32 : i32
    %478 = arith.index_cast %477 : i32 to index
    %479 = memref.load %arg0[%478] : memref<64xi32, #tpu.memory_space<smem>>
    %480 = arith.index_cast %479 : i32 to index
    %c0_323 = arith.constant 0 : index
    %481 = vector.load %arg1[%480, %c0_323] : memref<256x256xf32, #tpu.memory_space<vmem>>, vector<1x256xf32>
    %c7_324 = arith.constant 7 : index
    %c0_325 = arith.constant 0 : index
    %482 = vector.load %arg8[%c7_324, %c0_325] : memref<8x256xf32, #tpu.memory_space<vmem>>, vector<1x256xf32>
    tpu.vector_store %arg8[%c7_324, %c0_325], %481 {strides = array<i32>} : memref<8x256xf32, #tpu.memory_space<vmem>>, vector<1x256xf32>,
    %c0_326 = arith.constant 0 : index
    %c0_327 = arith.constant 0 : index
    %483 = vector.load %arg8[%c0_326, %c0_327] : memref<8x256xf32, #tpu.memory_space<vmem>>, vector<8x256xf32>
    %c0_328 = arith.constant 0 : index
    %c0_329 = arith.constant 0 : index
    %484 = vector.load %arg3[%c0_328, %c0_329] : memref<256x256xf32, #tpu.memory_space<vmem>>, vector<256x256xf32>
    %cst_330 = arith.constant dense<0.000000e+00> : vector<8x256xf32>
    %485 = tpu.matmul %425, %484, %cst_330 {dimension_numbers = #tpu.dot_dimension_numbers<[1], [0], [0], [1], [0, 0, 1, 1], [], []>} : vector<8x256xf32>, vector<256x256xf32>, vector<8x256xf32> -> vector<8x256xf32>
    %486 = arith.addf %483, %485 : vector<8x256xf32>
    %487 = math.tanh %486 : vector<8x256xf32>
    %c8_i32_331 = arith.constant 8 : i32
    %488 = arith.muli %c7_i32, %c8_i32_331 : i32
    %489 = tpu.assume_multiple %488, 8 : i32
    %c0_332 = arith.constant 0 : index
    %c0_333 = arith.constant 0 : index
    %490 = vector.load %arg4[%c0_332, %c0_333] : memref<256x256xf32, #tpu.memory_space<vmem>>, vector<256x256xf32>
    %cst_334 = arith.constant dense<0.000000e+00> : vector<8x256xf32>
    %491 = tpu.matmul %487, %490, %cst_334 {dimension_numbers = #tpu.dot_dimension_numbers<[1], [0], [0], [1], [0, 0, 1, 1], [], []>} : vector<8x256xf32>, vector<256x256xf32>, vector<8x256xf32> -> vector<8x256xf32>
    %c0_335 = arith.constant 0 : index
    %c0_336 = arith.constant 0 : index
    %492 = vector.load %arg5[%c0_335, %c0_336] : memref<1x256xf32, #tpu.memory_space<vmem>>, vector<1x256xf32>
    %493 = vector.broadcast %492 : vector<1x256xf32> to vector<8x256xf32>
    %494 = arith.addf %491, %493 : vector<8x256xf32>
    %495 = arith.index_cast %489 : i32 to index
    %c0_337 = arith.constant 0 : index
    %496 = vector.load %arg6[%495, %c0_337] : memref<64x256xf32, #tpu.memory_space<vmem>>, vector<8x256xf32>
    tpu.vector_store %arg6[%495, %c0_337], %494 {strides = array<i32>} : memref<64x256xf32, #tpu.memory_space<vmem>>, vector<8x256xf32>,
    %c8_i32_338 = arith.constant 8 : i32
    %c0_339 = arith.constant 0 : index
    %c0_340 = arith.constant 0 : index
    %497 = vector.load %arg7[%c0_339, %c0_340] : memref<8x256xf32, #tpu.memory_space<vmem>>, vector<8x256xf32>
    tpu.vector_store %arg7[%c0_339, %c0_340], %487 {strides = array<i32>} : memref<8x256xf32, #tpu.memory_space<vmem>>, vector<8x256xf32>,
    return
  }
}

</mosaic_0001>

<bundles_post_ra>
// kernel: text_generator_forward.1
= control target key start
LH: loop header
LB: loop body
LE: loop exit
PB: predicated region body
PF: predicated region fallthrough
CT: control target
= control target key end

     0   :  { %13 = vsyncpa [#allocation6], 0  ;;  %s6343_s0 = inlined_call_operand.vmem [shape: s32[64], index: 0, kind: input, shape index: {}]   ;;  %s6344_s1 = inlined_call_operand.hbm [shape: f32[256,256], index: 1, kind: input, shape index: {}]   ;;  %s6345_s2 = inlined_call_operand.hbm [shape: f32[8,256], index: 2, kind: input, shape index: {}]   ;;  %s6346_s3 = inlined_call_operand.hbm [shape: f32[256,256], index: 3, kind: input, shape index: {}]   ;;  %s6347_s4 = inlined_call_operand.hbm [shape: f32[256,256], index: 4, kind: input, shape index: {}]   ;;  %s6348_s5 = inlined_call_operand.vmem [shape: f32[1,256], index: 5, kind: input, shape index: {}]   ;;  %s6349_s6 = inlined_call_operand.hbm [shape: f32[64,256], index: 6, kind: output, shape index: {0}]   ;;  %s6350_s7 = inlined_call_operand.hbm [shape: f32[8,256], index: 7, kind: output, shape index: {1}]  }
   0x1   :  { %14 = vsyncpa [#allocation4], 0 }
   0x2   :  { %15 = vsyncpa [#allocation9], 0 }
   0x3   :  { %16 = vsyncpa [#allocation12], 0 }
   0x4   :  { %17 = vsyncpa [#allocation5], 0 }
   0x5   :  { %18 = vsyncpa [#allocation15], 0  ;;  %s25_s26 = sshll.u32 %s6343_s0, 4  ;;  %s3893_s27 = smov [#allocation8]   ;;  %s26_s26 = int_to_ptr.vmem [resolvable:$true] %s25_s26 }
   0x6   :  { %s47_s28 = sshll.u32 %s3893_s27, 4  ;;  %s48_s28 = int_to_ptr.vmem [resolvable:$true] %s47_s28 }
   0x7   :  { %s3757_s29 = scalar_lea.vmem %s48_s28, 256  ;;  %p3762_p1 = scmp.lt.s32.totalorder %s48_s28, %s48_s28 }
   0x8   :  { %p3758_p0 = scmp.ne.s32.totalorder %s48_s28, %s3757_s29  ;;  %p3763_p2 = scmp.lt.s32.totalorder %s3757_s29, %s3757_s29 }
   0xa   :  { %p3764_p3 = por %p3763_p2, %p3762_p1 }
   0xc   :  { %p3765_p4 = pnand %p3764_p3, %p3758_p0 }
   0xe   :  { %3768 = shalt.err (!%p3765_p4)
}
   0xf   :  { %50 = dma.hbm_to_vmem [thread:$0]  %s6345_s2, 256, %s48_s28, [#allocation9]  }
  0x10   :  { %s3769_s9 = scalar_lea.vmem %s26_s26, 16  ;;  %p3774_p6 = scmp.lt.s32.totalorder %s26_s26, %s26_s26 }
  0x11   :  { %p3770_p5 = scmp.ne.s32.totalorder %s26_s26, %s3769_s9  ;;  %p3775_p7 = scmp.lt.s32.totalorder %s3769_s9, %s3769_s9 }
  0x13   :  { %p3776_p8 = por %p3775_p7, %p3774_p6 }
  0x15   :  { %p3777_p9 = pnand %p3776_p8, %p3770_p5 }
  0x17   :  { %3780 = shalt.err (!%p3777_p9)
}
  0x18   :  { %s3894_s0 = smov [#allocation3]   ;;  %s3895_s10 = smov [#allocation7]  }
  0x19   :  { %28 = dma.vmem_to_smem %s26_s26, 16, %s3894_s0, [#allocation6]  }
  0x1a   :  { %s34_s11 = sshll.u32 %s3895_s10, 4  ;;  %s35_s11 = int_to_ptr.vmem [resolvable:$true] %s34_s11 }
  0x1b   :  { %s3789_s12 = scalar_lea.vmem %s35_s11, 8192  ;;  %p3794_p11 = scmp.lt.s32.totalorder %s35_s11, %s35_s11 }
  0x1c   :  { %p3790_p10 = scmp.ne.s32.totalorder %s35_s11, %s3789_s12  ;;  %p3795_p12 = scmp.lt.s32.totalorder %s3789_s12, %s3789_s12 }
  0x1e   :  { %p3796_p13 = por %p3795_p12, %p3794_p11 }
  0x20   :  { %p3797_p0 = pnand %p3796_p13, %p3790_p10 }
  0x22   :  { %3800 = shalt.err (!%p3797_p0)
}
  0x23   :  { %s3896_s2 = smov 256   ;;  %s3897_s13 = smov 16  }
  0x24   :  { %40 = dma.hbm_to_vmem [thread:$0]  %s6344_s1, 8192, %s35_s11, [#allocation4], %s3896_s2, %s3896_s2, %s3897_s13  }
  0x25   :  { %s3898_s16 = smov [#allocation10]   ;;  %s3899_s18 = smov [#allocation11]  }
  0x26   :  { %s56_s17 = sshll.u32 %s3898_s16, 4  ;;  %s68_s19 = sshll.u32 %s3899_s18, 4  ;;  %s57_s17 = int_to_ptr.vmem [resolvable:$true] %s56_s17  ;;  %s69_s19 = int_to_ptr.vmem [resolvable:$true] %s68_s19 }
  0x27   :  { %s3809_s20 = scalar_lea.vmem %s57_s17, 8192  ;;  %p3814_p2 = scmp.lt.s32.totalorder %s57_s17, %s57_s17 }
  0x28   :  { %p3810_p1 = scmp.ne.s32.totalorder %s57_s17, %s3809_s20  ;;  %p3815_p3 = scmp.lt.s32.totalorder %s3809_s20, %s3809_s20 }
  0x2a   :  { %p3816_p4 = por %p3815_p3, %p3814_p2 }
  0x2c   :  { %p3817_p5 = pnand %p3816_p4, %p3810_p1 }
  0x2e   :  { %3820 = shalt.err (!%p3817_p5)
}
  0x2f   :  { %62 = dma.hbm_to_vmem [thread:$0]  %s6346_s3, 8192, %s57_s17, [#allocation9], %s3896_s2, %s3896_s2, %s3897_s13  }
  0x30   :  { %s3829_s1 = scalar_lea.vmem %s69_s19, 8192  ;;  %p3834_p7 = scmp.lt.s32.totalorder %s69_s19, %s69_s19 }
  0x31   :  { %p3830_p6 = scmp.ne.s32.totalorder %s69_s19, %s3829_s1  ;;  %p3835_p8 = scmp.lt.s32.totalorder %s3829_s1, %s3829_s1 }
  0x33   :  { %p3836_p9 = por %p3835_p8, %p3834_p7 }
  0x35   :  { %p3837_p10 = pnand %p3836_p9, %p3830_p6 }
  0x37   :  { %3840 = shalt.err (!%p3837_p10)
}
  0x38   :  { %74 = dma.hbm_to_vmem [thread:$0]  %s6347_s4, 8192, %s69_s19, [#allocation12], %s3896_s2, %s3896_s2, %s3897_s13  }
  0x39   :  { %3881 = dma.done.wait [#allocation6], 16  }
  0x3a   :  { %3882 = vsyncadd [#allocation6], 4294967280 }
  0x3b   :  { %3883 = dma.done.wait [#allocation4], 8192  }
  0x3c   :  { %3884 = vsyncadd [#allocation4], 4294959104 }
  0x3d   :  { %3885 = dma.done.wait [#allocation9], 8448  }
  0x3e   :  { %3886 = vsyncadd [#allocation9], 4294958848 }
  0x3f   :  { %3887 = dma.done.wait [#allocation12], 8192  }
  0x40   :  { %3888 = vsyncadd [#allocation12], 4294959104 }
  0x41   :  { %92 = sfence }
  0x42   :  { %v3966_v0 = vld [vmem:[#allocation10 + $0xf8] sm:$0xff]  ;;  %v3968_v1 = vld [vmem:[#allocation10 + $0xf0] sm:$0xff]  ;;  %v3970_v2 = vld [vmem:[#allocation10 + $0xe8] sm:$0xff]  ;;  %s3984_s3 = sld [smem:[#allocation3]]  ;;  %v6351_v45 = vlaneseq  ;;  %v6509_v56 = vmov 0 }
  0x43   :  { %268 = vmatprep.subr.mxu0 %v3966_v0  ;;  %v3973_v3 = vld [vmem:[#allocation10 + $0xe0] sm:$0xff]  ;;  %v3976_v4 = vld [vmem:[#allocation10 + $0xd8] sm:$0xff]  ;;  %v3979_v5 = vld [vmem:[#allocation10 + $0xd0] sm:$0xff]  ;;  %s3989_s4 = sld [smem:[#allocation3 + $0x8]] }
  0x44   :  { %269 = vmatpush1.msra.mxu0 %v3968_v1  ;;  %v3982_v6 = vld [vmem:[#allocation10 + $0xc8] sm:$0xff]  ;;  %v3987_v7 = vld [vmem:[#allocation10 + $0xc0] sm:$0xff]  ;;  %v3992_v8 = vld [vmem:[#allocation10 + $0xb8] sm:$0xff]  ;;  %s4013_s26 = sld [smem:[#allocation3 + $0x10]]  ;;  %vm4184_vm0 = vcmp.lt.s32.totalorder %v6351_v45, 256 }
  0x45   :  { %270 = vmatprep.subr.mxu0 %v3970_v2  ;;  %v3995_v9 = vld [vmem:[#allocation10 + $0xb0] sm:$0xff]  ;;  %v3998_v10 = vld [vmem:[#allocation10 + $0xa8] sm:$0xff]  ;;  %v4001_v11 = vld [vmem:[#allocation10 + $0xa0] sm:$0xff]  ;;  %s4019_s28 = sld [smem:[#allocation3 + $0x18]]  ;;  %v6510_v56 = vsel %vm4184_vm0, 4294967295, %v6509_v56 }
  0x46   :  { %271 = vmatpush1.msra.mxu0 %v3973_v3  ;;  %v4004_v12 = vld [vmem:[#allocation10 + $0x98] sm:$0xff]  ;;  %v4007_v13 = vld [vmem:[#allocation10 + $0x90] sm:$0xff]  ;;  %v4010_v14 = vld [vmem:[#allocation10 + $0x88] sm:$0xff]  ;;  %s4024_s29 = sld [smem:[#allocation3 + $0x20]]  ;;  %6511 = vst [vmem:[#allocation37_spill] sm:$0xff] %v6510_v56 }
  0x47   :  { %272 = vmatprep.subr.mxu0 %v3976_v4  ;;  %v4016_v15 = vld [vmem:[#allocation10 + $0x80] sm:$0xff]  ;;  %v4022_v16 = vld [vmem:[#allocation10 + $0x78] sm:$0xff]  ;;  %v4027_v17 = vld [vmem:[#allocation10 + $0x70] sm:$0xff]  ;;  %s4037_s10 = sld [smem:[#allocation3 + $0x28]] }
  0x48   :  { %273 = vmatpush1.msra.mxu0 %v3979_v5  ;;  %s96_s25 = sshra.s32 %s3984_s3, 3  ;;  %s99_s30 = sand.u32 7, %s3984_s3  ;;  %v4031_v18 = vld [vmem:[#allocation10 + $0x68] sm:$0xff]  ;;  %v4035_v19 = vld [vmem:[#allocation10 + $0x60] sm:$0xff]  ;;  %v4040_v20 = vld [vmem:[#allocation10 + $0x58] sm:$0xff] }
  0x49   :  { %274 = vmatprep.subr.mxu0 %v3982_v6  ;;  %s112_s27 = sshra.s32 %s3989_s4, 3  ;;  %s3644_s8 = sshll.u32 %s96_s25, 4  ;;  %v4045_v21 = vld [vmem:[#allocation10 + $0x50] sm:$0xff]  ;;  %v4050_v22 = vld [vmem:[#allocation10 + $0x48] sm:$0xff]  ;;  %v4056_v23 = vld [vmem:[#allocation10 + $0x40] sm:$0xff] }
  0x4a   :  { %275 = vmatpush1.msra.mxu0 %v3987_v7  ;;  %s115_s9 = sand.u32 7, %s3989_s4  ;;  %s3645_s0 = sshll.u32 %s112_s27, 4  ;;  %v4058_v24 = vld [vmem:[#allocation10 + $0x38] sm:$0xff]  ;;  %v4065_v27 = vld [vmem:[#allocation11 + $0xf0] sm:$0xff]  ;;  %v4067_v28 = vld [vmem:[#allocation11 + $0xe8] sm:$0xff] }
  0x4b   :  { %276 = vmatprep.subr.mxu0 %v3992_v8  ;;  %s4042_s11 = sadd.s32 %s3644_s8, %s99_s30  ;;  %s4047_s12 = sadd.s32 %s3645_s0, %s115_s9  ;;  %v94_v25 = vld [vmem:[#allocation8 + $0x8] sm:$0xff]  ;;  %6495 = vst [vmem:[#allocation23_spill] sm:$0xff] %v4065_v27  ;;  %6496 = vst [vmem:[#allocation24_spill] sm:$0xff] %v4067_v28  ;;  %v4071_v29 = vld [vmem:[#allocation10 + $0x30] sm:$0xff] }
  0x4c   :  { %277 = vmatpush1.msra.mxu0 %v3995_v9  ;;  %s125_s14 = sshra.s32 %s4013_s26, 3  ;;  %s4053_s15 = sld [smem:[#allocation3 + $0x30]]  ;;  %332 = vmatprep.mubr.f32.mxu0 %v94_v25  ;;  %v4063_v26 = vld [vmem:[#allocation11 + $0xf8] sm:$0xff]  ;;  %v4074_v30 = vld [vmem:[#allocation11 + $0xe0] sm:$0xff]  ;;  %v4080_v31 = vld [vmem:[#allocation10 + $0x28] sm:$0xff] }
  0x4d   :  { %278 = vmatprep.subr.mxu0 %v3998_v10  ;;  %s4060_s16 = sld [smem:[#allocation3 + $0x38]]  ;;  %6494 = vst [vmem:[#allocation22_spill] sm:$0xff] %v4063_v26  ;;  %s138_s17 = sshra.s32 %s4019_s28, 3  ;;  %419 = vmatprep.subr.mxu1 %v4063_v26  ;;  %6497 = vst [vmem:[#allocation25_spill] sm:$0xff] %v4074_v30  ;;  %v4083_v32 = vld [vmem:[#allocation11 + $0xd8] sm:$0xff]  ;;  %v4088_v33 = vld [vmem:[#allocation10 + $0x20] sm:$0xff] }
  0x4e   :  { %279 = vmatpush1.msra.mxu0 %v4001_v11  ;;  %s128_s18 = sand.u32 7, %s4013_s26  ;;  %s4077_s19 = sshll.u32 %s125_s14, 4  ;;  %420 = vmatpush1.msra.mxu1 %v4065_v27  ;;  %6498 = vst [vmem:[#allocation26_spill] sm:$0xff] %v4083_v32  ;;  %v4091_v34 = vld [vmem:[#allocation11 + $0xd0] sm:$0xff]  ;;  %v4097_v35 = vld [vmem:[#allocation10 + $0x18] sm:$0xff]  ;;  %v4100_v36 = vld [vmem:[#allocation11 + $0xc8] sm:$0xff] }
  0x4f   :  { %280 = vmatprep.subr.mxu0 %v4004_v12  ;;  %s141_s20 = sand.u32 7, %s4019_s28  ;;  %s151_s21 = sshra.s32 %s4024_s29, 3  ;;  %421 = vmatprep.subr.mxu1 %v4067_v28  ;;  %6499 = vst [vmem:[#allocation27_spill] sm:$0xff] %v4091_v34  ;;  %6500 = vst [vmem:[#allocation28_spill] sm:$0xff] %v4100_v36  ;;  %v4105_v37 = vld [vmem:[#allocation10 + $0x10] sm:$0xff]  ;;  %v4108_v38 = vld [vmem:[#allocation11 + $0xc0] sm:$0xff] }
  0x50   :  { %281 = vmatpush1.msra.mxu0 %v4007_v13  ;;  %s4093_s22 = sshll.u32 %s138_s17, 4  ;;  %s164_s1 = sshra.s32 %s4037_s10, 3  ;;  %422 = vmatpush1.msra.mxu1 %v4074_v30  ;;  %6501 = vst [vmem:[#allocation29_spill] sm:$0xff] %v4108_v38  ;;  %v4114_v39 = vld [vmem:[#allocation10 + $0x8] sm:$0xff]  ;;  %v4117_v40 = vld [vmem:[#allocation11 + $0xb8] sm:$0xff]  ;;  %v4121_v41 = vld [vmem:[#allocation10] sm:$0xff] }
  0x51   :  { %282 = vmatprep.subr.mxu0 %v4010_v14  ;;  %s154_s23 = sand.u32 7, %s4024_s29  ;;  %423 = vmatprep.subr.mxu1 %v4083_v32  ;;  %s4110_s3 = sshll.u32 %s151_s21, 4  ;;  %6502 = vst [vmem:[#allocation30_spill] sm:$0xff] %v4117_v40  ;;  %v4124_v42 = vld [vmem:[#allocation11 + $0xb0] sm:$0xff]  ;;  %v4128_v43 = vld [vmem:[#allocation10 + $0x1f8] sm:$0xff]  ;;  %v4131_v44 = vld [vmem:[#allocation11 + $0xa8] sm:$0xff] }
  0x52   :  { %283 = vmatpush1.msra.mxu0 %v4016_v15  ;;  %s177_s24 = sshra.s32 %s4053_s15, 3  ;;  %424 = vmatpush1.msra.mxu1 %v4091_v34  ;;  %s167_s25 = sand.u32 7, %s4037_s10  ;;  %6503 = vst [vmem:[#allocation31_spill] sm:$0xff] %v4124_v42  ;;  %6504 = vst [vmem:[#allocation32_spill] sm:$0xff] %v4131_v44  ;;  %v4135_v46 = vld [vmem:[#allocation10 + $0x1f0] sm:$0xff]  ;;  %v4138_v47 = vld [vmem:[#allocation11 + $0xa0] sm:$0xff] }
  0x53   :  { %284 = vmatprep.subr.mxu0 %v4022_v16  ;;  %s190_s4 = sshra.s32 %s4060_s16, 3  ;;  %s3649_s27 = sshll.u32 %s164_s1, 4  ;;  %425 = vmatprep.subr.mxu1 %v4100_v36  ;;  %6505 = vst [vmem:[#allocation33_spill] sm:$0xff] %v4138_v47  ;;  %v4151_v48 = vld [vmem:[#allocation10 + $0x1e8] sm:$0xff]  ;;  %v4154_v49 = vld [vmem:[#allocation11 + $0x98] sm:$0xff]  ;;  %v4164_v50 = vld [vmem:[#allocation10 + $0x1e0] sm:$0xff] }
  0x54   :  { %285 = vmatpush1.msra.mxu0 %v4027_v17  ;;  %s180_s30 = sand.u32 7, %s4053_s15  ;;  %s3650_s8 = sshll.u32 %s177_s24, 4  ;;  %426 = vmatpush1.msra.mxu1 %v4108_v38  ;;  %6506 = vst [vmem:[#allocation34_spill] sm:$0xff] %v4154_v49  ;;  %v4166_v51 = vld [vmem:[#allocation10 + $0x1d8] sm:$0xff]  ;;  %v4169_v52 = vld [vmem:[#allocation11 + $0x90] sm:$0xff]  ;;  %v4178_v54 = vld [vmem:[#allocation10 + $0x1c8] sm:$0xff] }
  0x55   :  { %286 = vmatprep.subr.mxu0 %v4031_v18  ;;  %s193_s9 = sand.u32 7, %s4060_s16  ;;  %s3651_s0 = sshll.u32 %s190_s4, 4  ;;  %427 = vmatprep.subr.mxu1 %v4117_v40  ;;  %6507 = vst [vmem:[#allocation35_spill] sm:$0xff] %v4169_v52  ;;  %v4176_v53 = vld [vmem:[#allocation10 + $0x1d0] sm:$0xff]  ;;  %v4181_v55 = vld [vmem:[#allocation11 + $0x88] sm:$0xff]  ;;  %v4189_v57 = vld [vmem:[#allocation10 + $0x1c0] sm:$0xff] }
  0x56   :  { %287 = vmatpush1.msra.mxu0 %v4035_v19  ;;  %s4143_s10 = sadd.s32 %s4077_s19, %s128_s18  ;;  %s4148_s14 = sadd.s32 %s4093_s22, %s141_s20  ;;  %428 = vmatpush1.msra.mxu1 %v4124_v42  ;;  %6508 = vst [vmem:[#allocation36_spill] sm:$0xff] %v4181_v55  ;;  %v4192_v58 = vld [vmem:[#allocation11 + $0x80] sm:$0xff]  ;;  %v4194_v59 = vld [vmem:[#allocation11 + $0x78] sm:$0xff]  ;;  %v4196_v60 = vld [vmem:[#allocation11 + $0x70] sm:$0xff] }
  0x57   :  { %288 = vmatprep.subr.mxu0 %v4040_v20  ;;  %s4159_s15 = sadd.s32 %s4110_s3, %s154_s23  ;;  %s4161_s16 = sadd.s32 %s3649_s27, %s167_s25  ;;  %429 = vmatprep.subr.mxu1 %v4131_v44  ;;  %6512 = vst [vmem:[#allocation38_spill] sm:$0xff] %v4192_v58  ;;  %6513 = vst [vmem:[#allocation39_spill] sm:$0xff] %v4194_v59  ;;  %v4199_v61 = vld [vmem:[#allocation10 + $0x1b8] sm:$0xff]  ;;  %v4202_v62 = vld [vmem:[#allocation11 + $0x68] sm:$0xff] }
  0x58   :  { %289 = vmatpush1.msra.mxu0 %v4045_v21  ;;  %s4171_s26 = sadd.s32 %s3650_s8, %s180_s30  ;;  %s4173_s28 = sadd.s32 %s3651_s0, %s193_s9  ;;  %430 = vmatpush1.msra.mxu1 %v4138_v47  ;;  %6514 = vst [vmem:[#allocation40_spill] sm:$0xff] %v4196_v60  ;;  %6515 = vst [vmem:[#allocation41_spill] sm:$0xff] %v4202_v62  ;;  %v4206_v25 = vld [vmem:[#allocation10 + $0x1b0] sm:$0xff]  ;;  %v4209_v45 = vld [vmem:[#allocation11 + $0x60] sm:$0xff] }
  0x59   :  { %290 = vmatprep.subr.mxu0 %v4050_v22  ;;  %431 = vmatprep.subr.mxu1 %v4154_v49  ;;  %s103_s29 = scalar_lea.vmem [#allocation7], %s4042_s11  ;;  %6516 = vst [vmem:[#allocation42_spill] sm:$0xff] %v4209_v45  ;;  %s119_s17 = scalar_lea.vmem [#allocation7], %s4047_s12  ;;  %v4235_v47 = vld [vmem:[#allocation11 + $0x58] sm:$0xff]  ;;  %v4263_v56 = vld [vmem:[#allocation10 + $0x188] sm:$0xff]  ;;  %v4272_v44 = vld [vmem:[#allocation11 + $0x30] sm:$0xff] }
  0x5a   :  { %291 = vmatpush1.msra.mxu0 %v4056_v23  ;;  %432 = vmatpush1.msra.mxu1 %v4169_v52  ;;  %v104_v63 = vld [vmem:[%s103_s29] ss:$8 sm:$0x3]  ;;  %s132_s18 = scalar_lea.vmem [#allocation7], %s4143_s10  ;;  %s145_s11 = scalar_lea.vmem [#allocation7], %s4148_s14  ;;  %6517 = vst [vmem:[#allocation43_spill] sm:$0xff] %v4235_v47 }
  0x5b   :  { %292 = vmatprep.subr.mxu0 %v4058_v24  ;;  %433 = vmatprep.subr.mxu1 %v4181_v55  ;;  %109 = vst.msk [vmem:[#allocation2] ss:$8 sm:$0x3] %vm4184_vm0, %v104_v63  ;;  %v120_v52 = vld [vmem:[%s119_s17] ss:$8 sm:$0x3] }
  0x5c   :  { %293 = vmatpush1.msra.mxu0 %v4071_v29  ;;  %v133_v49 = vld [vmem:[%s132_s18] ss:$8 sm:$0x3]  ;;  %434 = vmatpush1.msra.mxu1 %v4192_v58  ;;  %122 = vst.msk [vmem:[#allocation2 + $0x1] ss:$8 sm:$0x3] %vm4184_vm0, %v120_v52 }
  0x5d   :  { %294 = vmatprep.subr.mxu0 %v4080_v31  ;;  %135 = vst.msk [vmem:[#allocation2 + $0x2] ss:$8 sm:$0x3] %vm4184_vm0, %v133_v49  ;;  %v146_v55 = vld [vmem:[%s145_s11] ss:$8 sm:$0x3]  ;;  %435 = vmatprep.subr.mxu1 %v4194_v59 }
  0x5e   :  { %295 = vmatpush1.msra.mxu0 %v4088_v33  ;;  %s158_s19 = scalar_lea.vmem [#allocation7], %s4159_s15  ;;  %148 = vst.msk [vmem:[#allocation2 + $0x3] ss:$8 sm:$0x3] %vm4184_vm0, %v146_v55  ;;  %s171_s12 = scalar_lea.vmem [#allocation7], %s4161_s16  ;;  %v4232_v49 = vld [vmem:[#allocation10 + $0x1a8] sm:$0xff]  ;;  %436 = vmatpush1.msra.mxu1 %v4196_v60 }
  0x5f   :  { %296 = vmatprep.subr.mxu0 %v4097_v35  ;;  %v159_v63 = vld [vmem:[%s158_s19] ss:$8 sm:$0x3]  ;;  %s184_s20 = scalar_lea.vmem [#allocation7], %s4171_s26  ;;  %s197_s21 = scalar_lea.vmem [#allocation7], %s4173_s28  ;;  %437 = vmatprep.subr.mxu1 %v4202_v62  ;;  %v4246_v59 = vld [vmem:[#allocation11 + $0x50] sm:$0xff] }
  0x60   :  { %297 = vmatpush1.msra.mxu0 %v4105_v37  ;;  %161 = vst.msk [vmem:[#allocation2 + $0x4] ss:$8 sm:$0x3] %vm4184_vm0, %v159_v63  ;;  %v172_v52 = vld [vmem:[%s171_s12] ss:$8 sm:$0x3]  ;;  %438 = vmatpush1.msra.mxu1 %v4209_v45 }
  0x61   :  { %298 = vmatprep.subr.mxu0 %v4114_v39  ;;  %v185_v58 = vld [vmem:[%s184_s20] ss:$8 sm:$0x3]  ;;  %174 = vst.msk [vmem:[#allocation2 + $0x5] ss:$8 sm:$0x3] %vm4184_vm0, %v172_v52  ;;  %439 = vmatprep.subr.mxu1 %v4235_v47 }
  0x62   :  { %299 = vmatpush1.msra.mxu0 %v4121_v41  ;;  %187 = vst.msk [vmem:[#allocation2 + $0x6] ss:$8 sm:$0x3] %vm4184_vm0, %v185_v58  ;;  %v198_v55 = vld [vmem:[%s197_s21] ss:$8 sm:$0x3]  ;;  %440 = vmatpush1.msra.mxu1 %v4246_v59 }
  0x63   :  { %300 = vmatprep.subr.mxu0 %v4128_v43  ;;  %v4243_v63 = vld [vmem:[#allocation10 + $0x1a0] sm:$0xff]  ;;  %6518 = vst [vmem:[#allocation44_spill] sm:$0xff] %v4246_v59  ;;  %200 = vst.msk [vmem:[#allocation2 + $0x7] ss:$8 sm:$0x3] %vm4184_vm0, %v198_v55  ;;  %v4251_v60 = vld [vmem:[#allocation10 + $0x198] sm:$0xff] }
  0x64   :  { %301 = vmatpush2.msra.mxu0 %v4135_v46  ;;  %v4254_v58 = vld [vmem:[#allocation11 + $0x48] sm:$0xff]  ;;  %v4257_v52 = vld [vmem:[#allocation10 + $0x190] sm:$0xff]  ;;  %v4260_v62 = vld [vmem:[#allocation11 + $0x40] sm:$0xff]  ;;  %6522 = vst [vmem:[#allocation48_spill] sm:$0xff] %v4272_v44  ;;  %s3476_s22 = sld [smem:[#allocation3 + $0x1]] }
  0x65   :  { %302 = vmatprep.subr.mxu0 %v4151_v48  ;;  %6519 = vst [vmem:[#allocation45_spill] sm:$0xff] %v4254_v58  ;;  %6520 = vst [vmem:[#allocation46_spill] sm:$0xff] %v4260_v62  ;;  %v4266_v55 = vld [vmem:[#allocation11 + $0x38] sm:$0xff]  ;;  %v4269_v45 = vld [vmem:[#allocation10 + $0x180] sm:$0xff]  ;;  %441 = vmatprep.subr.mxu1 %v4254_v58  ;;  %s3479_s1 = sld [smem:[#allocation3 + $0x9]] }
  0x66   :  { %303 = vmatpush2.msra.mxu0 %v4164_v50  ;;  %6521 = vst [vmem:[#allocation47_spill] sm:$0xff] %v4266_v55  ;;  %v4275_v47 = vld [vmem:[#allocation10 + $0x178] sm:$0xff]  ;;  %442 = vmatpush1.msra.mxu1 %v4260_v62  ;;  %v4278_v42 = vld [vmem:[#allocation11 + $0x28] sm:$0xff]  ;;  %v4281_v59 = vld [vmem:[#allocation10 + $0x170] sm:$0xff]  ;;  %s4640_s23 = sld [smem:[#allocation3 + $0x11]] }
  0x67   :  { %304 = vmatprep.subr.mxu0 %v4166_v51  ;;  %6523 = vst [vmem:[#allocation49_spill] sm:$0xff] %v4278_v42  ;;  %443 = vmatprep.subr.mxu1 %v4266_v55  ;;  %v4284_v40 = vld [vmem:[#allocation11 + $0x20] sm:$0xff]  ;;  %v4287_v58 = vld [vmem:[#allocation10 + $0x168] sm:$0xff]  ;;  %v4290_v38 = vld [vmem:[#allocation11 + $0x18] sm:$0xff]  ;;  %s4643_s24 = sld [smem:[#allocation3 + $0x19]] }
  0x68   :  { %305 = vmatpush2.msra.mxu0 %v4176_v53  ;;  %6524 = vst [vmem:[#allocation50_spill] sm:$0xff] %v4284_v40  ;;  %444 = vmatpush1.msra.mxu1 %v4272_v44  ;;  %6525 = vst [vmem:[#allocation51_spill] sm:$0xff] %v4290_v38  ;;  %v4293_v62 = vld [vmem:[#allocation10 + $0x160] sm:$0xff]  ;;  %v4296_v36 = vld [vmem:[#allocation11 + $0x10] sm:$0xff]  ;;  %s4646_s3 = sld [smem:[#allocation3 + $0x21]] }
  0x69   :  { %306 = vmatprep.subr.mxu0 %v4178_v54  ;;  %445 = vmatprep.subr.mxu1 %v4278_v42  ;;  %6526 = vst [vmem:[#allocation52_spill] sm:$0xff] %v4296_v36  ;;  %v4299_v55 = vld [vmem:[#allocation10 + $0x158] sm:$0xff]  ;;  %v4302_v34 = vld [vmem:[#allocation11 + $0x8] sm:$0xff]  ;;  %v4305_v44 = vld [vmem:[#allocation10 + $0x150] sm:$0xff]  ;;  %s4649_s4 = sld [smem:[#allocation3 + $0x29]] }
  0x6a   :  { %307 = vmatpush2.msra.mxu0 %v4189_v57  ;;  %446 = vmatpush1.msra.mxu1 %v4284_v40  ;;  %6527 = vst [vmem:[#allocation53_spill] sm:$0xff] %v4302_v34  ;;  %6528 = vst [vmem:[#allocation54_spill] sm:$0xff] %v4305_v44  ;;  %v4308_v32 = vld [vmem:[#allocation11] sm:$0xff]  ;;  %v4311_v42 = vld [vmem:[#allocation10 + $0x148] sm:$0xff]  ;;  %s496_s25 = sshra.s32 %s3476_s22, 3  ;;  %s4652_s27 = sld [smem:[#allocation3 + $0x31]] }
  0x6b   :  { %308 = vmatprep.subr.mxu0 %v4199_v61  ;;  %447 = vmatprep.subr.mxu1 %v4290_v38  ;;  %6529 = vst [vmem:[#allocation55_spill] sm:$0xff] %v4308_v32  ;;  %6530 = vst [vmem:[#allocation56_spill] sm:$0xff] %v4311_v42  ;;  %v4314_v30 = vld [vmem:[#allocation11 + $0x1f8] sm:$0xff]  ;;  %v4317_v40 = vld [vmem:[#allocation10 + $0x140] sm:$0xff]  ;;  %s499_s30 = sand.u32 7, %s3476_s22  ;;  %s3652_s8 = sshll.u32 %s496_s25, 4 }
  0x6c   :  { %309 = vmatpush2.msra.mxu0 %v4206_v25  ;;  %448 = vmatpush1.msra.mxu1 %v4296_v36  ;;  %6531 = vst [vmem:[#allocation57_spill] sm:$0xff] %v4314_v30  ;;  %6532 = vst [vmem:[#allocation58_spill] sm:$0xff] %v4317_v40  ;;  %v4320_v28 = vld [vmem:[#allocation11 + $0x1f0] sm:$0xff]  ;;  %v4323_v38 = vld [vmem:[#allocation10 + $0x138] sm:$0xff]  ;;  %s502_s9 = sadd.s32 %s3652_s8, %s499_s30  ;;  %s508_s0 = sshra.s32 %s3479_s1, 3 }
  0x6d   :  { %310 = vmatprep.subr.mxu0 %v4232_v49  ;;  %449 = vmatprep.subr.mxu1 %v4302_v34  ;;  %6533 = vst [vmem:[#allocation59_spill] sm:$0xff] %v4320_v28  ;;  %6534 = vst [vmem:[#allocation60_spill] sm:$0xff] %v4323_v38  ;;  %v4326_v27 = vld [vmem:[#allocation11 + $0x1e8] sm:$0xff]  ;;  %v4329_v36 = vld [vmem:[#allocation10 + $0x130] sm:$0xff]  ;;  %s511_s10 = sand.u32 7, %s3479_s1  ;;  %s503_s14 = scalar_lea.vmem [#allocation7], %s502_s9 }
  0x6e   :  { %311 = vmatpush2.msra.mxu0 %v4243_v63  ;;  %450 = vmatpush1.msra.mxu1 %v4308_v32  ;;  %6535 = vst [vmem:[#allocation61_spill] sm:$0xff] %v4326_v27  ;;  %6536 = vst [vmem:[#allocation62_spill] sm:$0xff] %v4329_v36  ;;  %v4332_v26 = vld [vmem:[#allocation11 + $0x1e0] sm:$0xff]  ;;  %v4335_v34 = vld [vmem:[#allocation10 + $0x128] sm:$0xff]  ;;  %s3653_s15 = sshll.u32 %s508_s0, 4  ;;  %s520_s16 = sshra.s32 %s4640_s23, 3 }
  0x6f   :  { %312 = vmatprep.subr.mxu0 %v4251_v60  ;;  %451 = vmatprep.subr.mxu1 %v4314_v30  ;;  %6537 = vst [vmem:[#allocation63_spill] sm:$0xff] %v4332_v26  ;;  %6538 = vst [vmem:[#allocation64_spill] sm:$0xff] %v4335_v34  ;;  %v4341_v32 = vld [vmem:[#allocation10 + $0x120] sm:$0xff]  ;;  %v4347_v30 = vld [vmem:[#allocation10 + $0x118] sm:$0xff]  ;;  %s514_s26 = sadd.s32 %s3653_s15, %s511_s10  ;;  %s523_s28 = sand.u32 7, %s4640_s23 }
  0x70   :  { %313 = vmatpush2.msra.mxu0 %v4257_v52  ;;  %452 = vmatpush2.msra.mxu1 %v4320_v28  ;;  %6541 = vst [vmem:[#allocation67_spill] sm:$0xff] %v4347_v30  ;;  %v4353_v28 = vld [vmem:[#allocation10 + $0x110] sm:$0xff]  ;;  %s3654_s29 = sshll.u32 %s520_s16, 4  ;;  %s515_s17 = scalar_lea.vmem [#allocation7], %s514_s26 }
  0x71   :  { %314 = vmatprep.subr.mxu0 %v4263_v56  ;;  %453 = vmatprep.subr.mxu1 %v4326_v27  ;;  %v4359_v27 = vld [vmem:[#allocation10 + $0x108] sm:$0xff]  ;;  %s526_s18 = sadd.s32 %s3654_s29, %s523_s28  ;;  %s532_s11 = sshra.s32 %s4643_s24, 3 }
  0x72   :  { %315 = vmatpush2.msra.mxu0 %v4269_v45  ;;  %454 = vmatpush2.msra.mxu1 %v4332_v26  ;;  %v4365_v26 = vld [vmem:[#allocation10 + $0x100] sm:$0xff]  ;;  %s535_s19 = sand.u32 7, %s4643_s24  ;;  %s527_s12 = scalar_lea.vmem [#allocation7], %s526_s18 }
  0x73   :  { %316 = vmatprep.subr.mxu0 %v4275_v47  ;;  %s3655_s20 = sshll.u32 %s532_s11, 4  ;;  %s544_s21 = sshra.s32 %s4646_s3, 3 }
  0x74   :  { %317 = vmatpush2.msra.mxu0 %v4281_v59  ;;  %s538_s22 = sadd.s32 %s3655_s20, %s535_s19  ;;  %s547_s1 = sand.u32 7, %s4646_s3 }
  0x75   :  { %318 = vmatprep.subr.mxu0 %v4287_v58  ;;  %s3656_s23 = sshll.u32 %s544_s21, 4  ;;  %s539_s24 = scalar_lea.vmem [#allocation7], %s538_s22 }
  0x76   :  { %319 = vmatpush2.msra.mxu0 %v4293_v62  ;;  %s550_s25 = sadd.s32 %s3656_s23, %s547_s1  ;;  %s556_s30 = sshra.s32 %s4649_s4, 3 }
  0x77   :  { %320 = vmatprep.subr.mxu0 %v4299_v55  ;;  %s559_s3 = sand.u32 7, %s4649_s4  ;;  %s551_s8 = scalar_lea.vmem [#allocation7], %s550_s25 }
  0x78   :  { %321 = vmatpush2.msra.mxu0 %v4305_v44  ;;  %v4338_v44 = vld [vmem:[#allocation11 + $0x1d8] sm:$0xff]  ;;  %s3657_s9 = sshll.u32 %s556_s30, 4  ;;  %s568_s0 = sshra.s32 %s4652_s27, 3 }
  0x79   :  { %322 = vmatprep.subr.mxu0 %v4311_v42  ;;  %6539 = vst [vmem:[#allocation65_spill] sm:$0xff] %v4338_v44  ;;  %v4344_v42 = vld [vmem:[#allocation11 + $0x1d0] sm:$0xff]  ;;  %455 = vmatprep.subr.mxu1 %v4338_v44  ;;  %s562_s10 = sadd.s32 %s3657_s9, %s559_s3  ;;  %s3658_s4 = sshll.u32 %s568_s0, 4 }
  0x7a   :  { %323 = vmatpush2.msra.mxu0 %v4317_v40  ;;  %6540 = vst [vmem:[#allocation66_spill] sm:$0xff] %v4344_v42  ;;  %v4350_v40 = vld [vmem:[#allocation11 + $0x1c8] sm:$0xff]  ;;  %456 = vmatpush2.msra.mxu1 %v4344_v42  ;;  %v93_v44 = vld [vmem:[#allocation8] sm:$0xff]  ;;  %s563_s15 = scalar_lea.vmem [#allocation7], %s562_s10  ;;  %s3497_s26 = sld [smem:[#allocation3 + $0x39]] }
  0x7b   :  { %324 = vmatprep.subr.mxu0 %v4323_v38  ;;  %v4356_v38 = vld [vmem:[#allocation11 + $0x1c0] sm:$0xff]  ;;  %457 = vmatprep.subr.mxu1 %v4350_v40  ;;  %v4374_v42 = vld [vmem:[#allocation11 + $0x1a8] sm:$0xff]  ;;  %s3500_s20 = sld [smem:[#allocation3 + $0x2]] }
  0x7c   :  { %325 = vmatpush2.msra.mxu0 %v4329_v36  ;;  %v4362_v36 = vld [vmem:[#allocation11 + $0x1b8] sm:$0xff]  ;;  %458 = vmatpush2.msra.mxu1 %v4356_v38  ;;  %s3503_s21 = sld [smem:[#allocation3 + $0xa]] }
  0x7d   :  { %326 = vmatprep.subr.mxu0 %v4335_v34  ;;  %v4368_v34 = vld [vmem:[#allocation11 + $0x1b0] sm:$0xff]  ;;  %459 = vmatprep.subr.mxu1 %v4362_v36  ;;  %s4988_s22 = sld [smem:[#allocation3 + $0x12]] }
  0x7e   :  { %327 = vmatpush2.msra.mxu0 %v4341_v32  ;;  %460 = vmatpush2.msra.mxu1 %v4368_v34  ;;  %s4991_s1 = sld [smem:[#allocation3 + $0x1a]] }
  0x7f   :  { %328 = vmatprep.subr.mxu0 %v4347_v30  ;;  %v4378_v30 = vld [vmem:[#allocation11 + $0x1a0] sm:$0xff]  ;;  %461 = vmatprep.subr.mxu1 %v4374_v42  ;;  %s4994_s23 = sld [smem:[#allocation3 + $0x22]] }
  0x80   :  { %329 = vmatpush2.msra.mxu0 %v4353_v28  ;;  %462 = vmatpush2.msra.mxu1 %v4378_v30  ;;  %s580_s28 = sshra.s32 %s3497_s26, 3  ;;  %s583_s29 = sand.u32 7, %s3497_s26 }
  0x81   :  { %330 = vmatprep.subr.mxu0 %v4359_v27  ;;  %s885_s25 = sshra.s32 %s3500_s20, 3  ;;  %s5000_s30 = sld [smem:[#allocation3 + $0x32]] }
  0x82   :  { %331 = vmatpush2.msra.mxu0 %v4365_v26  ;;  %s888_s3 = sand.u32 7, %s3500_s20  ;;  %s897_s0 = sshra.s32 %s3503_s21, 3 }
  0x83   :  { %333 = vmatmul.mubr.f32.vlgmr.msra.gmra.mxu0 %v93_v44  ;;  %657 = vmatprep.subr.mxu0 %v3966_v0  ;;  %v4469_v44 = vld [vmem:[#allocation11 + $0x158] sm:$0xff]  ;;  %s900_s10 = sand.u32 7, %s3503_s21  ;;  %s912_s26 = sand.u32 7, %s4988_s22 }
  0x84   :  { %658 = vmatpush1.msra.mxu0 %v3968_v1 }
  0x85   :  { %659 = vmatprep.subr.mxu0 %v3970_v2  ;;  %s936_s21 = sand.u32 7, %s4994_s23 }
  0x86   :  { %660 = vmatpush1.msra.mxu0 %v3973_v3 }
  0x87   :  { %661 = vmatprep.subr.mxu0 %v3976_v4 }
  0x88   :  { %662 = vmatpush1.msra.mxu0 %v3979_v5 }
  0x89   :  { %663 = vmatprep.subr.mxu0 %v3982_v6 }
  0x8a   :  { %664 = vmatpush1.msra.mxu0 %v3987_v7 }
  0x8b   :  { %665 = vmatprep.subr.mxu0 %v3992_v8 }
  0x8c   :  { %666 = vmatpush1.msra.mxu0 %v3995_v9 }
  0x8d   :  { %667 = vmatprep.subr.mxu0 %v3998_v10 }
  0x8e   :  { %668 = vmatpush1.msra.mxu0 %v4001_v11 }
  0x8f   :  { %669 = vmatprep.subr.mxu0 %v4004_v12 }
  0x90   :  { %670 = vmatpush1.msra.mxu0 %v4007_v13 }
  0x91   :  { %671 = vmatprep.subr.mxu0 %v4010_v14 }
  0x92   :  { %672 = vmatpush1.msra.mxu0 %v4016_v15 }
  0x93   :  { %673 = vmatprep.subr.mxu0 %v4022_v16 }
  0x94   :  { %674 = vmatpush1.msra.mxu0 %v4027_v17 }
  0x95   :  { %675 = vmatprep.subr.mxu0 %v4031_v18 }
  0x96   :  { %676 = vmatpush1.msra.mxu0 %v4035_v19 }
  0x97   :  { %677 = vmatprep.subr.mxu0 %v4040_v20 }
  0x98   :  { %678 = vmatpush1.msra.mxu0 %v4045_v21 }
  0x99   :  { %679 = vmatprep.subr.mxu0 %v4050_v22 }
  0x9a   :  { %680 = vmatpush1.msra.mxu0 %v4056_v23  ;;  %v6542_v23 = vld [vmem:[#allocation54_spill] sm:$0xff] }
  0x9b   :  { %681 = vmatprep.subr.mxu0 %v4058_v24  ;;  %v6543_v24 = vld [vmem:[#allocation56_spill] sm:$0xff] }
  0x9c   :  { %682 = vmatpush1.msra.mxu0 %v4071_v29  ;;  %v6544_v29 = vld [vmem:[#allocation58_spill] sm:$0xff] }
  0x9d   :  { %683 = vmatprep.subr.mxu0 %v4080_v31  ;;  %v6545_v31 = vld [vmem:[#allocation60_spill] sm:$0xff] }
  0x9e   :  { %684 = vmatpush1.msra.mxu0 %v4088_v33  ;;  %v6546_v33 = vld [vmem:[#allocation62_spill] sm:$0xff] }
  0x9f   :  { %685 = vmatprep.subr.mxu0 %v4097_v35  ;;  %v6547_v35 = vld [vmem:[#allocation64_spill] sm:$0xff] }
  0xa0   :  { %686 = vmatpush1.msra.mxu0 %v4105_v37  ;;  %v6548_v37 = vld [vmem:[#allocation67_spill] sm:$0xff] }
  0xa1   :  { %687 = vmatprep.subr.mxu0 %v4114_v39  ;;  %v4445_v39 = vld [vmem:[#allocation11 + $0x198] sm:$0xff] }
  0xa2   :  { %688 = vmatpush1.msra.mxu0 %v4121_v41  ;;  %463 = vmatprep.subr.mxu1 %v4445_v39  ;;  %v4449_v41 = vld [vmem:[#allocation11 + $0x190] sm:$0xff] }
  0xa3   :  { %689 = vmatprep.subr.mxu0 %v4128_v43  ;;  %464 = vmatpush2.msra.mxu1 %v4449_v41  ;;  %v4453_v43 = vld [vmem:[#allocation11 + $0x188] sm:$0xff] }
  0xa4   :  { %690 = vmatpush2.msra.mxu0 %v4135_v46  ;;  %465 = vmatprep.subr.mxu1 %v4453_v43  ;;  %v4475_v46 = vld [vmem:[#allocation11 + $0x148] sm:$0xff] }
  0xa5   :  { %691 = vmatprep.subr.mxu0 %v4151_v48  ;;  %v4481_v48 = vld [vmem:[#allocation11 + $0x138] sm:$0xff] }
  0xa6   :  { %692 = vmatpush2.msra.mxu0 %v4164_v50  ;;  %v4484_v50 = vld [vmem:[#allocation11 + $0x130] sm:$0xff] }
  0xa7   :  { %693 = vmatprep.subr.mxu0 %v4166_v51  ;;  %v4487_v51 = vld [vmem:[#allocation11 + $0x128] sm:$0xff] }
  0xa8   :  { %694 = vmatpush2.msra.mxu0 %v4176_v53  ;;  %v4490_v53 = vld [vmem:[#allocation11 + $0x120] sm:$0xff] }
  0xa9   :  { %695 = vmatprep.subr.mxu0 %v4178_v54  ;;  %v4493_v54 = vld [vmem:[#allocation11 + $0x118] sm:$0xff] }
  0xaa   :  { %696 = vmatpush2.msra.mxu0 %v4189_v57  ;;  %v4499_v57 = vld [vmem:[#allocation11 + $0x108] sm:$0xff] }
  0xab   :  { %697 = vmatprep.subr.mxu0 %v4199_v61  ;;  %v202_v61 = vld [vmem:[#allocation2] sm:$0xff] }
  0xac   :  { %698 = vmatpush2.msra.mxu0 %v4206_v25  ;;  %v203_v25 = vld [vmem:[#allocation2 + $0x8] sm:$0xff] }
  0xad   :  { %699 = vmatprep.subr.mxu0 %v4232_v49 }
  0xae   :  { %700 = vmatpush2.msra.mxu0 %v4243_v63 }
  0xaf   :  { %701 = vmatprep.subr.mxu0 %v4251_v60  ;;  %v6549_v60 = vld [vmem:[#allocation22_spill] sm:$0xff] }
  0xb0   :  { %702 = vmatpush2.msra.mxu0 %v4257_v52 }
  0xb1   :  { %703 = vmatprep.subr.mxu0 %v4263_v56  ;;  %v4496_v56 = vld [vmem:[#allocation11 + $0x110] sm:$0xff] }
  0xb2   :  { %704 = vmatpush2.msra.mxu0 %v4269_v45  ;;  %v4472_v45 = vld [vmem:[#allocation11 + $0x150] sm:$0xff] }
  0xb3   :  { %705 = vmatprep.subr.mxu0 %v4275_v47  ;;  %v4478_v47 = vld [vmem:[#allocation11 + $0x140] sm:$0xff] }
  0xb4   :  { %706 = vmatpush2.msra.mxu0 %v4281_v59  ;;  %v4502_v59 = vld [vmem:[#allocation11 + $0x100] sm:$0xff] }
  0xb5   :  { %707 = vmatprep.subr.mxu0 %v4287_v58 }
  0xb6   :  { %708 = vmatpush2.msra.mxu0 %v4293_v62 }
  0xb7   :  { %709 = vmatprep.subr.mxu0 %v4299_v55 }
  0xb8   :  { %710 = vmatpush2.msra.mxu0 %v6542_v23  ;;  %v6550_v23 = vld [vmem:[#allocation23_spill] sm:$0xff] }
  0xb9   :  { %711 = vmatprep.subr.mxu0 %v6543_v24  ;;  %v6551_v24 = vld [vmem:[#allocation24_spill] sm:$0xff] }
  0xba   :  { %712 = vmatpush2.msra.mxu0 %v6544_v29  ;;  %v6552_v29 = vld [vmem:[#allocation25_spill] sm:$0xff] }
  0xbb   :  { %713 = vmatprep.subr.mxu0 %v6545_v31  ;;  %v6553_v31 = vld [vmem:[#allocation26_spill] sm:$0xff] }
  0xbc   :  { %714 = vmatpush2.msra.mxu0 %v6546_v33  ;;  %v6554_v33 = vld [vmem:[#allocation27_spill] sm:$0xff] }
  0xbd   :  { %715 = vmatprep.subr.mxu0 %v6547_v35  ;;  %v6555_v35 = vld [vmem:[#allocation28_spill] sm:$0xff] }
  0xbe   :  { %716 = vmatpush2.msra.mxu0 %v4341_v32  ;;  %v4456_v32 = vld [vmem:[#allocation11 + $0x180] sm:$0xff] }
  0xbf   :  { %717 = vmatprep.subr.mxu0 %v6548_v37  ;;  %466 = vmatpush2.msra.mxu1 %v4456_v32  ;;  %v6570_v37 = vld [vmem:[#allocation44_spill] sm:$0xff] }
  0xc0   :  { %718 = vmatpush2.msra.mxu0 %v4353_v28  ;;  %v4465_v28 = vld [vmem:[#allocation11 + $0x168] sm:$0xff] }
  0xc1   :  { %719 = vmatprep.subr.mxu0 %v4359_v27  ;;  %v4459_v27 = vld [vmem:[#allocation11 + $0x178] sm:$0xff] }
  0xc2   :  { %720 = vmatpush2.msra.mxu0 %v4365_v26  ;;  %467 = vmatprep.subr.mxu1 %v4459_v27  ;;  %v4462_v26 = vld [vmem:[#allocation11 + $0x170] sm:$0xff] }
  0xc3   :  { %1046 = vmatprep.subr.mxu0 %v3966_v0  ;;  %468 = vmatpush2.msra.mxu1 %v4462_v26  ;;  %v4467_v0 = vld [vmem:[#allocation11 + $0x160] sm:$0xff] }
  0xc4   :  { %469 = vmatprep.subr.mxu1 %v4465_v28 }
  0xc5   :  { %470 = vmatpush2.msra.mxu1 %v4467_v0 }
  0xc6   :  { %471 = vmatprep.subr.mxu1 %v4469_v44 }
  0xc7   :  { %472 = vmatpush2.msra.mxu1 %v4472_v45 }
  0xc8   :  { %473 = vmatprep.subr.mxu1 %v4475_v46 }
  0xc9   :  { %474 = vmatpush2.msra.mxu1 %v4478_v47 }
  0xca   :  { %475 = vmatprep.subr.mxu1 %v4481_v48 }
  0xcb   :  { %476 = vmatpush2.msra.mxu1 %v4484_v50 }
  0xcc   :  { %477 = vmatprep.subr.mxu1 %v4487_v51 }
  0xcd   :  { %478 = vmatpush2.msra.mxu1 %v4490_v53 }
  0xce   :  { %479 = vmatprep.subr.mxu1 %v4493_v54 }
  0xcf   :  { %480 = vmatpush2.msra.mxu1 %v4496_v56 }
  0xd0   :  { %481 = vmatprep.subr.mxu1 %v4499_v57 }
  0xd1   :  { %482 = vmatpush2.msra.mxu1 %v4502_v59 }
  0xd2   :  { %808 = vmatprep.subr.mxu1 %v6549_v60  ;;  %v6572_v60 = vld [vmem:[#allocation46_spill] sm:$0xff] }
 0x143   :  { %v334_v62 = vpop.f32.mrf.mxu0 }
 0x144   :  { %v339_v49 = vadd.f32 %v334_v62, %v202_v61  ;;  %v4564_v61 = vld [vmem:[#allocation10 + $0x20] sm:$0xff]  ;;  %v4568_v62 = vld [vmem:[#allocation10 + $0x18] sm:$0xff] }
 0x145   :  { %v336_v63 = vpop.f32.mrf.mxu0 }
 0x146   :  { %v340_v58 = vadd.f32 %v336_v63, %v203_v25  ;;  %v4572_v25 = vld [vmem:[#allocation10 + $0x10] sm:$0xff]  ;;  %v4576_v63 = vld [vmem:[#allocation10 + $0x8] sm:$0xff] }
 0x148   :  { %3717 = vtanh.f32 %v340_v58  ;;  %v6577_v58 = vld [vmem:[#allocation51_spill] sm:$0xff] }
 0x149   :  { %3719 = vtanh.f32 %v339_v49  ;;  %v6576_v49 = vld [vmem:[#allocation50_spill] sm:$0xff] }
 0x155   :  { %v3718_v52 = vpop.eup %3717 }
 0x156   :  { %v3720_v55 = vpop.eup %3719  ;;  %483 = vmatprep.mubr.f32.mxu1 %v3718_v52  ;;  %721 = vmatprep.mubr.f32.mxu0 %v3718_v52  ;;  %v4580_v52 = vld [vmem:[#allocation10] sm:$0xff] }
 0x157   :  { %484 = vmatmul.mubr.f32.vlgmr.msra.gmra.mxu1 %v3720_v55  ;;  %722 = vmatmul.mubr.f32.vlgmr.msra.gmra.mxu0 %v3720_v55  ;;  %v6578_v55 = vld [vmem:[#allocation52_spill] sm:$0xff] }
 0x158   :  { %809 = vmatpush1.msra.mxu1 %v6550_v23  ;;  %1047 = vmatpush1.msra.mxu0 %v3968_v1  ;;  %v6556_v1 = vld [vmem:[#allocation29_spill] sm:$0xff]  ;;  %v4584_v23 = vld [vmem:[#allocation10 + $0x1f8] sm:$0xff] }
 0x159   :  { %810 = vmatprep.subr.mxu1 %v6551_v24  ;;  %1048 = vmatprep.subr.mxu0 %v3970_v2  ;;  %v6557_v2 = vld [vmem:[#allocation30_spill] sm:$0xff]  ;;  %v6579_v24 = vld [vmem:[#allocation53_spill] sm:$0xff] }
 0x15a   :  { %811 = vmatpush1.msra.mxu1 %v6552_v29  ;;  %1049 = vmatpush1.msra.mxu0 %v3973_v3  ;;  %v6558_v3 = vld [vmem:[#allocation31_spill] sm:$0xff]  ;;  %v4588_v29 = vld [vmem:[#allocation10 + $0x1f0] sm:$0xff] }
 0x15b   :  { %812 = vmatprep.subr.mxu1 %v6553_v31  ;;  %1050 = vmatprep.subr.mxu0 %v3976_v4  ;;  %v6559_v4 = vld [vmem:[#allocation32_spill] sm:$0xff]  ;;  %v6580_v31 = vld [vmem:[#allocation55_spill] sm:$0xff] }
 0x15c   :  { %813 = vmatpush1.msra.mxu1 %v6554_v33  ;;  %1051 = vmatpush1.msra.mxu0 %v3979_v5  ;;  %v6560_v5 = vld [vmem:[#allocation33_spill] sm:$0xff] }
 0x15d   :  { %814 = vmatprep.subr.mxu1 %v6555_v35  ;;  %1052 = vmatprep.subr.mxu0 %v3982_v6  ;;  %v6561_v6 = vld [vmem:[#allocation34_spill] sm:$0xff]  ;;  %v4592_v33 = vld [vmem:[#allocation10 + $0x1e8] sm:$0xff] }
 0x15e   :  { %815 = vmatpush1.msra.mxu1 %v6556_v1  ;;  %1053 = vmatpush1.msra.mxu0 %v3987_v7  ;;  %v6562_v7 = vld [vmem:[#allocation35_spill] sm:$0xff]  ;;  %v6581_v35 = vld [vmem:[#allocation57_spill] sm:$0xff]  ;;  %v4596_v1 = vld [vmem:[#allocation10 + $0x1e0] sm:$0xff] }
 0x15f   :  { %816 = vmatprep.subr.mxu1 %v6557_v2  ;;  %1054 = vmatprep.subr.mxu0 %v3992_v8  ;;  %v6563_v8 = vld [vmem:[#allocation36_spill] sm:$0xff]  ;;  %v6582_v2 = vld [vmem:[#allocation59_spill] sm:$0xff] }
 0x160   :  { %817 = vmatpush1.msra.mxu1 %v6558_v3  ;;  %1055 = vmatpush1.msra.mxu0 %v3995_v9  ;;  %v6564_v9 = vld [vmem:[#allocation38_spill] sm:$0xff]  ;;  %v4600_v3 = vld [vmem:[#allocation10 + $0x1d8] sm:$0xff] }
 0x161   :  { %818 = vmatprep.subr.mxu1 %v6559_v4  ;;  %1056 = vmatprep.subr.mxu0 %v3998_v10  ;;  %v6565_v10 = vld [vmem:[#allocation39_spill] sm:$0xff]  ;;  %v6583_v4 = vld [vmem:[#allocation61_spill] sm:$0xff] }
 0x162   :  { %819 = vmatpush1.msra.mxu1 %v6560_v5  ;;  %1057 = vmatpush1.msra.mxu0 %v4001_v11  ;;  %v6566_v11 = vld [vmem:[#allocation40_spill] sm:$0xff]  ;;  %v4604_v5 = vld [vmem:[#allocation10 + $0x1d0] sm:$0xff] }
 0x163   :  { %820 = vmatprep.subr.mxu1 %v6561_v6  ;;  %1058 = vmatprep.subr.mxu0 %v4004_v12  ;;  %v6567_v12 = vld [vmem:[#allocation41_spill] sm:$0xff]  ;;  %v6584_v6 = vld [vmem:[#allocation63_spill] sm:$0xff] }
 0x164   :  { %821 = vmatpush1.msra.mxu1 %v6562_v7  ;;  %1059 = vmatpush1.msra.mxu0 %v4007_v13  ;;  %v6568_v13 = vld [vmem:[#allocation42_spill] sm:$0xff]  ;;  %v4608_v7 = vld [vmem:[#allocation10 + $0x1c8] sm:$0xff] }
 0x165   :  { %822 = vmatprep.subr.mxu1 %v6563_v8  ;;  %1060 = vmatprep.subr.mxu0 %v4010_v14  ;;  %v6569_v14 = vld [vmem:[#allocation43_spill] sm:$0xff]  ;;  %v6585_v8 = vld [vmem:[#allocation65_spill] sm:$0xff] }
 0x166   :  { %823 = vmatpush1.msra.mxu1 %v6564_v9  ;;  %1061 = vmatpush1.msra.mxu0 %v4016_v15  ;;  %v4548_v15 = vld [vmem:[#allocation10 + $0x40] sm:$0xff] }
 0x167   :  { %824 = vmatprep.subr.mxu1 %v6565_v10  ;;  %1062 = vmatprep.subr.mxu0 %v4022_v16  ;;  %v4552_v16 = vld [vmem:[#allocation10 + $0x38] sm:$0xff]  ;;  %v4612_v9 = vld [vmem:[#allocation10 + $0x1c0] sm:$0xff]  ;;  %v6586_v10 = vld [vmem:[#allocation66_spill] sm:$0xff] }
 0x168   :  { %825 = vmatpush1.msra.mxu1 %v6566_v11  ;;  %1063 = vmatpush1.msra.mxu0 %v4027_v17  ;;  %v6571_v17 = vld [vmem:[#allocation45_spill] sm:$0xff]  ;;  %v4616_v11 = vld [vmem:[#allocation10 + $0x1b8] sm:$0xff] }
 0x169   :  { %826 = vmatprep.subr.mxu1 %v6567_v12  ;;  %1064 = vmatprep.subr.mxu0 %v4031_v18  ;;  %v4556_v18 = vld [vmem:[#allocation10 + $0x30] sm:$0xff] }
 0x16a   :  { %827 = vmatpush1.msra.mxu1 %v6568_v13  ;;  %1065 = vmatpush1.msra.mxu0 %v4035_v19  ;;  %v4560_v19 = vld [vmem:[#allocation10 + $0x28] sm:$0xff]  ;;  %v4620_v12 = vld [vmem:[#allocation10 + $0x1b0] sm:$0xff] }
 0x16b   :  { %828 = vmatprep.subr.mxu1 %v6569_v14  ;;  %1066 = vmatprep.subr.mxu0 %v4040_v20  ;;  %v6573_v20 = vld [vmem:[#allocation47_spill] sm:$0xff]  ;;  %v4624_v13 = vld [vmem:[#allocation10 + $0x1a8] sm:$0xff]  ;;  %v4628_v14 = vld [vmem:[#allocation10 + $0x1a0] sm:$0xff] }
 0x16c   :  { %829 = vmatpush1.msra.mxu1 %v6570_v37  ;;  %1067 = vmatpush1.msra.mxu0 %v4045_v21  ;;  %v6574_v21 = vld [vmem:[#allocation48_spill] sm:$0xff] }
 0x16d   :  { %830 = vmatprep.subr.mxu1 %v6571_v17  ;;  %1068 = vmatprep.subr.mxu0 %v4050_v22  ;;  %v6575_v22 = vld [vmem:[#allocation49_spill] sm:$0xff] }
 0x16e   :  { %831 = vmatpush1.msra.mxu1 %v6572_v60  ;;  %1069 = vmatpush1.msra.mxu0 %v4548_v15  ;;  %v4742_v17 = vld [vmem:[#allocation10 + $0x108] sm:$0xff]  ;;  %v4749_v60 = vld [vmem:[#allocation10 + $0x100] sm:$0xff] }
 0x16f   :  { %832 = vmatprep.subr.mxu1 %v6573_v20  ;;  %1070 = vmatprep.subr.mxu0 %v4552_v16  ;;  %v4752_v20 = vld [vmem:[#allocation11 + $0xf8] sm:$0xff] }
 0x170   :  { %833 = vmatpush1.msra.mxu1 %v6574_v21  ;;  %1071 = vmatpush1.msra.mxu0 %v4556_v18  ;;  %v4754_v21 = vld [vmem:[#allocation10 + $0xf8] sm:$0xff] }
 0x171   :  { %834 = vmatprep.subr.mxu1 %v6575_v22  ;;  %1072 = vmatprep.subr.mxu0 %v4560_v19  ;;  %v6588_v22 = vlaneseq }
 0x172   :  { %835 = vmatpush1.msra.mxu1 %v6576_v49  ;;  %1073 = vmatpush1.msra.mxu0 %v4564_v61 }
 0x173   :  { %836 = vmatprep.subr.mxu1 %v6577_v58  ;;  %1074 = vmatprep.subr.mxu0 %v4568_v62  ;;  %v410_v49 = vshrl.u32 %v6588_v22, 7 }
 0x174   :  { %837 = vmatpush1.msra.mxu1 %v6578_v55  ;;  %1075 = vmatpush1.msra.mxu0 %v4572_v25  ;;  %v407_v55 = vld [vmem:[%s6348_s5] sm:$0x3] }
 0x175   :  { %838 = vmatprep.subr.mxu1 %v6579_v24  ;;  %1076 = vmatprep.subr.mxu0 %v4576_v63  ;;  %v4759_v58 = vsub.s32 0, %v410_v49  ;;  %v4764_v24 = vsub.s32 1, %v410_v49  ;;  %v4772_v49 = vld [vmem:[#allocation11 + $0xe8] sm:$0xff] }
 0x176   :  { %839 = vmatpush1.msra.mxu1 %v6580_v31  ;;  %1077 = vmatpush1.msra.mxu0 %v4580_v52 }
 0x177   :  { %840 = vmatprep.subr.mxu1 %v6581_v35  ;;  %1078 = vmatprep.subr.mxu0 %v4584_v23  ;;  %v412_v31 = vrot.slane %v407_v55, %v4759_v58 }
 0x178   :  { %841 = vmatpush2.msra.mxu1 %v6582_v2  ;;  %1079 = vmatpush2.msra.mxu0 %v4588_v29  ;;  %v416_v2 = vrot.slane %v407_v55, %v4764_v24  ;;  %v4774_v55 = vld [vmem:[#allocation10 + $0xe8] sm:$0xff] }
 0x179   :  { %842 = vmatprep.subr.mxu1 %v6583_v4  ;;  %1080 = vmatprep.subr.mxu0 %v4592_v33 }
 0x17a   :  { %843 = vmatpush2.msra.mxu1 %v6584_v6  ;;  %1081 = vmatpush2.msra.mxu0 %v4596_v1 }
 0x17b   :  { %844 = vmatprep.subr.mxu1 %v6585_v8  ;;  %1082 = vmatprep.subr.mxu0 %v4600_v3 }
 0x17c   :  { %845 = vmatpush2.msra.mxu1 %v6586_v10  ;;  %1083 = vmatpush2.msra.mxu0 %v4604_v5 }
 0x17d   :  { %846 = vmatprep.subr.mxu1 %v4350_v40  ;;  %1084 = vmatprep.subr.mxu0 %v4608_v7  ;;  %v4677_v40 = vld [vmem:[#allocation10 + $0x198] sm:$0xff] }
 0x17e   :  { %847 = vmatpush2.msra.mxu1 %v4356_v38  ;;  %1085 = vmatpush2.msra.mxu0 %v4612_v9  ;;  %v528_v38 = vld [vmem:[%s527_s12] ss:$8 sm:$0x3]  ;;  %s933_s12 = sshra.s32 %s4994_s23, 3 }
 0x17f   :  { %848 = vmatprep.subr.mxu1 %v4362_v36  ;;  %1086 = vmatprep.subr.mxu0 %v4616_v11  ;;  %v516_v36 = vld [vmem:[%s515_s17] ss:$8 sm:$0x3]  ;;  %529 = vst.msk [vmem:[#allocation2 + $0x2] ss:$8 sm:$0x3] %vm4184_vm0, %v528_v38 }
 0x180   :  { %849 = vmatpush2.msra.mxu1 %v4368_v34  ;;  %1087 = vmatpush2.msra.mxu0 %v4620_v12  ;;  %517 = vst.msk [vmem:[#allocation2 + $0x1] ss:$8 sm:$0x3] %vm4184_vm0, %v516_v36  ;;  %s3659_s17 = sshll.u32 %s580_s28, 4 }
 0x181   :  { %850 = vmatprep.subr.mxu1 %v4374_v42  ;;  %1088 = vmatprep.subr.mxu0 %v4624_v13  ;;  %v540_v42 = vld [vmem:[%s539_s24] ss:$8 sm:$0x3]  ;;  %s586_s18 = sadd.s32 %s3659_s17, %s583_s29  ;;  %s4997_s24 = sld [smem:[#allocation3 + $0x2a]] }
 0x182   :  { %851 = vmatpush2.msra.mxu1 %v4378_v30  ;;  %1089 = vmatpush2.msra.mxu0 %v4628_v14  ;;  %v504_v30 = vld [vmem:[%s503_s14] ss:$8 sm:$0x3]  ;;  %541 = vst.msk [vmem:[#allocation2 + $0x3] ss:$8 sm:$0x3] %vm4184_vm0, %v540_v42 }
 0x183   :  { %852 = vmatprep.subr.mxu1 %v4445_v39  ;;  %505 = vst.msk [vmem:[#allocation2] ss:$8 sm:$0x3] %vm4184_vm0, %v504_v30  ;;  %1090 = vmatprep.subr.mxu0 %v4677_v40  ;;  %v4682_v39 = vld [vmem:[#allocation10 + $0x190] sm:$0xff]  ;;  %s571_s14 = sand.u32 7, %s4652_s27  ;;  %s587_s11 = scalar_lea.vmem [#allocation7], %s586_s18 }
 0x184   :  { %853 = vmatpush2.msra.mxu1 %v4449_v41  ;;  %1091 = vmatpush2.msra.mxu0 %v4682_v39  ;;  %v4688_v41 = vld [vmem:[#allocation10 + $0x188] sm:$0xff]  ;;  %s574_s16 = sadd.s32 %s3658_s4, %s571_s14  ;;  %s3661_s4 = sshll.u32 %s897_s0, 4 }
 0x185   :  { %854 = vmatprep.subr.mxu1 %v4453_v43  ;;  %v552_v43 = vld [vmem:[%s551_s8] ss:$8 sm:$0x3]  ;;  %1092 = vmatprep.subr.mxu0 %v4688_v41  ;;  %s575_s27 = scalar_lea.vmem [#allocation7], %s574_s16  ;;  %s3660_s8 = sshll.u32 %s885_s25, 4 }
 0x186   :  { %855 = vmatpush2.msra.mxu1 %v4456_v32  ;;  %v4692_v32 = vld [vmem:[#allocation10 + $0x180] sm:$0xff]  ;;  %553 = vst.msk [vmem:[#allocation2 + $0x4] ss:$8 sm:$0x3] %vm4184_vm0, %v552_v43  ;;  %s891_s9 = sadd.s32 %s3660_s8, %s888_s3  ;;  %s903_s16 = sadd.s32 %s3661_s4, %s900_s10 }
 0x187   :  { %856 = vmatprep.subr.mxu1 %v4459_v27  ;;  %1093 = vmatpush2.msra.mxu0 %v4692_v32  ;;  %v4698_v27 = vld [vmem:[#allocation10 + $0x178] sm:$0xff]  ;;  %v588_v37 = vld [vmem:[%s587_s11] ss:$8 sm:$0x3]  ;;  %s892_s14 = scalar_lea.vmem [#allocation7], %s891_s9  ;;  %s904_s28 = scalar_lea.vmem [#allocation7], %s903_s16 }
 0x188   :  { %857 = vmatpush2.msra.mxu1 %v4462_v26  ;;  %1094 = vmatprep.subr.mxu0 %v4698_v27  ;;  %v4701_v26 = vld [vmem:[#allocation10 + $0x170] sm:$0xff]  ;;  %589 = vst.msk [vmem:[#allocation2 + $0x7] ss:$8 sm:$0x3] %vm4184_vm0, %v588_v37  ;;  %s921_s17 = sshra.s32 %s4991_s1, 3  ;;  %s924_s18 = sand.u32 7, %s4991_s1 }
 0x189   :  { %858 = vmatprep.subr.mxu1 %v4465_v28  ;;  %v564_v28 = vld [vmem:[%s563_s15] ss:$8 sm:$0x3]  ;;  %1095 = vmatpush2.msra.mxu0 %v4701_v26  ;;  %v4770_v37 = vld [vmem:[#allocation10 + $0xf0] sm:$0xff]  ;;  %s909_s15 = sshra.s32 %s4988_s22, 3  ;;  %s3663_s19 = sshll.u32 %s921_s17, 4 }
 0x18a   :  { %859 = vmatpush2.msra.mxu1 %v4467_v0  ;;  %v4704_v0 = vld [vmem:[#allocation10 + $0x168] sm:$0xff]  ;;  %565 = vst.msk [vmem:[#allocation2 + $0x5] ss:$8 sm:$0x3] %vm4184_vm0, %v564_v28  ;;  %s927_s20 = sadd.s32 %s3663_s19, %s924_s18  ;;  %s3664_s22 = sshll.u32 %s933_s12, 4 }
 0x18b   :  { %860 = vmatprep.subr.mxu1 %v4469_v44  ;;  %1096 = vmatprep.subr.mxu0 %v4704_v0  ;;  %v4709_v44 = vld [vmem:[#allocation10 + $0x160] sm:$0xff]  ;;  %s928_s1 = scalar_lea.vmem [#allocation7], %s927_s20  ;;  %s939_s25 = sadd.s32 %s3664_s22, %s936_s21 }
 0x18c   :  { %861 = vmatpush2.msra.mxu1 %v4472_v45  ;;  %v4711_v45 = vld [vmem:[#allocation10 + $0x158] sm:$0xff]  ;;  %1097 = vmatpush2.msra.mxu0 %v4709_v44  ;;  %s945_s3 = sshra.s32 %s4997_s24, 3  ;;  %s948_s23 = sand.u32 7, %s4997_s24 }
 0x18d   :  { %862 = vmatprep.subr.mxu1 %v4475_v46  ;;  %v4713_v46 = vld [vmem:[#allocation10 + $0x150] sm:$0xff]  ;;  %1098 = vmatprep.subr.mxu0 %v4711_v45  ;;  %s940_s8 = scalar_lea.vmem [#allocation7], %s939_s25  ;;  %s3665_s9 = sshll.u32 %s945_s3, 4 }
 0x18e   :  { %863 = vmatpush2.msra.mxu1 %v4478_v47  ;;  %v576_v47 = vld [vmem:[%s575_s27] ss:$8 sm:$0x3]  ;;  %1099 = vmatpush2.msra.mxu0 %v4713_v46  ;;  %s3662_s27 = sshll.u32 %s909_s15, 4  ;;  %s957_s0 = sshra.s32 %s5000_s30, 3 }
 0x18f   :  { %864 = vmatprep.subr.mxu1 %v4481_v48  ;;  %v4716_v48 = vld [vmem:[#allocation10 + $0x148] sm:$0xff]  ;;  %577 = vst.msk [vmem:[#allocation2 + $0x6] ss:$8 sm:$0x3] %vm4184_vm0, %v576_v47  ;;  %v4768_v47 = vld [vmem:[#allocation11 + $0xf0] sm:$0xff]  ;;  %s915_s29 = sadd.s32 %s3662_s27, %s912_s26  ;;  %s951_s10 = sadd.s32 %s3665_s9, %s948_s23 }
 0x190   :  { %865 = vmatpush2.msra.mxu1 %v4484_v50  ;;  %v4721_v50 = vld [vmem:[#allocation10 + $0x140] sm:$0xff]  ;;  %1100 = vmatprep.subr.mxu0 %v4716_v48  ;;  %s916_s11 = scalar_lea.vmem [#allocation7], %s915_s29  ;;  %s3666_s24 = sshll.u32 %s957_s0, 4 }
 0x191   :  { %866 = vmatprep.subr.mxu1 %v4487_v51  ;;  %v4724_v51 = vld [vmem:[#allocation10 + $0x138] sm:$0xff]  ;;  %1101 = vmatpush2.msra.mxu0 %v4721_v50  ;;  %s952_s4 = scalar_lea.vmem [#allocation7], %s951_s10  ;;  %s3521_s16 = sld [smem:[#allocation3 + $0x3a]] }
 0x192   :  { %867 = vmatpush2.msra.mxu1 %v4490_v53  ;;  %v4727_v53 = vld [vmem:[#allocation10 + $0x130] sm:$0xff]  ;;  %1102 = vmatprep.subr.mxu0 %v4724_v51  ;;  %s3524_s19 = sld [smem:[#allocation3 + $0x3]] }
 0x193   :  { %868 = vmatprep.subr.mxu1 %v4493_v54  ;;  %v4730_v54 = vld [vmem:[#allocation10 + $0x128] sm:$0xff]  ;;  %1103 = vmatpush2.msra.mxu0 %v4727_v53  ;;  %s3527_s12 = sld [smem:[#allocation3 + $0xb]] }
 0x194   :  { %869 = vmatpush2.msra.mxu1 %v4496_v56  ;;  %v4733_v56 = vld [vmem:[#allocation10 + $0x120] sm:$0xff]  ;;  %1104 = vmatprep.subr.mxu0 %v4730_v54  ;;  %s5239_s20 = sld [smem:[#allocation3 + $0x13]] }
 0x195   :  { %870 = vmatprep.subr.mxu1 %v4499_v57  ;;  %v4736_v57 = vld [vmem:[#allocation10 + $0x118] sm:$0xff]  ;;  %1105 = vmatpush2.msra.mxu0 %v4733_v56  ;;  %s5242_s21 = sld [smem:[#allocation3 + $0x1b]] }
 0x196   :  { %871 = vmatpush2.msra.mxu1 %v4502_v59  ;;  %v4739_v59 = vld [vmem:[#allocation10 + $0x110] sm:$0xff]  ;;  %1106 = vmatprep.subr.mxu0 %v4736_v57  ;;  %v591_v35 = vld [vmem:[#allocation2] sm:$0xff]  ;;  %v592_v8 = vld [vmem:[#allocation2 + $0x8] sm:$0xff]  ;;  %s5245_s22 = sld [smem:[#allocation3 + $0x23]] }
 0x197   :  { %1107 = vmatpush2.msra.mxu0 %v4739_v59  ;;  %1197 = vmatprep.subr.mxu1 %v4752_v20  ;;  %s969_s26 = sshra.s32 %s3521_s16, 3  ;;  %s972_s27 = sand.u32 7, %s3521_s16 }
 0x198   :  { %1108 = vmatprep.subr.mxu0 %v4742_v17  ;;  %s1274_s25 = sshra.s32 %s3524_s19, 3  ;;  %s5251_s3 = sld [smem:[#allocation3 + $0x33]] }
 0x199   :  { %1109 = vmatpush2.msra.mxu0 %v4749_v60  ;;  %s1277_s23 = sand.u32 7, %s3524_s19  ;;  %s1286_s0 = sshra.s32 %s3527_s12, 3 }
 0x19a   :  { %1435 = vmatprep.subr.mxu0 %v4754_v21  ;;  %s1289_s10 = sand.u32 7, %s3527_s12  ;;  %s1301_s16 = sand.u32 7, %s5239_s20 }
 0x19c   :  { %s1325_s12 = sand.u32 7, %s5245_s22 }
 0x217   :  { %v485_v4 = vpop.f32.mrf.mxu1  ;;  %v723_v6 = vpop.f32.mrf.mxu0 }
 0x218   :  { %v486_v10 = vadd.f32 %v485_v4, %v412_v31  ;;  %v728_v30 = vadd.f32 %v723_v6, %v591_v35  ;;  %v4776_v31 = vld [vmem:[#allocation11 + $0xe0] sm:$0xff]  ;;  %v4784_v4 = vld [vmem:[#allocation10 + $0xd8] sm:$0xff]  ;;  %v4788_v6 = vld [vmem:[#allocation11 + $0xd0] sm:$0xff] }
 0x219   :  { %v487_v36 = vpop.f32.mrf.mxu1  ;;  %v725_v38 = vpop.f32.mrf.mxu0  ;;  %v4778_v35 = vld [vmem:[#allocation10 + $0xe0] sm:$0xff]  ;;  %6589 = vst [vmem:[#allocation54_spill] sm:$0xff] %v4784_v4  ;;  %6590 = vst [vmem:[#allocation56_spill] sm:$0xff] %v4788_v6 }
 0x21a   :  { %493 = vst [vmem:[#allocation13] sm:$0xff] %v486_v10  ;;  %v488_v42 = vadd.f32 %v487_v36, %v416_v2  ;;  %v729_v43 = vadd.f32 %v725_v38, %v592_v8  ;;  %v4782_v2 = vld [vmem:[#allocation11 + $0xd8] sm:$0xff]  ;;  %v4790_v8 = vld [vmem:[#allocation10 + $0xd0] sm:$0xff]  ;;  %v4794_v10 = vld [vmem:[#allocation11 + $0xc8] sm:$0xff] }
 0x21b   :  { %6591 = vst [vmem:[#allocation58_spill] sm:$0xff] %v4790_v8  ;;  %6592 = vst [vmem:[#allocation60_spill] sm:$0xff] %v4794_v10  ;;  %v4800_v36 = vld [vmem:[#allocation11 + $0xc0] sm:$0xff] }
 0x21c   :  { %494 = vst [vmem:[#allocation13 + $0x8] sm:$0xff] %v488_v42  ;;  %3721 = vtanh.f32 %v729_v43  ;;  %6594 = vst [vmem:[#allocation64_spill] sm:$0xff] %v4800_v36  ;;  %v4802_v38 = vld [vmem:[#allocation10 + $0xc0] sm:$0xff]  ;;  %v4806_v42 = vld [vmem:[#allocation11 + $0xb8] sm:$0xff] }
 0x21d   :  { %3723 = vtanh.f32 %v728_v30  ;;  %v4796_v30 = vld [vmem:[#allocation10 + $0xc8] sm:$0xff]  ;;  %6595 = vst [vmem:[#allocation67_spill] sm:$0xff] %v4802_v38  ;;  %6596 = vst [vmem:[#allocation22_spill] sm:$0xff] %v4806_v42  ;;  %v4808_v43 = vld [vmem:[#allocation10 + $0xb8] sm:$0xff] }
 0x21e   :  { %6593 = vst [vmem:[#allocation62_spill] sm:$0xff] %v4796_v30  ;;  %6597 = vst [vmem:[#allocation23_spill] sm:$0xff] %v4808_v43 }
 0x229   :  { %v3722_v28 = vpop.eup %3721 }
 0x22a   :  { %v3724_v22 = vpop.eup %3723  ;;  %872 = vmatprep.mubr.f32.mxu1 %v3722_v28  ;;  %1110 = vmatprep.mubr.f32.mxu0 %v3722_v28  ;;  %v4812_v28 = vld [vmem:[#allocation11 + $0xb0] sm:$0xff] }
 0x22b   :  { %873 = vmatmul.mubr.f32.vlgmr.msra.gmra.mxu1 %v3724_v22  ;;  %1111 = vmatmul.mubr.f32.vlgmr.msra.gmra.mxu0 %v3724_v22  ;;  %6598 = vst [vmem:[#allocation24_spill] sm:$0xff] %v4812_v28  ;;  %v4814_v22 = vld [vmem:[#allocation10 + $0xb0] sm:$0xff] }
 0x22c   :  { %1198 = vmatpush1.msra.mxu1 %v4768_v47  ;;  %1436 = vmatpush1.msra.mxu0 %v4770_v37  ;;  %6599 = vst [vmem:[#allocation25_spill] sm:$0xff] %v4814_v22 }
 0x22d   :  { %1199 = vmatprep.subr.mxu1 %v4772_v49  ;;  %1437 = vmatprep.subr.mxu0 %v4774_v55 }
 0x22e   :  { %1200 = vmatpush1.msra.mxu1 %v4776_v31  ;;  %1438 = vmatpush1.msra.mxu0 %v4778_v35 }
 0x22f   :  { %1201 = vmatprep.subr.mxu1 %v4782_v2  ;;  %1439 = vmatprep.subr.mxu0 %v4784_v4  ;;  %v4818_v4 = vld [vmem:[#allocation11 + $0xa8] sm:$0xff] }
 0x230   :  { %1202 = vmatpush1.msra.mxu1 %v4788_v6  ;;  %1440 = vmatpush1.msra.mxu0 %v4790_v8  ;;  %6600 = vst [vmem:[#allocation26_spill] sm:$0xff] %v4818_v4  ;;  %v4820_v6 = vld [vmem:[#allocation10 + $0xa8] sm:$0xff]  ;;  %v4824_v8 = vld [vmem:[#allocation11 + $0xa0] sm:$0xff] }
 0x231   :  { %1203 = vmatprep.subr.mxu1 %v4794_v10  ;;  %1441 = vmatprep.subr.mxu0 %v4796_v30  ;;  %6601 = vst [vmem:[#allocation27_spill] sm:$0xff] %v4820_v6  ;;  %6602 = vst [vmem:[#allocation28_spill] sm:$0xff] %v4824_v8  ;;  %v4826_v10 = vld [vmem:[#allocation10 + $0xa0] sm:$0xff]  ;;  %v4830_v30 = vld [vmem:[#allocation11 + $0x98] sm:$0xff] }
 0x232   :  { %1204 = vmatpush1.msra.mxu1 %v4800_v36  ;;  %1442 = vmatpush1.msra.mxu0 %v4802_v38  ;;  %6603 = vst [vmem:[#allocation29_spill] sm:$0xff] %v4826_v10  ;;  %6604 = vst [vmem:[#allocation30_spill] sm:$0xff] %v4830_v30  ;;  %v4832_v36 = vld [vmem:[#allocation10 + $0x98] sm:$0xff]  ;;  %v4836_v38 = vld [vmem:[#allocation11 + $0x90] sm:$0xff] }
 0x233   :  { %1205 = vmatprep.subr.mxu1 %v4806_v42  ;;  %1443 = vmatprep.subr.mxu0 %v4808_v43  ;;  %6605 = vst [vmem:[#allocation31_spill] sm:$0xff] %v4832_v36  ;;  %6606 = vst [vmem:[#allocation32_spill] sm:$0xff] %v4836_v38  ;;  %v4838_v42 = vld [vmem:[#allocation10 + $0x90] sm:$0xff]  ;;  %v4842_v43 = vld [vmem:[#allocation11 + $0x88] sm:$0xff] }
 0x234   :  { %1206 = vmatpush1.msra.mxu1 %v4812_v28  ;;  %1444 = vmatpush1.msra.mxu0 %v4814_v22  ;;  %6607 = vst [vmem:[#allocation33_spill] sm:$0xff] %v4838_v42  ;;  %6608 = vst [vmem:[#allocation34_spill] sm:$0xff] %v4842_v43  ;;  %v4844_v28 = vld [vmem:[#allocation10 + $0x88] sm:$0xff]  ;;  %v4848_v22 = vld [vmem:[#allocation11 + $0x80] sm:$0xff] }
 0x235   :  { %1207 = vmatprep.subr.mxu1 %v4818_v4  ;;  %1445 = vmatprep.subr.mxu0 %v4820_v6  ;;  %6609 = vst [vmem:[#allocation35_spill] sm:$0xff] %v4844_v28  ;;  %6610 = vst [vmem:[#allocation36_spill] sm:$0xff] %v4848_v22  ;;  %v4850_v4 = vld [vmem:[#allocation10 + $0x80] sm:$0xff]  ;;  %v4854_v6 = vld [vmem:[#allocation11 + $0x78] sm:$0xff] }
 0x236   :  { %1208 = vmatpush1.msra.mxu1 %v4824_v8  ;;  %1446 = vmatpush1.msra.mxu0 %v4826_v10  ;;  %6611 = vst [vmem:[#allocation38_spill] sm:$0xff] %v4850_v4  ;;  %6612 = vst [vmem:[#allocation39_spill] sm:$0xff] %v4854_v6  ;;  %v4856_v8 = vld [vmem:[#allocation10 + $0x78] sm:$0xff]  ;;  %v4860_v10 = vld [vmem:[#allocation11 + $0x70] sm:$0xff] }
 0x237   :  { %1209 = vmatprep.subr.mxu1 %v4830_v30  ;;  %1447 = vmatprep.subr.mxu0 %v4832_v36  ;;  %6613 = vst [vmem:[#allocation40_spill] sm:$0xff] %v4856_v8  ;;  %6614 = vst [vmem:[#allocation41_spill] sm:$0xff] %v4860_v10  ;;  %v4862_v30 = vld [vmem:[#allocation10 + $0x70] sm:$0xff]  ;;  %v4866_v36 = vld [vmem:[#allocation11 + $0x68] sm:$0xff] }
 0x238   :  { %1210 = vmatpush1.msra.mxu1 %v4836_v38  ;;  %1448 = vmatpush1.msra.mxu0 %v4838_v42  ;;  %6615 = vst [vmem:[#allocation42_spill] sm:$0xff] %v4862_v30  ;;  %v4868_v38 = vld [vmem:[#allocation10 + $0x68] sm:$0xff]  ;;  %v4872_v42 = vld [vmem:[#allocation11 + $0x60] sm:$0xff] }
 0x239   :  { %1211 = vmatprep.subr.mxu1 %v4842_v43  ;;  %1449 = vmatprep.subr.mxu0 %v4844_v28  ;;  %6616 = vst [vmem:[#allocation43_spill] sm:$0xff] %v4868_v38  ;;  %v4874_v43 = vld [vmem:[#allocation10 + $0x60] sm:$0xff]  ;;  %v4878_v28 = vld [vmem:[#allocation11 + $0x58] sm:$0xff] }
 0x23a   :  { %1212 = vmatpush1.msra.mxu1 %v4848_v22  ;;  %1450 = vmatpush1.msra.mxu0 %v4850_v4  ;;  %6617 = vst [vmem:[#allocation44_spill] sm:$0xff] %v4874_v43  ;;  %6618 = vst [vmem:[#allocation45_spill] sm:$0xff] %v4878_v28  ;;  %v4880_v22 = vld [vmem:[#allocation10 + $0x58] sm:$0xff]  ;;  %v4884_v4 = vld [vmem:[#allocation11 + $0x50] sm:$0xff] }
 0x23b   :  { %1213 = vmatprep.subr.mxu1 %v4854_v6  ;;  %1451 = vmatprep.subr.mxu0 %v4856_v8  ;;  %6619 = vst [vmem:[#allocation46_spill] sm:$0xff] %v4884_v4  ;;  %v4886_v6 = vld [vmem:[#allocation10 + $0x50] sm:$0xff]  ;;  %v4890_v8 = vld [vmem:[#allocation11 + $0x48] sm:$0xff] }
 0x23c   :  { %1214 = vmatpush1.msra.mxu1 %v4860_v10  ;;  %1452 = vmatpush1.msra.mxu0 %v4862_v30  ;;  %6620 = vst [vmem:[#allocation47_spill] sm:$0xff] %v4890_v8  ;;  %v4892_v10 = vld [vmem:[#allocation10 + $0x48] sm:$0xff]  ;;  %v4896_v30 = vld [vmem:[#allocation11 + $0x40] sm:$0xff] }
 0x23d   :  { %1215 = vmatprep.subr.mxu1 %v4866_v36  ;;  %1453 = vmatprep.subr.mxu0 %v4868_v38  ;;  %6621 = vst [vmem:[#allocation48_spill] sm:$0xff] %v4896_v30  ;;  %v4900_v38 = vld [vmem:[#allocation11 + $0x38] sm:$0xff] }
 0x23e   :  { %1216 = vmatpush1.msra.mxu1 %v4872_v42  ;;  %1454 = vmatpush1.msra.mxu0 %v4874_v43  ;;  %v4904_v43 = vld [vmem:[#allocation11 + $0x30] sm:$0xff] }
 0x23f   :  { %1217 = vmatprep.subr.mxu1 %v4878_v28  ;;  %1455 = vmatprep.subr.mxu0 %v4880_v22  ;;  %v4908_v28 = vld [vmem:[#allocation11 + $0x28] sm:$0xff] }
 0x240   :  { %1218 = vmatpush1.msra.mxu1 %v4884_v4  ;;  %1456 = vmatpush1.msra.mxu0 %v4886_v6  ;;  %v4912_v4 = vld [vmem:[#allocation11 + $0x20] sm:$0xff] }
 0x241   :  { %1219 = vmatprep.subr.mxu1 %v4890_v8  ;;  %1457 = vmatprep.subr.mxu0 %v4892_v10  ;;  %v4916_v8 = vld [vmem:[#allocation11 + $0x18] sm:$0xff] }
 0x242   :  { %1220 = vmatpush1.msra.mxu1 %v4896_v30  ;;  %1458 = vmatpush1.msra.mxu0 %v4548_v15  ;;  %v4920_v30 = vld [vmem:[#allocation11 + $0x10] sm:$0xff]  ;;  %v4924_v15 = vld [vmem:[#allocation11 + $0x8] sm:$0xff] }
 0x243   :  { %1221 = vmatprep.subr.mxu1 %v4900_v38  ;;  %1459 = vmatprep.subr.mxu0 %v4552_v16  ;;  %v4928_v16 = vld [vmem:[#allocation11] sm:$0xff] }
 0x244   :  { %1222 = vmatpush1.msra.mxu1 %v4904_v43  ;;  %1460 = vmatpush1.msra.mxu0 %v4556_v18  ;;  %v4932_v18 = vld [vmem:[#allocation11 + $0x1f8] sm:$0xff] }
 0x245   :  { %1223 = vmatprep.subr.mxu1 %v4908_v28  ;;  %1461 = vmatprep.subr.mxu0 %v4560_v19  ;;  %v4936_v19 = vld [vmem:[#allocation11 + $0x1f0] sm:$0xff] }
 0x246   :  { %1224 = vmatpush1.msra.mxu1 %v4912_v4  ;;  %1462 = vmatpush1.msra.mxu0 %v4564_v61  ;;  %v4940_v61 = vld [vmem:[#allocation11 + $0x1e8] sm:$0xff] }
 0x247   :  { %1225 = vmatprep.subr.mxu1 %v4916_v8  ;;  %1463 = vmatprep.subr.mxu0 %v4568_v62  ;;  %v4944_v62 = vld [vmem:[#allocation11 + $0x1e0] sm:$0xff] }
 0x248   :  { %1226 = vmatpush1.msra.mxu1 %v4920_v30  ;;  %1464 = vmatpush1.msra.mxu0 %v4572_v25  ;;  %v4948_v25 = vld [vmem:[#allocation11 + $0x1d8] sm:$0xff] }
 0x249   :  { %1227 = vmatprep.subr.mxu1 %v4924_v15  ;;  %1465 = vmatprep.subr.mxu0 %v4576_v63  ;;  %v4952_v63 = vld [vmem:[#allocation11 + $0x1d0] sm:$0xff] }
 0x24a   :  { %1228 = vmatpush1.msra.mxu1 %v4928_v16  ;;  %1466 = vmatpush1.msra.mxu0 %v4580_v52  ;;  %v4956_v52 = vld [vmem:[#allocation11 + $0x1c8] sm:$0xff] }
 0x24b   :  { %1229 = vmatprep.subr.mxu1 %v4932_v18  ;;  %1467 = vmatprep.subr.mxu0 %v4584_v23  ;;  %v4960_v23 = vld [vmem:[#allocation11 + $0x1c0] sm:$0xff] }
 0x24c   :  { %1230 = vmatpush2.msra.mxu1 %v4936_v19  ;;  %1468 = vmatpush2.msra.mxu0 %v4588_v29  ;;  %v4964_v29 = vld [vmem:[#allocation11 + $0x1b8] sm:$0xff] }
 0x24d   :  { %1231 = vmatprep.subr.mxu1 %v4940_v61  ;;  %1469 = vmatprep.subr.mxu0 %v4592_v33  ;;  %v4968_v33 = vld [vmem:[#allocation11 + $0x1b0] sm:$0xff] }
 0x24e   :  { %1232 = vmatpush2.msra.mxu1 %v4944_v62  ;;  %1470 = vmatpush2.msra.mxu0 %v4596_v1  ;;  %v4972_v1 = vld [vmem:[#allocation11 + $0x1a8] sm:$0xff] }
 0x24f   :  { %1233 = vmatprep.subr.mxu1 %v4948_v25  ;;  %1471 = vmatprep.subr.mxu0 %v4600_v3  ;;  %v4976_v3 = vld [vmem:[#allocation11 + $0x1a0] sm:$0xff] }
 0x250   :  { %1234 = vmatpush2.msra.mxu1 %v4952_v63  ;;  %1472 = vmatpush2.msra.mxu0 %v4604_v5  ;;  %v893_v5 = vld [vmem:[%s892_s14] ss:$8 sm:$0x3]  ;;  %s960_s14 = sand.u32 7, %s5000_s30 }
 0x251   :  { %1235 = vmatprep.subr.mxu1 %v4956_v52  ;;  %1473 = vmatprep.subr.mxu0 %v4608_v7  ;;  %894 = vst.msk [vmem:[#allocation2] ss:$8 sm:$0x3] %vm4184_vm0, %v893_v5  ;;  %v905_v7 = vld [vmem:[%s904_s28] ss:$8 sm:$0x3]  ;;  %s963_s15 = sadd.s32 %s3666_s24, %s960_s14 }
 0x252   :  { %1236 = vmatpush2.msra.mxu1 %v4960_v23  ;;  %1474 = vmatpush2.msra.mxu0 %v4612_v9  ;;  %906 = vst.msk [vmem:[#allocation2 + $0x1] ss:$8 sm:$0x3] %vm4184_vm0, %v905_v7  ;;  %v917_v9 = vld [vmem:[%s916_s11] ss:$8 sm:$0x3] }
 0x253   :  { %1237 = vmatprep.subr.mxu1 %v4964_v29  ;;  %1475 = vmatprep.subr.mxu0 %v4616_v11  ;;  %918 = vst.msk [vmem:[#allocation2 + $0x2] ss:$8 sm:$0x3] %vm4184_vm0, %v917_v9  ;;  %v5025_v11 = vld [vmem:[#allocation11 + $0x198] sm:$0xff]  ;;  %s964_s30 = scalar_lea.vmem [#allocation7], %s963_s15  ;;  %s3667_s28 = sshll.u32 %s969_s26, 4 }
 0x254   :  { %1238 = vmatpush2.msra.mxu1 %v4968_v33  ;;  %1476 = vmatpush2.msra.mxu0 %v4620_v12  ;;  %v929_v12 = vld [vmem:[%s928_s1] ss:$8 sm:$0x3]  ;;  %s975_s29 = sadd.s32 %s3667_s28, %s972_s27  ;;  %s5248_s1 = sld [smem:[#allocation3 + $0x2b]] }
 0x255   :  { %1239 = vmatprep.subr.mxu1 %v4972_v1  ;;  %1477 = vmatprep.subr.mxu0 %v4624_v13  ;;  %v5030_v13 = vld [vmem:[#allocation11 + $0x190] sm:$0xff]  ;;  %930 = vst.msk [vmem:[#allocation2 + $0x3] ss:$8 sm:$0x3] %vm4184_vm0, %v929_v12  ;;  %s976_s17 = scalar_lea.vmem [#allocation7], %s975_s29  ;;  %s3669_s24 = sshll.u32 %s1286_s0, 4 }
 0x256   :  { %1240 = vmatpush2.msra.mxu1 %v4976_v3  ;;  %1478 = vmatpush2.msra.mxu0 %v4628_v14  ;;  %v5037_v14 = vld [vmem:[#allocation11 + $0x188] sm:$0xff]  ;;  %v796_v5 = vld [vmem:[%s6348_s5] sm:$0x3]  ;;  %s1292_s15 = sadd.s32 %s3669_s24, %s1289_s10  ;;  %s1310_s28 = sshra.s32 %s5242_s21, 3 }
 0x257   :  { %1479 = vmatprep.subr.mxu0 %v4677_v40  ;;  %1241 = vmatprep.subr.mxu1 %v5025_v11  ;;  %v941_v40 = vld [vmem:[%s940_s8] ss:$8 sm:$0x3]  ;;  %v801_v7 = vrot.slane %v796_v5, %v4759_v58  ;;  %v805_v12 = vrot.slane %v796_v5, %v4764_v24  ;;  %s3668_s8 = sshll.u32 %s1274_s25, 4  ;;  %s1293_s26 = scalar_lea.vmem [#allocation7], %s1292_s15 }
 0x258   :  { %1480 = vmatpush2.msra.mxu0 %v4682_v39  ;;  %1242 = vmatpush2.msra.mxu1 %v5030_v13  ;;  %v5041_v39 = vld [vmem:[#allocation11 + $0x180] sm:$0xff]  ;;  %942 = vst.msk [vmem:[#allocation2 + $0x4] ss:$8 sm:$0x3] %vm4184_vm0, %v941_v40  ;;  %s1280_s9 = sadd.s32 %s3668_s8, %s1277_s23  ;;  %s1313_s29 = sand.u32 7, %s5242_s21 }
 0x259   :  { %1481 = vmatprep.subr.mxu0 %v4688_v41  ;;  %1243 = vmatprep.subr.mxu1 %v5037_v14  ;;  %v5047_v41 = vld [vmem:[#allocation11 + $0x178] sm:$0xff]  ;;  %v6641_v5 = vld [vmem:[#allocation28_spill] sm:$0xff]  ;;  %s1281_s14 = scalar_lea.vmem [#allocation7], %s1280_s9  ;;  %s3671_s18 = sshll.u32 %s1310_s28, 4 }
 0x25a   :  { %1482 = vmatpush2.msra.mxu0 %v4692_v32  ;;  %1244 = vmatpush2.msra.mxu1 %v5041_v39  ;;  %v5050_v32 = vld [vmem:[#allocation11 + $0x170] sm:$0xff]  ;;  %s1322_s11 = sshra.s32 %s5245_s22, 3  ;;  %s1316_s19 = sadd.s32 %s3671_s18, %s1313_s29 }
 0x25b   :  { %1483 = vmatprep.subr.mxu0 %v4698_v27  ;;  %1245 = vmatprep.subr.mxu1 %v5047_v41  ;;  %v953_v27 = vld [vmem:[%s952_s4] ss:$8 sm:$0x3]  ;;  %s1298_s4 = sshra.s32 %s5239_s20, 3  ;;  %s3672_s20 = sshll.u32 %s1322_s11, 4 }
 0x25c   :  { %1484 = vmatpush2.msra.mxu0 %v4701_v26  ;;  %1246 = vmatpush2.msra.mxu1 %v5050_v32  ;;  %v5053_v26 = vld [vmem:[#allocation11 + $0x168] sm:$0xff]  ;;  %954 = vst.msk [vmem:[#allocation2 + $0x5] ss:$8 sm:$0x3] %vm4184_vm0, %v953_v27  ;;  %s1317_s21 = scalar_lea.vmem [#allocation7], %s1316_s19  ;;  %s1328_s25 = sadd.s32 %s3672_s20, %s1325_s12 }
 0x25d   :  { %1485 = vmatprep.subr.mxu0 %v4704_v0  ;;  %1247 = vmatprep.subr.mxu1 %v5053_v26  ;;  %v5058_v0 = vld [vmem:[#allocation11 + $0x160] sm:$0xff]  ;;  %s1334_s23 = sshra.s32 %s5248_s1, 3  ;;  %s1337_s22 = sand.u32 7, %s5248_s1 }
 0x25e   :  { %1486 = vmatpush2.msra.mxu0 %v4709_v44  ;;  %v5060_v44 = vld [vmem:[#allocation11 + $0x158] sm:$0xff]  ;;  %1248 = vmatpush2.msra.mxu1 %v5058_v0  ;;  %s1329_s8 = scalar_lea.vmem [#allocation7], %s1328_s25  ;;  %s3673_s9 = sshll.u32 %s1334_s23, 4 }
 0x25f   :  { %1487 = vmatprep.subr.mxu0 %v4711_v45  ;;  %v5062_v45 = vld [vmem:[#allocation11 + $0x150] sm:$0xff]  ;;  %1249 = vmatprep.subr.mxu1 %v5060_v44  ;;  %s1346_s0 = sshra.s32 %s5251_s3, 3  ;;  %s1340_s10 = sadd.s32 %s3673_s9, %s1337_s22 }
 0x260   :  { %1488 = vmatpush2.msra.mxu0 %v4713_v46  ;;  %v965_v46 = vld [vmem:[%s964_s30] ss:$8 sm:$0x3]  ;;  %1250 = vmatpush2.msra.mxu1 %v5062_v45  ;;  %s3670_s30 = sshll.u32 %s1298_s4, 4  ;;  %s3674_s1 = sshll.u32 %s1346_s0, 4 }
 0x261   :  { %1489 = vmatprep.subr.mxu0 %v4716_v48  ;;  %v5065_v48 = vld [vmem:[#allocation11 + $0x148] sm:$0xff]  ;;  %966 = vst.msk [vmem:[#allocation2 + $0x6] ss:$8 sm:$0x3] %vm4184_vm0, %v965_v46  ;;  %s1304_s27 = sadd.s32 %s3670_s30, %s1301_s16  ;;  %s1341_s24 = scalar_lea.vmem [#allocation7], %s1340_s10 }
 0x262   :  { %1490 = vmatpush2.msra.mxu0 %v4721_v50  ;;  %v5070_v50 = vld [vmem:[#allocation11 + $0x140] sm:$0xff]  ;;  %1251 = vmatprep.subr.mxu1 %v5065_v48  ;;  %s3545_s15 = sld [smem:[#allocation3 + $0x3b]] }
 0x263   :  { %1491 = vmatprep.subr.mxu0 %v4724_v51  ;;  %v5073_v51 = vld [vmem:[#allocation11 + $0x138] sm:$0xff]  ;;  %1252 = vmatpush2.msra.mxu1 %v5070_v50  ;;  %s3548_s18 = sld [smem:[#allocation3 + $0x4]] }
 0x264   :  { %1492 = vmatpush2.msra.mxu0 %v4727_v53  ;;  %v5076_v53 = vld [vmem:[#allocation11 + $0x130] sm:$0xff]  ;;  %1253 = vmatprep.subr.mxu1 %v5073_v51  ;;  %s3551_s11 = sld [smem:[#allocation3 + $0xc]] }
 0x265   :  { %1493 = vmatprep.subr.mxu0 %v4730_v54  ;;  %v5079_v54 = vld [vmem:[#allocation11 + $0x128] sm:$0xff]  ;;  %1254 = vmatpush2.msra.mxu1 %v5076_v53  ;;  %s5582_s19 = sld [smem:[#allocation3 + $0x14]] }
 0x266   :  { %1494 = vmatpush2.msra.mxu0 %v4733_v56  ;;  %6622 = vst [vmem:[#allocation49_spill] sm:$0xff] %v5079_v54  ;;  %v5082_v56 = vld [vmem:[#allocation11 + $0x120] sm:$0xff]  ;;  %1255 = vmatprep.subr.mxu1 %v5079_v54  ;;  %s5585_s12 = sld [smem:[#allocation3 + $0x1c]] }
 0x267   :  { %1495 = vmatprep.subr.mxu0 %v4736_v57  ;;  %6623 = vst [vmem:[#allocation50_spill] sm:$0xff] %v5082_v56  ;;  %v5085_v57 = vld [vmem:[#allocation11 + $0x118] sm:$0xff]  ;;  %1256 = vmatpush2.msra.mxu1 %v5082_v56  ;;  %s5588_s20 = sld [smem:[#allocation3 + $0x24]] }
 0x268   :  { %1496 = vmatpush2.msra.mxu0 %v4739_v59  ;;  %6624 = vst [vmem:[#allocation51_spill] sm:$0xff] %v5085_v57  ;;  %v5088_v59 = vld [vmem:[#allocation11 + $0x110] sm:$0xff]  ;;  %1257 = vmatprep.subr.mxu1 %v5085_v57  ;;  %s1358_s16 = sshra.s32 %s3545_s15, 3  ;;  %s1361_s30 = sand.u32 7, %s3545_s15 }
 0x269   :  { %1497 = vmatprep.subr.mxu0 %v4742_v17  ;;  %6625 = vst [vmem:[#allocation52_spill] sm:$0xff] %v5088_v59  ;;  %v977_v17 = vld [vmem:[%s976_s17] ss:$8 sm:$0x3]  ;;  %1258 = vmatpush2.msra.mxu1 %v5088_v59  ;;  %s1305_s17 = scalar_lea.vmem [#allocation7], %s1304_s27  ;;  %s1663_s25 = sshra.s32 %s3548_s18, 3 }
 0x26a   :  { %1498 = vmatpush2.msra.mxu0 %v4749_v60  ;;  %v5091_v60 = vld [vmem:[#allocation11 + $0x108] sm:$0xff]  ;;  %978 = vst.msk [vmem:[#allocation2 + $0x7] ss:$8 sm:$0x3] %vm4184_vm0, %v977_v17  ;;  %s5594_s23 = sld [smem:[#allocation3 + $0x34]]  ;;  %s1666_s22 = sand.u32 7, %s3548_s18 }
 0x26b   :  { %1824 = vmatprep.subr.mxu0 %v4754_v21  ;;  %6626 = vst [vmem:[#allocation53_spill] sm:$0xff] %v5091_v60  ;;  %v5096_v21 = vld [vmem:[#allocation11 + $0x100] sm:$0xff]  ;;  %1259 = vmatprep.subr.mxu1 %v5091_v60  ;;  %s1675_s0 = sshra.s32 %s3551_s11, 3  ;;  %s1678_s10 = sand.u32 7, %s3551_s11 }
 0x26c   :  { %6627 = vst [vmem:[#allocation55_spill] sm:$0xff] %v5096_v21  ;;  %1260 = vmatpush2.msra.mxu1 %v5096_v21  ;;  %s1690_s15 = sand.u32 7, %s5582_s19 }
 0x26d   :  { %1586 = vmatprep.subr.mxu1 %v4752_v20  ;;  %s1714_s11 = sand.u32 7, %s5588_s20 }
 0x271   :  { %v980_v9 = vld [vmem:[#allocation2] sm:$0xff]  ;;  %v981_v46 = vld [vmem:[#allocation2 + $0x8] sm:$0xff] }
 0x2eb   :  { %v874_v40 = vpop.f32.mrf.mxu1  ;;  %v1112_v27 = vpop.f32.mrf.mxu0 }
 0x2ec   :  { %v875_v17 = vadd.f32 %v874_v40, %v801_v7  ;;  %v1117_v59 = vadd.f32 %v1112_v27, %v980_v9  ;;  %v6642_v7 = vld [vmem:[#allocation29_spill] sm:$0xff]  ;;  %v6643_v9 = vld [vmem:[#allocation30_spill] sm:$0xff]  ;;  %v6645_v40 = vld [vmem:[#allocation32_spill] sm:$0xff] }
 0x2ed   :  { %v876_v57 = vpop.f32.mrf.mxu1  ;;  %v1114_v60 = vpop.f32.mrf.mxu0  ;;  %v6646_v27 = vld [vmem:[#allocation33_spill] sm:$0xff] }
 0x2ee   :  { %882 = vst [vmem:[#allocation13 + $0x10] sm:$0xff] %v875_v17  ;;  %v877_v21 = vadd.f32 %v876_v57, %v805_v12  ;;  %v1118_v56 = vadd.f32 %v1114_v60, %v981_v46  ;;  %v6629_v57 = vld [vmem:[#allocation56_spill] sm:$0xff]  ;;  %v6639_v60 = vld [vmem:[#allocation26_spill] sm:$0xff]  ;;  %v6644_v12 = vld [vmem:[#allocation31_spill] sm:$0xff] }
 0x2ef   :  { %v6647_v46 = vld [vmem:[#allocation34_spill] sm:$0xff]  ;;  %v6648_v17 = vld [vmem:[#allocation35_spill] sm:$0xff] }
 0x2f0   :  { %883 = vst [vmem:[#allocation13 + $0x18] sm:$0xff] %v877_v21  ;;  %3725 = vtanh.f32 %v1118_v56  ;;  %v6628_v56 = vld [vmem:[#allocation54_spill] sm:$0xff]  ;;  %v6640_v21 = vld [vmem:[#allocation27_spill] sm:$0xff] }
 0x2f1   :  { %3727 = vtanh.f32 %v1117_v59  ;;  %v6630_v59 = vld [vmem:[#allocation58_spill] sm:$0xff] }
 0x2fd   :  { %v3726_v20 = vpop.eup %3725 }
 0x2fe   :  { %v3728_v54 = vpop.eup %3727  ;;  %1261 = vmatprep.mubr.f32.mxu1 %v3726_v20  ;;  %1499 = vmatprep.mubr.f32.mxu0 %v3726_v20  ;;  %v6649_v20 = vld [vmem:[#allocation36_spill] sm:$0xff] }
 0x2ff   :  { %1262 = vmatmul.mubr.f32.vlgmr.msra.gmra.mxu1 %v3728_v54  ;;  %1500 = vmatmul.mubr.f32.vlgmr.msra.gmra.mxu0 %v3728_v54  ;;  %v6631_v54 = vld [vmem:[#allocation60_spill] sm:$0xff] }
 0x300   :  { %1587 = vmatpush1.msra.mxu1 %v4768_v47  ;;  %1825 = vmatpush1.msra.mxu0 %v4770_v37  ;;  %v6632_v47 = vld [vmem:[#allocation62_spill] sm:$0xff]  ;;  %v6633_v37 = vld [vmem:[#allocation64_spill] sm:$0xff] }
 0x301   :  { %1588 = vmatprep.subr.mxu1 %v4772_v49  ;;  %1826 = vmatprep.subr.mxu0 %v4774_v55  ;;  %v6634_v49 = vld [vmem:[#allocation67_spill] sm:$0xff]  ;;  %v6635_v55 = vld [vmem:[#allocation22_spill] sm:$0xff] }
 0x302   :  { %1589 = vmatpush1.msra.mxu1 %v4776_v31  ;;  %1827 = vmatpush1.msra.mxu0 %v4778_v35  ;;  %v6636_v31 = vld [vmem:[#allocation23_spill] sm:$0xff]  ;;  %v6637_v35 = vld [vmem:[#allocation24_spill] sm:$0xff] }
 0x303   :  { %1590 = vmatprep.subr.mxu1 %v4782_v2  ;;  %1828 = vmatprep.subr.mxu0 %v6628_v56  ;;  %v6638_v2 = vld [vmem:[#allocation25_spill] sm:$0xff]  ;;  %v6650_v56 = vld [vmem:[#allocation38_spill] sm:$0xff] }
 0x304   :  { %1591 = vmatpush1.msra.mxu1 %v6629_v57  ;;  %1829 = vmatpush1.msra.mxu0 %v6630_v59  ;;  %v6651_v57 = vld [vmem:[#allocation39_spill] sm:$0xff]  ;;  %v6652_v59 = vld [vmem:[#allocation40_spill] sm:$0xff] }
 0x305   :  { %1592 = vmatprep.subr.mxu1 %v6631_v54  ;;  %1830 = vmatprep.subr.mxu0 %v6632_v47  ;;  %v6653_v54 = vld [vmem:[#allocation41_spill] sm:$0xff]  ;;  %v6654_v47 = vld [vmem:[#allocation42_spill] sm:$0xff] }
 0x306   :  { %1593 = vmatpush1.msra.mxu1 %v6633_v37  ;;  %1831 = vmatpush1.msra.mxu0 %v6634_v49  ;;  %v6655_v37 = vld [vmem:[#allocation43_spill] sm:$0xff]  ;;  %v6656_v49 = vld [vmem:[#allocation44_spill] sm:$0xff] }
 0x307   :  { %1594 = vmatprep.subr.mxu1 %v6635_v55  ;;  %1832 = vmatprep.subr.mxu0 %v6636_v31  ;;  %v6657_v55 = vld [vmem:[#allocation45_spill] sm:$0xff]  ;;  %v5147_v31 = vld [vmem:[#allocation10 + $0x40] sm:$0xff] }
 0x308   :  { %1595 = vmatpush1.msra.mxu1 %v6637_v35  ;;  %1833 = vmatpush1.msra.mxu0 %v6638_v2  ;;  %v6658_v35 = vld [vmem:[#allocation46_spill] sm:$0xff]  ;;  %v5151_v2 = vld [vmem:[#allocation10 + $0x38] sm:$0xff] }
 0x309   :  { %1596 = vmatprep.subr.mxu1 %v6639_v60  ;;  %1834 = vmatprep.subr.mxu0 %v6640_v21  ;;  %v6659_v60 = vld [vmem:[#allocation47_spill] sm:$0xff]  ;;  %v5159_v21 = vld [vmem:[#allocation10 + $0x28] sm:$0xff] }
 0x30a   :  { %1597 = vmatpush1.msra.mxu1 %v6641_v5  ;;  %1835 = vmatpush1.msra.mxu0 %v6642_v7  ;;  %v5310_v5 = vld [vmem:[#allocation10 + $0x158] sm:$0xff]  ;;  %v5312_v7 = vld [vmem:[#allocation10 + $0x150] sm:$0xff] }
 0x30b   :  { %1598 = vmatprep.subr.mxu1 %v6643_v9  ;;  %1836 = vmatprep.subr.mxu0 %v6644_v12  ;;  %v5315_v12 = vld [vmem:[#allocation10 + $0x148] sm:$0xff] }
 0x30c   :  { %1599 = vmatpush1.msra.mxu1 %v6645_v40  ;;  %1837 = vmatpush1.msra.mxu0 %v6646_v27  ;;  %v5320_v40 = vld [vmem:[#allocation10 + $0x140] sm:$0xff]  ;;  %v5323_v27 = vld [vmem:[#allocation10 + $0x138] sm:$0xff] }
 0x30d   :  { %1600 = vmatprep.subr.mxu1 %v6647_v46  ;;  %1838 = vmatprep.subr.mxu0 %v6648_v17  ;;  %v5326_v46 = vld [vmem:[#allocation10 + $0x130] sm:$0xff]  ;;  %v5329_v17 = vld [vmem:[#allocation10 + $0x128] sm:$0xff] }
 0x30e   :  { %1601 = vmatpush1.msra.mxu1 %v6649_v20  ;;  %1839 = vmatpush1.msra.mxu0 %v6650_v56  ;;  %v5332_v20 = vld [vmem:[#allocation10 + $0x120] sm:$0xff]  ;;  %v5335_v56 = vld [vmem:[#allocation10 + $0x118] sm:$0xff] }
 0x30f   :  { %1602 = vmatprep.subr.mxu1 %v6651_v57  ;;  %1840 = vmatprep.subr.mxu0 %v6652_v59  ;;  %v5338_v57 = vld [vmem:[#allocation10 + $0x110] sm:$0xff] }
 0x310   :  { %1603 = vmatpush1.msra.mxu1 %v6653_v54  ;;  %1841 = vmatpush1.msra.mxu0 %v6654_v47  ;;  %v5341_v54 = vld [vmem:[#allocation10 + $0x108] sm:$0xff]  ;;  %v5348_v47 = vld [vmem:[#allocation10 + $0x100] sm:$0xff] }
 0x311   :  { %1604 = vmatprep.subr.mxu1 %v4866_v36  ;;  %1842 = vmatprep.subr.mxu0 %v6655_v37  ;;  %v5155_v36 = vld [vmem:[#allocation10 + $0x30] sm:$0xff]  ;;  %v5351_v37 = vld [vmem:[#allocation11 + $0xf8] sm:$0xff] }
 0x312   :  { %1605 = vmatpush1.msra.mxu1 %v4872_v42  ;;  %1843 = vmatpush1.msra.mxu0 %v6656_v49  ;;  %v6660_v42 = vld [vmem:[#allocation48_spill] sm:$0xff]  ;;  %v5353_v49 = vld [vmem:[#allocation10 + $0xf8] sm:$0xff] }
 0x313   :  { %1606 = vmatprep.subr.mxu1 %v6657_v55  ;;  %1844 = vmatprep.subr.mxu0 %v4880_v22  ;;  %v5163_v22 = vld [vmem:[#allocation10 + $0x20] sm:$0xff] }
 0x314   :  { %1607 = vmatpush1.msra.mxu1 %v6658_v35  ;;  %1845 = vmatpush1.msra.mxu0 %v4886_v6  ;;  %v5167_v6 = vld [vmem:[#allocation10 + $0x18] sm:$0xff]  ;;  %v1185_v55 = vld [vmem:[%s6348_s5] sm:$0x3] }
 0x315   :  { %1608 = vmatprep.subr.mxu1 %v6659_v60  ;;  %1846 = vmatprep.subr.mxu0 %v4892_v10  ;;  %v5171_v10 = vld [vmem:[#allocation10 + $0x10] sm:$0xff]  ;;  %v1190_v35 = vrot.slane %v1185_v55, %v4759_v58 }
 0x316   :  { %1609 = vmatpush1.msra.mxu1 %v6660_v42  ;;  %1847 = vmatpush1.msra.mxu0 %v5147_v31  ;;  %v1194_v42 = vrot.slane %v1185_v55, %v4764_v24  ;;  %v5368_v55 = vld [vmem:[#allocation10 + $0xe8] sm:$0xff] }
 0x317   :  { %1610 = vmatprep.subr.mxu1 %v4900_v38  ;;  %1848 = vmatprep.subr.mxu0 %v5151_v2  ;;  %v5175_v38 = vld [vmem:[#allocation10 + $0x8] sm:$0xff] }
 0x318   :  { %1611 = vmatpush1.msra.mxu1 %v4904_v43  ;;  %1849 = vmatpush1.msra.mxu0 %v5155_v36  ;;  %v5179_v43 = vld [vmem:[#allocation10] sm:$0xff] }
 0x319   :  { %1612 = vmatprep.subr.mxu1 %v4908_v28  ;;  %1850 = vmatprep.subr.mxu0 %v5159_v21  ;;  %v5183_v28 = vld [vmem:[#allocation10 + $0x1f8] sm:$0xff] }
 0x31a   :  { %1613 = vmatpush1.msra.mxu1 %v4912_v4  ;;  %1851 = vmatpush1.msra.mxu0 %v5163_v22  ;;  %v5187_v4 = vld [vmem:[#allocation10 + $0x1f0] sm:$0xff] }
 0x31b   :  { %1614 = vmatprep.subr.mxu1 %v4916_v8  ;;  %1852 = vmatprep.subr.mxu0 %v5167_v6  ;;  %v5191_v8 = vld [vmem:[#allocation10 + $0x1e8] sm:$0xff] }
 0x31c   :  { %1615 = vmatpush1.msra.mxu1 %v4920_v30  ;;  %1853 = vmatpush1.msra.mxu0 %v5171_v10  ;;  %v5195_v30 = vld [vmem:[#allocation10 + $0x1e0] sm:$0xff] }
 0x31d   :  { %1616 = vmatprep.subr.mxu1 %v4924_v15  ;;  %1854 = vmatprep.subr.mxu0 %v5175_v38  ;;  %v5199_v15 = vld [vmem:[#allocation10 + $0x1d8] sm:$0xff] }
 0x31e   :  { %1617 = vmatpush1.msra.mxu1 %v4928_v16  ;;  %1855 = vmatpush1.msra.mxu0 %v5179_v43  ;;  %v5203_v16 = vld [vmem:[#allocation10 + $0x1d0] sm:$0xff] }
 0x31f   :  { %1618 = vmatprep.subr.mxu1 %v4932_v18  ;;  %1856 = vmatprep.subr.mxu0 %v5183_v28  ;;  %v5207_v18 = vld [vmem:[#allocation10 + $0x1c8] sm:$0xff] }
 0x320   :  { %1619 = vmatpush2.msra.mxu1 %v4936_v19  ;;  %1857 = vmatpush2.msra.mxu0 %v5187_v4  ;;  %v5211_v19 = vld [vmem:[#allocation10 + $0x1c0] sm:$0xff] }
 0x321   :  { %1620 = vmatprep.subr.mxu1 %v4940_v61  ;;  %1858 = vmatprep.subr.mxu0 %v5191_v8  ;;  %v5215_v61 = vld [vmem:[#allocation10 + $0x1b8] sm:$0xff] }
 0x322   :  { %1621 = vmatpush2.msra.mxu1 %v4944_v62  ;;  %1859 = vmatpush2.msra.mxu0 %v5195_v30  ;;  %v5219_v62 = vld [vmem:[#allocation10 + $0x1b0] sm:$0xff] }
 0x323   :  { %1622 = vmatprep.subr.mxu1 %v4948_v25  ;;  %1860 = vmatprep.subr.mxu0 %v5199_v15  ;;  %v5223_v25 = vld [vmem:[#allocation10 + $0x1a8] sm:$0xff] }
 0x324   :  { %1623 = vmatpush2.msra.mxu1 %v4952_v63  ;;  %1861 = vmatpush2.msra.mxu0 %v5203_v16  ;;  %v5227_v63 = vld [vmem:[#allocation10 + $0x1a0] sm:$0xff] }
 0x325   :  { %1624 = vmatprep.subr.mxu1 %v4956_v52  ;;  %1862 = vmatprep.subr.mxu0 %v5207_v18  ;;  %v1282_v52 = vld [vmem:[%s1281_s14] ss:$8 sm:$0x3]  ;;  %s1349_s14 = sand.u32 7, %s5251_s3 }
 0x326   :  { %1625 = vmatpush2.msra.mxu1 %v4960_v23  ;;  %1863 = vmatpush2.msra.mxu0 %v5211_v19  ;;  %1283 = vst.msk [vmem:[#allocation2] ss:$8 sm:$0x3] %vm4184_vm0, %v1282_v52  ;;  %v6661_v23 = vld [vmem:[#allocation49_spill] sm:$0xff]  ;;  %s1352_s4 = sadd.s32 %s3674_s1, %s1349_s14  ;;  %s3677_s1 = sshll.u32 %s1675_s0, 4 }
 0x327   :  { %1626 = vmatprep.subr.mxu1 %v4964_v29  ;;  %1864 = vmatprep.subr.mxu0 %v5215_v61  ;;  %v1294_v29 = vld [vmem:[%s1293_s26] ss:$8 sm:$0x3]  ;;  %s1353_s3 = scalar_lea.vmem [#allocation7], %s1352_s4  ;;  %s3675_s26 = sshll.u32 %s1358_s16, 4 }
 0x328   :  { %1627 = vmatpush2.msra.mxu1 %v4968_v33  ;;  %1865 = vmatpush2.msra.mxu0 %v5219_v62  ;;  %v6662_v33 = vld [vmem:[#allocation50_spill] sm:$0xff]  ;;  %1295 = vst.msk [vmem:[#allocation2 + $0x1] ss:$8 sm:$0x3] %vm4184_vm0, %v1294_v29  ;;  %s1364_s27 = sadd.s32 %s3675_s26, %s1361_s30  ;;  %s1681_s4 = sadd.s32 %s3677_s1, %s1678_s10 }
 0x329   :  { %1628 = vmatprep.subr.mxu1 %v4972_v1  ;;  %1866 = vmatprep.subr.mxu0 %v5223_v25  ;;  %v6663_v1 = vld [vmem:[#allocation51_spill] sm:$0xff]  ;;  %v1354_v9 = vld [vmem:[%s1353_s3] ss:$8 sm:$0x3]  ;;  %s1365_s28 = scalar_lea.vmem [#allocation7], %s1364_s27  ;;  %s1682_s16 = scalar_lea.vmem [#allocation7], %s1681_s4 }
 0x32a   :  { %1629 = vmatpush2.msra.mxu1 %v4976_v3  ;;  %1867 = vmatpush2.msra.mxu0 %v5227_v63  ;;  %v1306_v3 = vld [vmem:[%s1305_s17] ss:$8 sm:$0x3]  ;;  %1355 = vst.msk [vmem:[#allocation2 + $0x6] ss:$8 sm:$0x3] %vm4184_vm0, %v1354_v9 }
 0x32b   :  { %1630 = vmatprep.subr.mxu1 %v5025_v11  ;;  %v6664_v11 = vld [vmem:[#allocation52_spill] sm:$0xff]  ;;  %1307 = vst.msk [vmem:[#allocation2 + $0x2] ss:$8 sm:$0x3] %vm4184_vm0, %v1306_v3  ;;  %s1699_s26 = sshra.s32 %s5585_s12, 3  ;;  %s1702_s27 = sand.u32 7, %s5585_s12 }
 0x32c   :  { %1631 = vmatpush2.msra.mxu1 %v5030_v13  ;;  %v6665_v13 = vld [vmem:[#allocation53_spill] sm:$0xff]  ;;  %s3679_s29 = sshll.u32 %s1699_s26, 4  ;;  %s1711_s17 = sshra.s32 %s5588_s20, 3 }
 0x32d   :  { %1632 = vmatprep.subr.mxu1 %v5037_v14  ;;  %v5276_v14 = vld [vmem:[#allocation10 + $0x198] sm:$0xff]  ;;  %v1366_v59 = vld [vmem:[%s1365_s28] ss:$8 sm:$0x3]  ;;  %s1705_s18 = sadd.s32 %s3679_s29, %s1702_s27  ;;  %s1735_s0 = sshra.s32 %s5594_s23, 3 }
 0x32e   :  { %1633 = vmatpush2.msra.mxu1 %v5041_v39  ;;  %v6666_v39 = vld [vmem:[#allocation55_spill] sm:$0xff]  ;;  %1868 = vmatprep.subr.mxu0 %v5276_v14  ;;  %1367 = vst.msk [vmem:[#allocation2 + $0x7] ss:$8 sm:$0x3] %vm4184_vm0, %v1366_v59  ;;  %v5366_v59 = vld [vmem:[#allocation11 + $0xe8] sm:$0xff]  ;;  %s1706_s12 = scalar_lea.vmem [#allocation7], %s1705_s18 }
 0x32f   :  { %1634 = vmatprep.subr.mxu1 %v5047_v41  ;;  %v1318_v41 = vld [vmem:[%s1317_s21] ss:$8 sm:$0x3]  ;;  %s5591_s21 = sld [smem:[#allocation3 + $0x2c]] }
 0x330   :  { %1635 = vmatpush2.msra.mxu1 %v5050_v32  ;;  %v5281_v32 = vld [vmem:[#allocation10 + $0x190] sm:$0xff]  ;;  %1319 = vst.msk [vmem:[#allocation2 + $0x3] ss:$8 sm:$0x3] %vm4184_vm0, %v1318_v41  ;;  %s3569_s4 = sld [smem:[#allocation3 + $0x3c]] }
 0x331   :  { %1636 = vmatprep.subr.mxu1 %v5053_v26  ;;  %1869 = vmatpush2.msra.mxu0 %v5281_v32  ;;  %v5287_v26 = vld [vmem:[#allocation10 + $0x188] sm:$0xff]  ;;  %s3572_s29 = sld [smem:[#allocation3 + $0x5]] }
 0x332   :  { %1637 = vmatpush2.msra.mxu1 %v5058_v0  ;;  %v1330_v0 = vld [vmem:[%s1329_s8] ss:$8 sm:$0x3]  ;;  %1870 = vmatprep.subr.mxu0 %v5287_v26  ;;  %s3676_s8 = sshll.u32 %s1663_s25, 4  ;;  %s5833_s18 = sld [smem:[#allocation3 + $0x15]] }
 0x333   :  { %1638 = vmatprep.subr.mxu1 %v5060_v44  ;;  %v5291_v44 = vld [vmem:[#allocation10 + $0x180] sm:$0xff]  ;;  %1331 = vst.msk [vmem:[#allocation2 + $0x4] ss:$8 sm:$0x3] %vm4184_vm0, %v1330_v0  ;;  %v5362_v0 = vld [vmem:[#allocation11 + $0xf0] sm:$0xff]  ;;  %s1669_s9 = sadd.s32 %s3676_s8, %s1666_s22 }
 0x334   :  { %1639 = vmatpush2.msra.mxu1 %v5062_v45  ;;  %1871 = vmatpush2.msra.mxu0 %v5291_v44  ;;  %v5297_v45 = vld [vmem:[#allocation10 + $0x178] sm:$0xff]  ;;  %s1670_s14 = scalar_lea.vmem [#allocation7], %s1669_s9 }
 0x335   :  { %1640 = vmatprep.subr.mxu1 %v5065_v48  ;;  %1872 = vmatprep.subr.mxu0 %v5297_v45  ;;  %v5300_v48 = vld [vmem:[#allocation10 + $0x170] sm:$0xff]  ;;  %s1723_s22 = sshra.s32 %s5591_s21, 3  ;;  %s1726_s20 = sand.u32 7, %s5591_s21 }
 0x336   :  { %1641 = vmatpush2.msra.mxu1 %v5070_v50  ;;  %v1342_v50 = vld [vmem:[%s1341_s24] ss:$8 sm:$0x3]  ;;  %1873 = vmatpush2.msra.mxu0 %v5300_v48  ;;  %s1687_s24 = sshra.s32 %s5582_s19, 3  ;;  %s3680_s19 = sshll.u32 %s1711_s17, 4 }
 0x337   :  { %1642 = vmatprep.subr.mxu1 %v5073_v51  ;;  %v5303_v51 = vld [vmem:[#allocation10 + $0x168] sm:$0xff]  ;;  %1343 = vst.msk [vmem:[#allocation2 + $0x5] ss:$8 sm:$0x3] %vm4184_vm0, %v1342_v50  ;;  %v5364_v50 = vld [vmem:[#allocation10 + $0xf0] sm:$0xff]  ;;  %s3678_s3 = sshll.u32 %s1687_s24, 4  ;;  %s1717_s25 = sadd.s32 %s3680_s19, %s1714_s11 }
 0x338   :  { %1643 = vmatpush2.msra.mxu1 %v5076_v53  ;;  %1874 = vmatprep.subr.mxu0 %v5303_v51  ;;  %v5308_v53 = vld [vmem:[#allocation10 + $0x160] sm:$0xff]  ;;  %s1693_s30 = sadd.s32 %s3678_s3, %s1690_s15  ;;  %s1718_s8 = scalar_lea.vmem [#allocation7], %s1717_s25 }
 0x339   :  { %1644 = vmatprep.subr.mxu1 %v6661_v23  ;;  %1875 = vmatpush2.msra.mxu0 %v5308_v53  ;;  %s1694_s28 = scalar_lea.vmem [#allocation7], %s1693_s30  ;;  %s3681_s9 = sshll.u32 %s1723_s22, 4 }
 0x33a   :  { %1645 = vmatpush2.msra.mxu1 %v6662_v33  ;;  %1876 = vmatprep.subr.mxu0 %v5310_v5  ;;  %s1729_s10 = sadd.s32 %s3681_s9, %s1726_s20  ;;  %s3682_s21 = sshll.u32 %s1735_s0, 4 }
 0x33b   :  { %1646 = vmatprep.subr.mxu1 %v6663_v1  ;;  %1877 = vmatpush2.msra.mxu0 %v5312_v7  ;;  %s1730_s1 = scalar_lea.vmem [#allocation7], %s1729_s10  ;;  %s1747_s15 = sshra.s32 %s3569_s4, 3 }
 0x33c   :  { %1647 = vmatpush2.msra.mxu1 %v6664_v11  ;;  %1878 = vmatprep.subr.mxu0 %v5315_v12  ;;  %s1750_s3 = sand.u32 7, %s3569_s4  ;;  %s3575_s17 = sld [smem:[#allocation3 + $0xd]] }
 0x33d   :  { %1648 = vmatprep.subr.mxu1 %v6665_v13  ;;  %1879 = vmatpush2.msra.mxu0 %v5320_v40  ;;  %s5836_s11 = sld [smem:[#allocation3 + $0x1d]]  ;;  %s2052_s25 = sshra.s32 %s3572_s29, 3 }
 0x33e   :  { %1649 = vmatpush2.msra.mxu1 %v6666_v39  ;;  %1880 = vmatprep.subr.mxu0 %v5323_v27  ;;  %v1369_v60 = vld [vmem:[#allocation2] sm:$0xff]  ;;  %v1370_v29 = vld [vmem:[#allocation2 + $0x8] sm:$0xff]  ;;  %s5839_s19 = sld [smem:[#allocation3 + $0x25]]  ;;  %s2055_s20 = sand.u32 7, %s3572_s29 }
 0x33f   :  { %1881 = vmatpush2.msra.mxu0 %v5326_v46  ;;  %1975 = vmatprep.subr.mxu1 %v5351_v37  ;;  %s5845_s22 = sld [smem:[#allocation3 + $0x35]]  ;;  %s2079_s4 = sand.u32 7, %s5833_s18 }
 0x340   :  { %1882 = vmatprep.subr.mxu0 %v5329_v17 }
 0x341   :  { %1883 = vmatpush2.msra.mxu0 %v5332_v20 }
 0x342   :  { %1884 = vmatprep.subr.mxu0 %v5335_v56  ;;  %s2064_s0 = sshra.s32 %s3575_s17, 3  ;;  %s2067_s10 = sand.u32 7, %s3575_s17 }
 0x343   :  { %1885 = vmatpush2.msra.mxu0 %v5338_v57 }
 0x344   :  { %1886 = vmatprep.subr.mxu0 %v5341_v54  ;;  %s2103_s17 = sand.u32 7, %s5839_s19 }
 0x345   :  { %1887 = vmatpush2.msra.mxu0 %v5348_v47 }
 0x346   :  { %2213 = vmatprep.subr.mxu0 %v5353_v49 }
 0x3bf   :  { %v1263_v52 = vpop.f32.mrf.mxu1  ;;  %v1501_v23 = vpop.f32.mrf.mxu0 }
 0x3c0   :  { %v1264_v33 = vadd.f32 %v1263_v52, %v1190_v35  ;;  %v1506_v1 = vadd.f32 %v1501_v23, %v1369_v60  ;;  %v5370_v35 = vld [vmem:[#allocation11 + $0xe0] sm:$0xff]  ;;  %v5378_v52 = vld [vmem:[#allocation10 + $0xd8] sm:$0xff]  ;;  %v5382_v23 = vld [vmem:[#allocation11 + $0xd0] sm:$0xff] }
 0x3c1   :  { %v1265_v3 = vpop.f32.mrf.mxu1  ;;  %v1503_v11 = vpop.f32.mrf.mxu0  ;;  %v5372_v60 = vld [vmem:[#allocation10 + $0xe0] sm:$0xff]  ;;  %6667 = vst [vmem:[#allocation57_spill] sm:$0xff] %v5378_v52  ;;  %6668 = vst [vmem:[#allocation59_spill] sm:$0xff] %v5382_v23 }
 0x3c2   :  { %1271 = vst [vmem:[#allocation13 + $0x20] sm:$0xff] %v1264_v33  ;;  %v1266_v13 = vadd.f32 %v1265_v3, %v1194_v42  ;;  %v1507_v39 = vadd.f32 %v1503_v11, %v1370_v29  ;;  %v5376_v42 = vld [vmem:[#allocation11 + $0xd8] sm:$0xff]  ;;  %v5384_v29 = vld [vmem:[#allocation10 + $0xd0] sm:$0xff]  ;;  %v5388_v33 = vld [vmem:[#allocation11 + $0xc8] sm:$0xff] }
 0x3c3   :  { %6669 = vst [vmem:[#allocation61_spill] sm:$0xff] %v5384_v29  ;;  %6670 = vst [vmem:[#allocation63_spill] sm:$0xff] %v5388_v33  ;;  %v5394_v3 = vld [vmem:[#allocation11 + $0xc0] sm:$0xff] }
 0x3c4   :  { %1272 = vst [vmem:[#allocation13 + $0x28] sm:$0xff] %v1266_v13  ;;  %3729 = vtanh.f32 %v1507_v39  ;;  %6672 = vst [vmem:[#allocation66_spill] sm:$0xff] %v5394_v3  ;;  %v5396_v11 = vld [vmem:[#allocation10 + $0xc0] sm:$0xff]  ;;  %v5400_v13 = vld [vmem:[#allocation11 + $0xb8] sm:$0xff] }
 0x3c5   :  { %3731 = vtanh.f32 %v1506_v1  ;;  %v5390_v1 = vld [vmem:[#allocation10 + $0xc8] sm:$0xff]  ;;  %6673 = vst [vmem:[#allocation37_spill] sm:$0xff] %v5396_v11  ;;  %6674 = vst [vmem:[#allocation54_spill] sm:$0xff] %v5400_v13  ;;  %v5402_v39 = vld [vmem:[#allocation10 + $0xb8] sm:$0xff] }
 0x3c6   :  { %6671 = vst [vmem:[#allocation65_spill] sm:$0xff] %v5390_v1  ;;  %6675 = vst [vmem:[#allocation56_spill] sm:$0xff] %v5402_v39 }
 0x3d1   :  { %v3730_v41 = vpop.eup %3729 }
 0x3d2   :  { %v3732_v9 = vpop.eup %3731  ;;  %1650 = vmatprep.mubr.f32.mxu1 %v3730_v41  ;;  %1888 = vmatprep.mubr.f32.mxu0 %v3730_v41  ;;  %v5406_v41 = vld [vmem:[#allocation11 + $0xb0] sm:$0xff] }
 0x3d3   :  { %1651 = vmatmul.mubr.f32.vlgmr.msra.gmra.mxu1 %v3732_v9  ;;  %1889 = vmatmul.mubr.f32.vlgmr.msra.gmra.mxu0 %v3732_v9  ;;  %6676 = vst [vmem:[#allocation58_spill] sm:$0xff] %v5406_v41  ;;  %v5408_v9 = vld [vmem:[#allocation10 + $0xb0] sm:$0xff] }
 0x3d4   :  { %1976 = vmatpush1.msra.mxu1 %v5362_v0  ;;  %2214 = vmatpush1.msra.mxu0 %v5364_v50  ;;  %6677 = vst [vmem:[#allocation60_spill] sm:$0xff] %v5408_v9 }
 0x3d5   :  { %1977 = vmatprep.subr.mxu1 %v5366_v59  ;;  %2215 = vmatprep.subr.mxu0 %v5368_v55 }
 0x3d6   :  { %1978 = vmatpush1.msra.mxu1 %v5370_v35  ;;  %2216 = vmatpush1.msra.mxu0 %v5372_v60 }
 0x3d7   :  { %1979 = vmatprep.subr.mxu1 %v5376_v42  ;;  %2217 = vmatprep.subr.mxu0 %v5378_v52  ;;  %v5412_v52 = vld [vmem:[#allocation11 + $0xa8] sm:$0xff] }
 0x3d8   :  { %1980 = vmatpush1.msra.mxu1 %v5382_v23  ;;  %2218 = vmatpush1.msra.mxu0 %v5384_v29  ;;  %6678 = vst [vmem:[#allocation62_spill] sm:$0xff] %v5412_v52  ;;  %v5414_v23 = vld [vmem:[#allocation10 + $0xa8] sm:$0xff]  ;;  %v5418_v29 = vld [vmem:[#allocation11 + $0xa0] sm:$0xff] }
 0x3d9   :  { %1981 = vmatprep.subr.mxu1 %v5388_v33  ;;  %2219 = vmatprep.subr.mxu0 %v5390_v1  ;;  %6679 = vst [vmem:[#allocation64_spill] sm:$0xff] %v5414_v23  ;;  %6680 = vst [vmem:[#allocation67_spill] sm:$0xff] %v5418_v29  ;;  %v5420_v33 = vld [vmem:[#allocation10 + $0xa0] sm:$0xff]  ;;  %v5424_v1 = vld [vmem:[#allocation11 + $0x98] sm:$0xff] }
 0x3da   :  { %1982 = vmatpush1.msra.mxu1 %v5394_v3  ;;  %2220 = vmatpush1.msra.mxu0 %v5396_v11  ;;  %6681 = vst [vmem:[#allocation22_spill] sm:$0xff] %v5420_v33  ;;  %6682 = vst [vmem:[#allocation23_spill] sm:$0xff] %v5424_v1  ;;  %v5426_v3 = vld [vmem:[#allocation10 + $0x98] sm:$0xff]  ;;  %v5430_v11 = vld [vmem:[#allocation11 + $0x90] sm:$0xff] }
 0x3db   :  { %1983 = vmatprep.subr.mxu1 %v5400_v13  ;;  %2221 = vmatprep.subr.mxu0 %v5402_v39  ;;  %6683 = vst [vmem:[#allocation24_spill] sm:$0xff] %v5426_v3  ;;  %6684 = vst [vmem:[#allocation25_spill] sm:$0xff] %v5430_v11  ;;  %v5432_v13 = vld [vmem:[#allocation10 + $0x90] sm:$0xff]  ;;  %v5436_v39 = vld [vmem:[#allocation11 + $0x88] sm:$0xff] }
 0x3dc   :  { %1984 = vmatpush1.msra.mxu1 %v5406_v41  ;;  %2222 = vmatpush1.msra.mxu0 %v5408_v9  ;;  %6685 = vst [vmem:[#allocation26_spill] sm:$0xff] %v5432_v13  ;;  %6686 = vst [vmem:[#allocation27_spill] sm:$0xff] %v5436_v39  ;;  %v5438_v41 = vld [vmem:[#allocation10 + $0x88] sm:$0xff]  ;;  %v5442_v9 = vld [vmem:[#allocation11 + $0x80] sm:$0xff] }
 0x3dd   :  { %1985 = vmatprep.subr.mxu1 %v5412_v52  ;;  %2223 = vmatprep.subr.mxu0 %v5414_v23  ;;  %6687 = vst [vmem:[#allocation28_spill] sm:$0xff] %v5438_v41  ;;  %6688 = vst [vmem:[#allocation29_spill] sm:$0xff] %v5442_v9  ;;  %v5444_v52 = vld [vmem:[#allocation10 + $0x80] sm:$0xff]  ;;  %v5448_v23 = vld [vmem:[#allocation11 + $0x78] sm:$0xff] }
 0x3de   :  { %1986 = vmatpush1.msra.mxu1 %v5418_v29  ;;  %2224 = vmatpush1.msra.mxu0 %v5420_v33  ;;  %6689 = vst [vmem:[#allocation30_spill] sm:$0xff] %v5444_v52  ;;  %6690 = vst [vmem:[#allocation31_spill] sm:$0xff] %v5448_v23  ;;  %v5450_v29 = vld [vmem:[#allocation10 + $0x78] sm:$0xff]  ;;  %v5454_v33 = vld [vmem:[#allocation11 + $0x70] sm:$0xff] }
 0x3df   :  { %1987 = vmatprep.subr.mxu1 %v5424_v1  ;;  %2225 = vmatprep.subr.mxu0 %v5426_v3  ;;  %6691 = vst [vmem:[#allocation32_spill] sm:$0xff] %v5450_v29  ;;  %6692 = vst [vmem:[#allocation33_spill] sm:$0xff] %v5454_v33  ;;  %v5456_v1 = vld [vmem:[#allocation10 + $0x70] sm:$0xff]  ;;  %v5460_v3 = vld [vmem:[#allocation11 + $0x68] sm:$0xff] }
 0x3e0   :  { %1988 = vmatpush1.msra.mxu1 %v5430_v11  ;;  %2226 = vmatpush1.msra.mxu0 %v5432_v13  ;;  %6693 = vst [vmem:[#allocation34_spill] sm:$0xff] %v5456_v1  ;;  %v5462_v11 = vld [vmem:[#allocation10 + $0x68] sm:$0xff]  ;;  %v5466_v13 = vld [vmem:[#allocation11 + $0x60] sm:$0xff] }
 0x3e1   :  { %1989 = vmatprep.subr.mxu1 %v5436_v39  ;;  %2227 = vmatprep.subr.mxu0 %v5438_v41  ;;  %6694 = vst [vmem:[#allocation35_spill] sm:$0xff] %v5462_v11  ;;  %v5468_v39 = vld [vmem:[#allocation10 + $0x60] sm:$0xff]  ;;  %v5472_v41 = vld [vmem:[#allocation11 + $0x58] sm:$0xff] }
 0x3e2   :  { %1990 = vmatpush1.msra.mxu1 %v5442_v9  ;;  %2228 = vmatpush1.msra.mxu0 %v5444_v52  ;;  %6695 = vst [vmem:[#allocation36_spill] sm:$0xff] %v5468_v39  ;;  %6696 = vst [vmem:[#allocation38_spill] sm:$0xff] %v5472_v41  ;;  %v5474_v9 = vld [vmem:[#allocation10 + $0x58] sm:$0xff]  ;;  %v5478_v52 = vld [vmem:[#allocation11 + $0x50] sm:$0xff] }
 0x3e3   :  { %1991 = vmatprep.subr.mxu1 %v5448_v23  ;;  %2229 = vmatprep.subr.mxu0 %v5450_v29  ;;  %6697 = vst [vmem:[#allocation39_spill] sm:$0xff] %v5478_v52  ;;  %v5480_v23 = vld [vmem:[#allocation10 + $0x50] sm:$0xff]  ;;  %v5484_v29 = vld [vmem:[#allocation11 + $0x48] sm:$0xff] }
 0x3e4   :  { %1992 = vmatpush1.msra.mxu1 %v5454_v33  ;;  %2230 = vmatpush1.msra.mxu0 %v5456_v1  ;;  %6698 = vst [vmem:[#allocation40_spill] sm:$0xff] %v5484_v29  ;;  %v5486_v33 = vld [vmem:[#allocation10 + $0x48] sm:$0xff]  ;;  %v5490_v1 = vld [vmem:[#allocation11 + $0x40] sm:$0xff] }
 0x3e5   :  { %1993 = vmatprep.subr.mxu1 %v5460_v3  ;;  %2231 = vmatprep.subr.mxu0 %v5462_v11  ;;  %6699 = vst [vmem:[#allocation41_spill] sm:$0xff] %v5490_v1  ;;  %v5494_v11 = vld [vmem:[#allocation11 + $0x38] sm:$0xff] }
 0x3e6   :  { %1994 = vmatpush1.msra.mxu1 %v5466_v13  ;;  %2232 = vmatpush1.msra.mxu0 %v5468_v39  ;;  %v5498_v39 = vld [vmem:[#allocation11 + $0x30] sm:$0xff] }
 0x3e7   :  { %1995 = vmatprep.subr.mxu1 %v5472_v41  ;;  %2233 = vmatprep.subr.mxu0 %v5474_v9  ;;  %v5502_v41 = vld [vmem:[#allocation11 + $0x28] sm:$0xff] }
 0x3e8   :  { %1996 = vmatpush1.msra.mxu1 %v5478_v52  ;;  %2234 = vmatpush1.msra.mxu0 %v5480_v23  ;;  %v5506_v52 = vld [vmem:[#allocation11 + $0x20] sm:$0xff] }
 0x3e9   :  { %1997 = vmatprep.subr.mxu1 %v5484_v29  ;;  %2235 = vmatprep.subr.mxu0 %v5486_v33  ;;  %v5510_v29 = vld [vmem:[#allocation11 + $0x18] sm:$0xff] }
 0x3ea   :  { %1998 = vmatpush1.msra.mxu1 %v5490_v1  ;;  %2236 = vmatpush1.msra.mxu0 %v5147_v31  ;;  %v5514_v1 = vld [vmem:[#allocation11 + $0x10] sm:$0xff]  ;;  %v5518_v31 = vld [vmem:[#allocation11 + $0x8] sm:$0xff] }
 0x3eb   :  { %1999 = vmatprep.subr.mxu1 %v5494_v11  ;;  %2237 = vmatprep.subr.mxu0 %v5151_v2  ;;  %v5522_v2 = vld [vmem:[#allocation11] sm:$0xff] }
 0x3ec   :  { %2000 = vmatpush1.msra.mxu1 %v5498_v39  ;;  %2238 = vmatpush1.msra.mxu0 %v5155_v36  ;;  %v5526_v36 = vld [vmem:[#allocation11 + $0x1f8] sm:$0xff] }
 0x3ed   :  { %2001 = vmatprep.subr.mxu1 %v5502_v41  ;;  %2239 = vmatprep.subr.mxu0 %v5159_v21  ;;  %v5530_v21 = vld [vmem:[#allocation11 + $0x1f0] sm:$0xff] }
 0x3ee   :  { %2002 = vmatpush1.msra.mxu1 %v5506_v52  ;;  %2240 = vmatpush1.msra.mxu0 %v5163_v22  ;;  %v5534_v22 = vld [vmem:[#allocation11 + $0x1e8] sm:$0xff] }
 0x3ef   :  { %2003 = vmatprep.subr.mxu1 %v5510_v29  ;;  %2241 = vmatprep.subr.mxu0 %v5167_v6  ;;  %v5538_v6 = vld [vmem:[#allocation11 + $0x1e0] sm:$0xff] }
 0x3f0   :  { %2004 = vmatpush1.msra.mxu1 %v5514_v1  ;;  %2242 = vmatpush1.msra.mxu0 %v5171_v10  ;;  %v5542_v10 = vld [vmem:[#allocation11 + $0x1d8] sm:$0xff] }
 0x3f1   :  { %2005 = vmatprep.subr.mxu1 %v5518_v31  ;;  %2243 = vmatprep.subr.mxu0 %v5175_v38  ;;  %v5546_v38 = vld [vmem:[#allocation11 + $0x1d0] sm:$0xff] }
 0x3f2   :  { %2006 = vmatpush1.msra.mxu1 %v5522_v2  ;;  %2244 = vmatpush1.msra.mxu0 %v5179_v43  ;;  %v5550_v43 = vld [vmem:[#allocation11 + $0x1c8] sm:$0xff] }
 0x3f3   :  { %2007 = vmatprep.subr.mxu1 %v5526_v36  ;;  %2245 = vmatprep.subr.mxu0 %v5183_v28  ;;  %v5554_v28 = vld [vmem:[#allocation11 + $0x1c0] sm:$0xff] }
 0x3f4   :  { %2008 = vmatpush2.msra.mxu1 %v5530_v21  ;;  %2246 = vmatpush2.msra.mxu0 %v5187_v4  ;;  %v5558_v4 = vld [vmem:[#allocation11 + $0x1b8] sm:$0xff] }
 0x3f5   :  { %2009 = vmatprep.subr.mxu1 %v5534_v22  ;;  %2247 = vmatprep.subr.mxu0 %v5191_v8  ;;  %v5562_v8 = vld [vmem:[#allocation11 + $0x1b0] sm:$0xff] }
 0x3f6   :  { %2010 = vmatpush2.msra.mxu1 %v5538_v6  ;;  %2248 = vmatpush2.msra.mxu0 %v5195_v30  ;;  %v5566_v30 = vld [vmem:[#allocation11 + $0x1a8] sm:$0xff] }
 0x3f7   :  { %2011 = vmatprep.subr.mxu1 %v5542_v10  ;;  %2249 = vmatprep.subr.mxu0 %v5199_v15  ;;  %v5570_v15 = vld [vmem:[#allocation11 + $0x1a0] sm:$0xff] }
 0x3f8   :  { %2012 = vmatpush2.msra.mxu1 %v5546_v38  ;;  %2250 = vmatpush2.msra.mxu0 %v5203_v16  ;;  %v1671_v16 = vld [vmem:[%s1670_s14] ss:$8 sm:$0x3]  ;;  %s1738_s14 = sand.u32 7, %s5594_s23 }
 0x3f9   :  { %2013 = vmatprep.subr.mxu1 %v5550_v43  ;;  %2251 = vmatprep.subr.mxu0 %v5207_v18  ;;  %1672 = vst.msk [vmem:[#allocation2] ss:$8 sm:$0x3] %vm4184_vm0, %v1671_v16  ;;  %v1683_v18 = vld [vmem:[%s1682_s16] ss:$8 sm:$0x3]  ;;  %s1741_s24 = sadd.s32 %s3682_s21, %s1738_s14 }
 0x3fa   :  { %2014 = vmatpush2.msra.mxu1 %v5554_v28  ;;  %2252 = vmatpush2.msra.mxu0 %v5211_v19  ;;  %1684 = vst.msk [vmem:[#allocation2 + $0x1] ss:$8 sm:$0x3] %vm4184_vm0, %v1683_v18  ;;  %v1695_v19 = vld [vmem:[%s1694_s28] ss:$8 sm:$0x3] }
 0x3fb   :  { %2015 = vmatprep.subr.mxu1 %v5558_v4  ;;  %2253 = vmatprep.subr.mxu0 %v5215_v61  ;;  %1696 = vst.msk [vmem:[#allocation2 + $0x2] ss:$8 sm:$0x3] %vm4184_vm0, %v1695_v19  ;;  %v5619_v61 = vld [vmem:[#allocation11 + $0x198] sm:$0xff]  ;;  %s1742_s23 = scalar_lea.vmem [#allocation7], %s1741_s24  ;;  %s3683_s16 = sshll.u32 %s1747_s15, 4 }
 0x3fc   :  { %2016 = vmatpush2.msra.mxu1 %v5562_v8  ;;  %2254 = vmatpush2.msra.mxu0 %v5219_v62  ;;  %v1707_v62 = vld [vmem:[%s1706_s12] ss:$8 sm:$0x3]  ;;  %s1753_s30 = sadd.s32 %s3683_s16, %s1750_s3  ;;  %s5842_s12 = sld [smem:[#allocation3 + $0x2d]] }
 0x3fd   :  { %2017 = vmatprep.subr.mxu1 %v5566_v30  ;;  %2255 = vmatprep.subr.mxu0 %v5223_v25  ;;  %v5624_v25 = vld [vmem:[#allocation11 + $0x190] sm:$0xff]  ;;  %1708 = vst.msk [vmem:[#allocation2 + $0x3] ss:$8 sm:$0x3] %vm4184_vm0, %v1707_v62  ;;  %s1754_s26 = scalar_lea.vmem [#allocation7], %s1753_s30  ;;  %s3685_s21 = sshll.u32 %s2064_s0, 4 }
 0x3fe   :  { %2018 = vmatpush2.msra.mxu1 %v5570_v15  ;;  %2256 = vmatpush2.msra.mxu0 %v5227_v63  ;;  %v5631_v63 = vld [vmem:[#allocation11 + $0x188] sm:$0xff]  ;;  %v1574_v16 = vld [vmem:[%s6348_s5] sm:$0x3]  ;;  %s2070_s24 = sadd.s32 %s3685_s21, %s2067_s10  ;;  %s2088_s16 = sshra.s32 %s5836_s11, 3 }
 0x3ff   :  { %2257 = vmatprep.subr.mxu0 %v5276_v14  ;;  %2019 = vmatprep.subr.mxu1 %v5619_v61  ;;  %v1719_v14 = vld [vmem:[%s1718_s8] ss:$8 sm:$0x3]  ;;  %v1579_v18 = vrot.slane %v1574_v16, %v4759_v58  ;;  %v1583_v62 = vrot.slane %v1574_v16, %v4764_v24  ;;  %v6719_v16 = vld [vmem:[#allocation67_spill] sm:$0xff]  ;;  %s3684_s8 = sshll.u32 %s2052_s25, 4  ;;  %s2071_s15 = scalar_lea.vmem [#allocation7], %s2070_s24 }
 0x400   :  { %2258 = vmatpush2.msra.mxu0 %v5281_v32  ;;  %2020 = vmatpush2.msra.mxu1 %v5624_v25  ;;  %v5635_v32 = vld [vmem:[#allocation11 + $0x180] sm:$0xff]  ;;  %1720 = vst.msk [vmem:[#allocation2 + $0x4] ss:$8 sm:$0x3] %vm4184_vm0, %v1719_v14  ;;  %s2058_s9 = sadd.s32 %s3684_s8, %s2055_s20  ;;  %s2091_s30 = sand.u32 7, %s5836_s11 }
 0x401   :  { %2259 = vmatprep.subr.mxu0 %v5287_v26  ;;  %2021 = vmatprep.subr.mxu1 %v5631_v63  ;;  %v5641_v26 = vld [vmem:[#allocation11 + $0x178] sm:$0xff]  ;;  %s2059_s14 = scalar_lea.vmem [#allocation7], %s2058_s9  ;;  %s3687_s27 = sshll.u32 %s2088_s16, 4 }
 0x402   :  { %2260 = vmatpush2.msra.mxu0 %v5291_v44  ;;  %2022 = vmatpush2.msra.mxu1 %v5635_v32  ;;  %v5644_v44 = vld [vmem:[#allocation11 + $0x170] sm:$0xff]  ;;  %s2100_s28 = sshra.s32 %s5839_s19, 3  ;;  %s2094_s29 = sadd.s32 %s3687_s27, %s2091_s30 }
 0x403   :  { %2261 = vmatprep.subr.mxu0 %v5297_v45  ;;  %2023 = vmatprep.subr.mxu1 %v5641_v26  ;;  %v1731_v45 = vld [vmem:[%s1730_s1] ss:$8 sm:$0x3]  ;;  %s2076_s1 = sshra.s32 %s5833_s18, 3  ;;  %s3688_s18 = sshll.u32 %s2100_s28, 4 }
 0x404   :  { %2262 = vmatpush2.msra.mxu0 %v5300_v48  ;;  %2024 = vmatpush2.msra.mxu1 %v5644_v44  ;;  %v5647_v48 = vld [vmem:[#allocation11 + $0x168] sm:$0xff]  ;;  %1732 = vst.msk [vmem:[#allocation2 + $0x5] ss:$8 sm:$0x3] %vm4184_vm0, %v1731_v45  ;;  %s2095_s11 = scalar_lea.vmem [#allocation7], %s2094_s29  ;;  %s2106_s25 = sadd.s32 %s3688_s18, %s2103_s17 }
 0x405   :  { %2263 = vmatprep.subr.mxu0 %v5303_v51  ;;  %2025 = vmatprep.subr.mxu1 %v5647_v48  ;;  %v5652_v51 = vld [vmem:[#allocation11 + $0x160] sm:$0xff]  ;;  %s2112_s20 = sshra.s32 %s5842_s12, 3  ;;  %s2115_s19 = sand.u32 7, %s5842_s12 }
 0x406   :  { %2264 = vmatpush2.msra.mxu0 %v5308_v53  ;;  %v5654_v53 = vld [vmem:[#allocation11 + $0x158] sm:$0xff]  ;;  %2026 = vmatpush2.msra.mxu1 %v5652_v51  ;;  %s2107_s8 = scalar_lea.vmem [#allocation7], %s2106_s25  ;;  %s3689_s9 = sshll.u32 %s2112_s20, 4 }
 0x407   :  { %2265 = vmatprep.subr.mxu0 %v5310_v5  ;;  %v5656_v5 = vld [vmem:[#allocation11 + $0x150] sm:$0xff]  ;;  %2027 = vmatprep.subr.mxu1 %v5654_v53  ;;  %s2124_s0 = sshra.s32 %s5845_s22, 3  ;;  %s2118_s10 = sadd.s32 %s3689_s9, %s2115_s19 }
 0x408   :  { %2266 = vmatpush2.msra.mxu0 %v5312_v7  ;;  %v1743_v7 = vld [vmem:[%s1742_s23] ss:$8 sm:$0x3]  ;;  %2028 = vmatpush2.msra.mxu1 %v5656_v5  ;;  %s3686_s23 = sshll.u32 %s2076_s1, 4  ;;  %s3690_s12 = sshll.u32 %s2124_s0, 4 }
 0x409   :  { %2267 = vmatprep.subr.mxu0 %v5315_v12  ;;  %v5659_v12 = vld [vmem:[#allocation11 + $0x148] sm:$0xff]  ;;  %1744 = vst.msk [vmem:[#allocation2 + $0x6] ss:$8 sm:$0x3] %vm4184_vm0, %v1743_v7  ;;  %s2082_s3 = sadd.s32 %s3686_s23, %s2079_s4  ;;  %s2119_s21 = scalar_lea.vmem [#allocation7], %s2118_s10 }
 0x40a   :  { %2268 = vmatpush2.msra.mxu0 %v5320_v40  ;;  %v5664_v40 = vld [vmem:[#allocation11 + $0x140] sm:$0xff]  ;;  %2029 = vmatprep.subr.mxu1 %v5659_v12  ;;  %s3593_s24 = sld [smem:[#allocation3 + $0x3d]] }
 0x40b   :  { %2269 = vmatprep.subr.mxu0 %v5323_v27  ;;  %v5667_v27 = vld [vmem:[#allocation11 + $0x138] sm:$0xff]  ;;  %2030 = vmatpush2.msra.mxu1 %v5664_v40  ;;  %s3596_s27 = sld [smem:[#allocation3 + $0x6]] }
 0x40c   :  { %2270 = vmatpush2.msra.mxu0 %v5326_v46  ;;  %v5670_v46 = vld [vmem:[#allocation11 + $0x130] sm:$0xff]  ;;  %2031 = vmatprep.subr.mxu1 %v5667_v27  ;;  %s3599_s28 = sld [smem:[#allocation3 + $0xe]] }
 0x40d   :  { %2271 = vmatprep.subr.mxu0 %v5329_v17  ;;  %v5673_v17 = vld [vmem:[#allocation11 + $0x128] sm:$0xff]  ;;  %2032 = vmatpush2.msra.mxu1 %v5670_v46  ;;  %s6107_s29 = sld [smem:[#allocation3 + $0x16]] }
 0x40e   :  { %2272 = vmatpush2.msra.mxu0 %v5332_v20  ;;  %6700 = vst [vmem:[#allocation42_spill] sm:$0xff] %v5673_v17  ;;  %v5676_v20 = vld [vmem:[#allocation11 + $0x120] sm:$0xff]  ;;  %2033 = vmatprep.subr.mxu1 %v5673_v17  ;;  %s6110_s17 = sld [smem:[#allocation3 + $0x1e]] }
 0x40f   :  { %2273 = vmatprep.subr.mxu0 %v5335_v56  ;;  %6701 = vst [vmem:[#allocation43_spill] sm:$0xff] %v5676_v20  ;;  %v5679_v56 = vld [vmem:[#allocation11 + $0x118] sm:$0xff]  ;;  %2034 = vmatpush2.msra.mxu1 %v5676_v20  ;;  %s6113_s18 = sld [smem:[#allocation3 + $0x26]] }
 0x410   :  { %2274 = vmatpush2.msra.mxu0 %v5338_v57  ;;  %6702 = vst [vmem:[#allocation44_spill] sm:$0xff] %v5679_v56  ;;  %v5682_v57 = vld [vmem:[#allocation11 + $0x110] sm:$0xff]  ;;  %2035 = vmatprep.subr.mxu1 %v5679_v56  ;;  %s2136_s4 = sshra.s32 %s3593_s24, 3  ;;  %s2139_s23 = sand.u32 7, %s3593_s24 }
 0x411   :  { %2275 = vmatprep.subr.mxu0 %v5341_v54  ;;  %6703 = vst [vmem:[#allocation45_spill] sm:$0xff] %v5682_v57  ;;  %v1755_v54 = vld [vmem:[%s1754_s26] ss:$8 sm:$0x3]  ;;  %2036 = vmatpush2.msra.mxu1 %v5682_v57  ;;  %s2083_s26 = scalar_lea.vmem [#allocation7], %s2082_s3  ;;  %s2441_s25 = sshra.s32 %s3596_s27, 3 }
 0x412   :  { %2276 = vmatpush2.msra.mxu0 %v5348_v47  ;;  %v5685_v47 = vld [vmem:[#allocation11 + $0x108] sm:$0xff]  ;;  %1756 = vst.msk [vmem:[#allocation2 + $0x7] ss:$8 sm:$0x3] %vm4184_vm0, %v1755_v54  ;;  %s6119_s20 = sld [smem:[#allocation3 + $0x36]]  ;;  %s2444_s19 = sand.u32 7, %s3596_s27 }
 0x413   :  { %2602 = vmatprep.subr.mxu0 %v5353_v49  ;;  %6704 = vst [vmem:[#allocation46_spill] sm:$0xff] %v5685_v47  ;;  %v5690_v49 = vld [vmem:[#allocation11 + $0x100] sm:$0xff]  ;;  %2037 = vmatprep.subr.mxu1 %v5685_v47  ;;  %s2453_s0 = sshra.s32 %s3599_s28, 3  ;;  %s2456_s10 = sand.u32 7, %s3599_s28 }
 0x414   :  { %6705 = vst [vmem:[#allocation47_spill] sm:$0xff] %v5690_v49  ;;  %2038 = vmatpush2.msra.mxu1 %v5690_v49  ;;  %s2468_s24 = sand.u32 7, %s6107_s29 }
 0x415   :  { %2364 = vmatprep.subr.mxu1 %v5351_v37  ;;  %s2492_s28 = sand.u32 7, %s6113_s18 }
 0x419   :  { %v1758_v19 = vld [vmem:[#allocation2] sm:$0xff]  ;;  %v1759_v7 = vld [vmem:[#allocation2 + $0x8] sm:$0xff] }
 0x493   :  { %v1652_v14 = vpop.f32.mrf.mxu1  ;;  %v1890_v45 = vpop.f32.mrf.mxu0 }
 0x494   :  { %v1653_v54 = vadd.f32 %v1652_v14, %v1579_v18  ;;  %v1895_v57 = vadd.f32 %v1890_v45, %v1758_v19  ;;  %v6720_v18 = vld [vmem:[#allocation22_spill] sm:$0xff]  ;;  %v6721_v19 = vld [vmem:[#allocation23_spill] sm:$0xff]  ;;  %v6723_v14 = vld [vmem:[#allocation25_spill] sm:$0xff] }
 0x495   :  { %v1654_v56 = vpop.f32.mrf.mxu1  ;;  %v1892_v47 = vpop.f32.mrf.mxu0  ;;  %v6724_v45 = vld [vmem:[#allocation26_spill] sm:$0xff] }
 0x496   :  { %1660 = vst [vmem:[#allocation13 + $0x30] sm:$0xff] %v1653_v54  ;;  %v1655_v49 = vadd.f32 %v1654_v56, %v1583_v62  ;;  %v1896_v20 = vadd.f32 %v1892_v47, %v1759_v7  ;;  %v6707_v56 = vld [vmem:[#allocation59_spill] sm:$0xff]  ;;  %v6717_v47 = vld [vmem:[#allocation62_spill] sm:$0xff]  ;;  %v6722_v62 = vld [vmem:[#allocation24_spill] sm:$0xff] }
 0x497   :  { %v6725_v7 = vld [vmem:[#allocation27_spill] sm:$0xff]  ;;  %v6726_v54 = vld [vmem:[#allocation28_spill] sm:$0xff] }
 0x498   :  { %1661 = vst [vmem:[#allocation13 + $0x38] sm:$0xff] %v1655_v49  ;;  %3733 = vtanh.f32 %v1896_v20  ;;  %v6706_v20 = vld [vmem:[#allocation57_spill] sm:$0xff]  ;;  %v6718_v49 = vld [vmem:[#allocation64_spill] sm:$0xff] }
 0x499   :  { %3735 = vtanh.f32 %v1895_v57  ;;  %v6708_v57 = vld [vmem:[#allocation61_spill] sm:$0xff] }
 0x4a5   :  { %v3734_v37 = vpop.eup %3733 }
 0x4a6   :  { %v3736_v17 = vpop.eup %3735  ;;  %2039 = vmatprep.mubr.f32.mxu1 %v3734_v37  ;;  %2277 = vmatprep.mubr.f32.mxu0 %v3734_v37  ;;  %v6727_v37 = vld [vmem:[#allocation29_spill] sm:$0xff] }
 0x4a7   :  { %2040 = vmatmul.mubr.f32.vlgmr.msra.gmra.mxu1 %v3736_v17  ;;  %2278 = vmatmul.mubr.f32.vlgmr.msra.gmra.mxu0 %v3736_v17  ;;  %v6709_v17 = vld [vmem:[#allocation63_spill] sm:$0xff] }
 0x4a8   :  { %2365 = vmatpush1.msra.mxu1 %v5362_v0  ;;  %2603 = vmatpush1.msra.mxu0 %v5364_v50  ;;  %v6710_v0 = vld [vmem:[#allocation65_spill] sm:$0xff]  ;;  %v6711_v50 = vld [vmem:[#allocation66_spill] sm:$0xff] }
 0x4a9   :  { %2366 = vmatprep.subr.mxu1 %v5366_v59  ;;  %2604 = vmatprep.subr.mxu0 %v5368_v55  ;;  %v6712_v59 = vld [vmem:[#allocation37_spill] sm:$0xff]  ;;  %v6713_v55 = vld [vmem:[#allocation54_spill] sm:$0xff] }
 0x4aa   :  { %2367 = vmatpush1.msra.mxu1 %v5370_v35  ;;  %2605 = vmatpush1.msra.mxu0 %v5372_v60  ;;  %v6714_v35 = vld [vmem:[#allocation56_spill] sm:$0xff]  ;;  %v6715_v60 = vld [vmem:[#allocation58_spill] sm:$0xff] }
 0x4ab   :  { %2368 = vmatprep.subr.mxu1 %v5376_v42  ;;  %2606 = vmatprep.subr.mxu0 %v6706_v20  ;;  %v6716_v42 = vld [vmem:[#allocation60_spill] sm:$0xff]  ;;  %v6728_v20 = vld [vmem:[#allocation30_spill] sm:$0xff] }
 0x4ac   :  { %2369 = vmatpush1.msra.mxu1 %v6707_v56  ;;  %2607 = vmatpush1.msra.mxu0 %v6708_v57  ;;  %v6729_v56 = vld [vmem:[#allocation31_spill] sm:$0xff]  ;;  %v6730_v57 = vld [vmem:[#allocation32_spill] sm:$0xff] }
 0x4ad   :  { %2370 = vmatprep.subr.mxu1 %v6709_v17  ;;  %2608 = vmatprep.subr.mxu0 %v6710_v0  ;;  %v6731_v17 = vld [vmem:[#allocation33_spill] sm:$0xff]  ;;  %v6732_v0 = vld [vmem:[#allocation34_spill] sm:$0xff] }
 0x4ae   :  { %2371 = vmatpush1.msra.mxu1 %v6711_v50  ;;  %2609 = vmatpush1.msra.mxu0 %v6712_v59  ;;  %v6733_v50 = vld [vmem:[#allocation35_spill] sm:$0xff]  ;;  %v6734_v59 = vld [vmem:[#allocation36_spill] sm:$0xff] }
 0x4af   :  { %2372 = vmatprep.subr.mxu1 %v6713_v55  ;;  %2610 = vmatprep.subr.mxu0 %v6714_v35  ;;  %v6735_v55 = vld [vmem:[#allocation38_spill] sm:$0xff]  ;;  %v5741_v35 = vld [vmem:[#allocation10 + $0x40] sm:$0xff] }
 0x4b0   :  { %2373 = vmatpush1.msra.mxu1 %v6715_v60  ;;  %2611 = vmatpush1.msra.mxu0 %v6716_v42  ;;  %v6736_v60 = vld [vmem:[#allocation39_spill] sm:$0xff] }
 0x4b1   :  { %2374 = vmatprep.subr.mxu1 %v6717_v47  ;;  %2612 = vmatprep.subr.mxu0 %v6718_v49  ;;  %v5745_v42 = vld [vmem:[#allocation10 + $0x38] sm:$0xff]  ;;  %v6737_v47 = vld [vmem:[#allocation40_spill] sm:$0xff]  ;;  %v5753_v49 = vld [vmem:[#allocation10 + $0x28] sm:$0xff] }
 0x4b2   :  { %2375 = vmatpush1.msra.mxu1 %v6719_v16  ;;  %2613 = vmatpush1.msra.mxu0 %v6720_v18  ;;  %v5904_v16 = vld [vmem:[#allocation10 + $0x158] sm:$0xff]  ;;  %v5906_v18 = vld [vmem:[#allocation10 + $0x150] sm:$0xff] }
 0x4b3   :  { %2376 = vmatprep.subr.mxu1 %v6721_v19  ;;  %2614 = vmatprep.subr.mxu0 %v6722_v62  ;;  %v5909_v62 = vld [vmem:[#allocation10 + $0x148] sm:$0xff] }
 0x4b4   :  { %2377 = vmatpush1.msra.mxu1 %v6723_v14  ;;  %2615 = vmatpush1.msra.mxu0 %v6724_v45  ;;  %v5914_v14 = vld [vmem:[#allocation10 + $0x140] sm:$0xff]  ;;  %v5917_v45 = vld [vmem:[#allocation10 + $0x138] sm:$0xff] }
 0x4b5   :  { %2378 = vmatprep.subr.mxu1 %v6725_v7  ;;  %2616 = vmatprep.subr.mxu0 %v6726_v54  ;;  %v5920_v7 = vld [vmem:[#allocation10 + $0x130] sm:$0xff]  ;;  %v5923_v54 = vld [vmem:[#allocation10 + $0x128] sm:$0xff] }
 0x4b6   :  { %2379 = vmatpush1.msra.mxu1 %v6727_v37  ;;  %2617 = vmatpush1.msra.mxu0 %v6728_v20  ;;  %v5926_v37 = vld [vmem:[#allocation10 + $0x120] sm:$0xff]  ;;  %v5929_v20 = vld [vmem:[#allocation10 + $0x118] sm:$0xff] }
 0x4b7   :  { %2380 = vmatprep.subr.mxu1 %v6729_v56  ;;  %2618 = vmatprep.subr.mxu0 %v6730_v57  ;;  %v5932_v56 = vld [vmem:[#allocation10 + $0x110] sm:$0xff] }
 0x4b8   :  { %2381 = vmatpush1.msra.mxu1 %v6731_v17  ;;  %2619 = vmatpush1.msra.mxu0 %v6732_v0  ;;  %v5935_v17 = vld [vmem:[#allocation10 + $0x108] sm:$0xff]  ;;  %v5942_v0 = vld [vmem:[#allocation10 + $0x100] sm:$0xff] }
 0x4b9   :  { %2382 = vmatprep.subr.mxu1 %v5460_v3  ;;  %2620 = vmatprep.subr.mxu0 %v6733_v50  ;;  %v5749_v3 = vld [vmem:[#allocation10 + $0x30] sm:$0xff]  ;;  %v5945_v50 = vld [vmem:[#allocation11 + $0xf8] sm:$0xff] }
 0x4ba   :  { %2383 = vmatpush1.msra.mxu1 %v5466_v13  ;;  %2621 = vmatpush1.msra.mxu0 %v6734_v59  ;;  %v6738_v13 = vld [vmem:[#allocation41_spill] sm:$0xff]  ;;  %v2958_v59 = vld [vmem:[#allocation10 + $0xf8] sm:$0xff] }
 0x4bb   :  { %2384 = vmatprep.subr.mxu1 %v6735_v55  ;;  %2622 = vmatprep.subr.mxu0 %v5474_v9  ;;  %v5757_v9 = vld [vmem:[#allocation10 + $0x20] sm:$0xff] }
 0x4bc   :  { %2385 = vmatpush1.msra.mxu1 %v6736_v60  ;;  %2623 = vmatpush1.msra.mxu0 %v5480_v23  ;;  %v5761_v23 = vld [vmem:[#allocation10 + $0x18] sm:$0xff]  ;;  %v1963_v55 = vld [vmem:[%s6348_s5] sm:$0x3] }
 0x4bd   :  { %2386 = vmatprep.subr.mxu1 %v6737_v47  ;;  %2624 = vmatprep.subr.mxu0 %v5486_v33  ;;  %v5765_v33 = vld [vmem:[#allocation10 + $0x10] sm:$0xff]  ;;  %v1968_v60 = vrot.slane %v1963_v55, %v4759_v58 }
 0x4be   :  { %2387 = vmatpush1.msra.mxu1 %v6738_v13  ;;  %2625 = vmatpush1.msra.mxu0 %v5741_v35  ;;  %v1972_v13 = vrot.slane %v1963_v55, %v4764_v24  ;;  %v5957_v55 = vld [vmem:[#allocation11 + $0xe0] sm:$0xff] }
 0x4bf   :  { %2388 = vmatprep.subr.mxu1 %v5494_v11  ;;  %2626 = vmatprep.subr.mxu0 %v5745_v42  ;;  %v5769_v11 = vld [vmem:[#allocation10 + $0x8] sm:$0xff] }
 0x4c0   :  { %2389 = vmatpush1.msra.mxu1 %v5498_v39  ;;  %2627 = vmatpush1.msra.mxu0 %v5749_v3  ;;  %v5773_v39 = vld [vmem:[#allocation10] sm:$0xff] }
 0x4c1   :  { %2390 = vmatprep.subr.mxu1 %v5502_v41  ;;  %2628 = vmatprep.subr.mxu0 %v5753_v49  ;;  %v5777_v41 = vld [vmem:[#allocation10 + $0x1f8] sm:$0xff] }
 0x4c2   :  { %2391 = vmatpush1.msra.mxu1 %v5506_v52  ;;  %2629 = vmatpush1.msra.mxu0 %v5757_v9  ;;  %v5781_v52 = vld [vmem:[#allocation10 + $0x1f0] sm:$0xff] }
 0x4c3   :  { %2392 = vmatprep.subr.mxu1 %v5510_v29  ;;  %2630 = vmatprep.subr.mxu0 %v5761_v23  ;;  %v5785_v29 = vld [vmem:[#allocation10 + $0x1e8] sm:$0xff] }
 0x4c4   :  { %2393 = vmatpush1.msra.mxu1 %v5514_v1  ;;  %2631 = vmatpush1.msra.mxu0 %v5765_v33  ;;  %v5789_v1 = vld [vmem:[#allocation10 + $0x1e0] sm:$0xff] }
 0x4c5   :  { %2394 = vmatprep.subr.mxu1 %v5518_v31  ;;  %2632 = vmatprep.subr.mxu0 %v5769_v11  ;;  %v5793_v31 = vld [vmem:[#allocation10 + $0x1d8] sm:$0xff] }
 0x4c6   :  { %2395 = vmatpush1.msra.mxu1 %v5522_v2  ;;  %2633 = vmatpush1.msra.mxu0 %v5773_v39  ;;  %v5797_v2 = vld [vmem:[#allocation10 + $0x1d0] sm:$0xff] }
 0x4c7   :  { %2396 = vmatprep.subr.mxu1 %v5526_v36  ;;  %2634 = vmatprep.subr.mxu0 %v5777_v41  ;;  %v5801_v36 = vld [vmem:[#allocation10 + $0x1c8] sm:$0xff] }
 0x4c8   :  { %2397 = vmatpush2.msra.mxu1 %v5530_v21  ;;  %2635 = vmatpush2.msra.mxu0 %v5781_v52  ;;  %v5805_v21 = vld [vmem:[#allocation10 + $0x1c0] sm:$0xff] }
 0x4c9   :  { %2398 = vmatprep.subr.mxu1 %v5534_v22  ;;  %2636 = vmatprep.subr.mxu0 %v5785_v29  ;;  %v5809_v22 = vld [vmem:[#allocation10 + $0x1b8] sm:$0xff] }
 0x4ca   :  { %2399 = vmatpush2.msra.mxu1 %v5538_v6  ;;  %2637 = vmatpush2.msra.mxu0 %v5789_v1  ;;  %v5813_v6 = vld [vmem:[#allocation10 + $0x1b0] sm:$0xff] }
 0x4cb   :  { %2400 = vmatprep.subr.mxu1 %v5542_v10  ;;  %2638 = vmatprep.subr.mxu0 %v5793_v31  ;;  %v5817_v10 = vld [vmem:[#allocation10 + $0x1a8] sm:$0xff] }
 0x4cc   :  { %2401 = vmatpush2.msra.mxu1 %v5546_v38  ;;  %2639 = vmatpush2.msra.mxu0 %v5797_v2  ;;  %v5821_v38 = vld [vmem:[#allocation10 + $0x1a0] sm:$0xff] }
 0x4cd   :  { %2402 = vmatprep.subr.mxu1 %v5550_v43  ;;  %2640 = vmatprep.subr.mxu0 %v5801_v36  ;;  %v2060_v43 = vld [vmem:[%s2059_s14] ss:$8 sm:$0x3]  ;;  %s2127_s14 = sand.u32 7, %s5845_s22 }
 0x4ce   :  { %2403 = vmatpush2.msra.mxu1 %v5554_v28  ;;  %2641 = vmatpush2.msra.mxu0 %v5805_v21  ;;  %2061 = vst.msk [vmem:[#allocation2] ss:$8 sm:$0x3] %vm4184_vm0, %v2060_v43  ;;  %v6739_v28 = vld [vmem:[#allocation42_spill] sm:$0xff]  ;;  %s2130_s1 = sadd.s32 %s3690_s12, %s2127_s14  ;;  %s3693_s12 = sshll.u32 %s2453_s0, 4 }
 0x4cf   :  { %2404 = vmatprep.subr.mxu1 %v5558_v4  ;;  %2642 = vmatprep.subr.mxu0 %v5809_v22  ;;  %v2072_v4 = vld [vmem:[%s2071_s15] ss:$8 sm:$0x3]  ;;  %s2131_s22 = scalar_lea.vmem [#allocation7], %s2130_s1  ;;  %s3691_s15 = sshll.u32 %s2136_s4, 4 }
 0x4d0   :  { %2405 = vmatpush2.msra.mxu1 %v5562_v8  ;;  %2643 = vmatpush2.msra.mxu0 %v5813_v6  ;;  %v6740_v8 = vld [vmem:[#allocation43_spill] sm:$0xff]  ;;  %2073 = vst.msk [vmem:[#allocation2 + $0x1] ss:$8 sm:$0x3] %vm4184_vm0, %v2072_v4  ;;  %s2142_s3 = sadd.s32 %s3691_s15, %s2139_s23  ;;  %s2459_s1 = sadd.s32 %s3693_s12, %s2456_s10 }
 0x4d1   :  { %2406 = vmatprep.subr.mxu1 %v5566_v30  ;;  %2644 = vmatprep.subr.mxu0 %v5817_v10  ;;  %v6741_v30 = vld [vmem:[#allocation44_spill] sm:$0xff]  ;;  %s2143_s16 = scalar_lea.vmem [#allocation7], %s2142_s3  ;;  %s2460_s4 = scalar_lea.vmem [#allocation7], %s2459_s1 }
 0x4d2   :  { %2407 = vmatpush2.msra.mxu1 %v5570_v15  ;;  %2645 = vmatpush2.msra.mxu0 %v5821_v38  ;;  %v2084_v15 = vld [vmem:[%s2083_s26] ss:$8 sm:$0x3]  ;;  %s2477_s15 = sshra.s32 %s6110_s17, 3  ;;  %s2480_s3 = sand.u32 7, %s6110_s17 }
 0x4d3   :  { %2408 = vmatprep.subr.mxu1 %v5619_v61  ;;  %v6742_v61 = vld [vmem:[#allocation45_spill] sm:$0xff]  ;;  %2085 = vst.msk [vmem:[#allocation2 + $0x2] ss:$8 sm:$0x3] %vm4184_vm0, %v2084_v15  ;;  %s3695_s30 = sshll.u32 %s2477_s15, 4  ;;  %s2489_s26 = sshra.s32 %s6113_s18, 3 }
 0x4d4   :  { %2409 = vmatpush2.msra.mxu1 %v5624_v25  ;;  %v6743_v25 = vld [vmem:[#allocation46_spill] sm:$0xff]  ;;  %v2132_v19 = vld [vmem:[%s2131_s22] ss:$8 sm:$0x3]  ;;  %s2483_s27 = sadd.s32 %s3695_s30, %s2480_s3  ;;  %s2513_s0 = sshra.s32 %s6119_s20, 3 }
 0x4d5   :  { %2410 = vmatprep.subr.mxu1 %v5631_v63  ;;  %v5870_v63 = vld [vmem:[#allocation10 + $0x198] sm:$0xff]  ;;  %2133 = vst.msk [vmem:[#allocation2 + $0x6] ss:$8 sm:$0x3] %vm4184_vm0, %v2132_v19  ;;  %s2484_s17 = scalar_lea.vmem [#allocation7], %s2483_s27  ;;  %s3617_s1 = sld [smem:[#allocation3 + $0x3e]] }
 0x4d6   :  { %2411 = vmatpush2.msra.mxu1 %v5635_v32  ;;  %v6744_v32 = vld [vmem:[#allocation47_spill] sm:$0xff]  ;;  %2646 = vmatprep.subr.mxu0 %v5870_v63  ;;  %v2144_v57 = vld [vmem:[%s2143_s16] ss:$8 sm:$0x3]  ;;  %s3620_s30 = sld [smem:[#allocation3 + $0x7]] }
 0x4d7   :  { %2412 = vmatprep.subr.mxu1 %v5641_v26  ;;  %v2096_v26 = vld [vmem:[%s2095_s11] ss:$8 sm:$0x3]  ;;  %2145 = vst.msk [vmem:[#allocation2 + $0x7] ss:$8 sm:$0x3] %vm4184_vm0, %v2144_v57 }
 0x4d8   :  { %2413 = vmatpush2.msra.mxu1 %v5644_v44  ;;  %v5875_v44 = vld [vmem:[#allocation10 + $0x190] sm:$0xff]  ;;  %2097 = vst.msk [vmem:[#allocation2 + $0x3] ss:$8 sm:$0x3] %vm4184_vm0, %v2096_v26  ;;  %v5955_v57 = vld [vmem:[#allocation11 + $0xe8] sm:$0xff]  ;;  %s6116_s11 = sld [smem:[#allocation3 + $0x2e]] }
 0x4d9   :  { %2414 = vmatprep.subr.mxu1 %v5647_v48  ;;  %2647 = vmatpush2.msra.mxu0 %v5875_v44  ;;  %v5881_v48 = vld [vmem:[#allocation10 + $0x188] sm:$0xff]  ;;  %s6272_s27 = sld [smem:[#allocation3 + $0x17]] }
 0x4da   :  { %2415 = vmatpush2.msra.mxu1 %v5652_v51  ;;  %v2108_v51 = vld [vmem:[%s2107_s8] ss:$8 sm:$0x3]  ;;  %2648 = vmatprep.subr.mxu0 %v5881_v48  ;;  %s3692_s8 = sshll.u32 %s2441_s25, 4 }
 0x4db   :  { %2416 = vmatprep.subr.mxu1 %v5654_v53  ;;  %v5885_v53 = vld [vmem:[#allocation10 + $0x180] sm:$0xff]  ;;  %2109 = vst.msk [vmem:[#allocation2 + $0x4] ss:$8 sm:$0x3] %vm4184_vm0, %v2108_v51  ;;  %v5953_v51 = vld [vmem:[#allocation11 + $0xf0] sm:$0xff]  ;;  %s2447_s9 = sadd.s32 %s3692_s8, %s2444_s19 }
 0x4dc   :  { %2417 = vmatpush2.msra.mxu1 %v5656_v5  ;;  %2649 = vmatpush2.msra.mxu0 %v5885_v53  ;;  %v5891_v5 = vld [vmem:[#allocation10 + $0x178] sm:$0xff]  ;;  %s2448_s14 = scalar_lea.vmem [#allocation7], %s2447_s9 }
 0x4dd   :  { %2418 = vmatprep.subr.mxu1 %v5659_v12  ;;  %2650 = vmatprep.subr.mxu0 %v5891_v5  ;;  %v5894_v12 = vld [vmem:[#allocation10 + $0x170] sm:$0xff] }
 0x4de   :  { %2419 = vmatpush2.msra.mxu1 %v5664_v40  ;;  %v2120_v40 = vld [vmem:[%s2119_s21] ss:$8 sm:$0x3]  ;;  %2651 = vmatpush2.msra.mxu0 %v5894_v12  ;;  %s2465_s21 = sshra.s32 %s6107_s29, 3  ;;  %s3696_s29 = sshll.u32 %s2489_s26, 4 }
 0x4df   :  { %2420 = vmatprep.subr.mxu1 %v5667_v27  ;;  %v5897_v27 = vld [vmem:[#allocation10 + $0x168] sm:$0xff]  ;;  %2121 = vst.msk [vmem:[#allocation2 + $0x5] ss:$8 sm:$0x3] %vm4184_vm0, %v2120_v40  ;;  %v2957_v40 = vld [vmem:[#allocation10 + $0xf0] sm:$0xff]  ;;  %s3694_s22 = sshll.u32 %s2465_s21, 4  ;;  %s2495_s25 = sadd.s32 %s3696_s29, %s2492_s28 }
 0x4e0   :  { %2421 = vmatpush2.msra.mxu1 %v5670_v46  ;;  %2652 = vmatprep.subr.mxu0 %v5897_v27  ;;  %v5902_v46 = vld [vmem:[#allocation10 + $0x160] sm:$0xff]  ;;  %s2471_s23 = sadd.s32 %s3694_s22, %s2468_s24  ;;  %s2501_s19 = sshra.s32 %s6116_s11, 3 }
 0x4e1   :  { %2422 = vmatprep.subr.mxu1 %v6739_v28  ;;  %2653 = vmatpush2.msra.mxu0 %v5902_v46  ;;  %s2472_s16 = scalar_lea.vmem [#allocation7], %s2471_s23  ;;  %s2504_s18 = sand.u32 7, %s6116_s11 }
 0x4e2   :  { %2423 = vmatpush2.msra.mxu1 %v6740_v8  ;;  %2654 = vmatprep.subr.mxu0 %v5904_v16  ;;  %s2496_s8 = scalar_lea.vmem [#allocation7], %s2495_s25  ;;  %s3697_s9 = sshll.u32 %s2501_s19, 4 }
 0x4e3   :  { %2424 = vmatprep.subr.mxu1 %v6741_v30  ;;  %2655 = vmatpush2.msra.mxu0 %v5906_v18  ;;  %s2507_s10 = sadd.s32 %s3697_s9, %s2504_s18  ;;  %s3698_s11 = sshll.u32 %s2513_s0, 4 }
 0x4e4   :  { %2425 = vmatpush2.msra.mxu1 %v6742_v61  ;;  %2656 = vmatprep.subr.mxu0 %v5909_v62  ;;  %s2508_s12 = scalar_lea.vmem [#allocation7], %s2507_s10  ;;  %s2525_s24 = sshra.s32 %s3617_s1, 3 }
 0x4e5   :  { %2426 = vmatprep.subr.mxu1 %v6743_v25  ;;  %2657 = vmatpush2.msra.mxu0 %v5914_v14  ;;  %s2528_s22 = sand.u32 7, %s3617_s1  ;;  %s3623_s26 = sld [smem:[#allocation3 + $0xf]] }
 0x4e6   :  { %2427 = vmatpush2.msra.mxu1 %v6744_v32  ;;  %2658 = vmatprep.subr.mxu0 %v5917_v45  ;;  %v2147_v47 = vld [vmem:[#allocation2] sm:$0xff]  ;;  %v2148_v4 = vld [vmem:[#allocation2 + $0x8] sm:$0xff]  ;;  %s6275_s28 = sld [smem:[#allocation3 + $0x1f]]  ;;  %s2830_s25 = sshra.s32 %s3620_s30, 3 }
 0x4e7   :  { %2659 = vmatpush2.msra.mxu0 %v5920_v7  ;;  %2753 = vmatprep.subr.mxu1 %v5945_v50  ;;  %s6278_s29 = sld [smem:[#allocation3 + $0x27]]  ;;  %s2833_s18 = sand.u32 7, %s3620_s30 }
 0x4e8   :  { %2660 = vmatprep.subr.mxu0 %v5923_v54  ;;  %s6284_s19 = sld [smem:[#allocation3 + $0x37]]  ;;  %s2857_s1 = sand.u32 7, %s6272_s27 }
 0x4e9   :  { %2661 = vmatpush2.msra.mxu0 %v5926_v37 }
 0x4ea   :  { %2662 = vmatprep.subr.mxu0 %v5929_v20 }
 0x4eb   :  { %2663 = vmatpush2.msra.mxu0 %v5932_v56  ;;  %s2842_s0 = sshra.s32 %s3623_s26, 3  ;;  %s2845_s10 = sand.u32 7, %s3623_s26 }
 0x4ec   :  { %2664 = vmatprep.subr.mxu0 %v5935_v17 }
 0x4ed   :  { %2665 = vmatpush2.msra.mxu0 %v5942_v0  ;;  %s2881_s26 = sand.u32 7, %s6278_s29 }
 0x4ee   :  { %2991 = vmatprep.subr.mxu0 %v2958_v59  ;;  %v2956_v59 = vld [vmem:[#allocation10 + $0xe8] sm:$0xff] }
 0x567   :  { %v2041_v43 = vpop.f32.mrf.mxu1  ;;  %v2279_v28 = vpop.f32.mrf.mxu0 }
 0x568   :  { %v2042_v8 = vadd.f32 %v2041_v43, %v1968_v60  ;;  %v2284_v30 = vadd.f32 %v2279_v28, %v2147_v47  ;;  %v2955_v60 = vld [vmem:[#allocation10 + $0xe0] sm:$0xff]  ;;  %v5960_v47 = vld [vmem:[#allocation11 + $0xd8] sm:$0xff]  ;;  %v5963_v43 = vld [vmem:[#allocation11 + $0xd0] sm:$0xff] }
 0x569   :  { %v2043_v15 = vpop.f32.mrf.mxu1  ;;  %v2281_v61 = vpop.f32.mrf.mxu0  ;;  %v2953_v28 = vld [vmem:[#allocation10 + $0xd0] sm:$0xff] }
 0x56a   :  { %2049 = vst [vmem:[#allocation13 + $0x40] sm:$0xff] %v2042_v8  ;;  %v2044_v25 = vadd.f32 %v2043_v15, %v1972_v13  ;;  %v2285_v32 = vadd.f32 %v2281_v61, %v2148_v4  ;;  %v2954_v13 = vld [vmem:[#allocation10 + $0xd8] sm:$0xff]  ;;  %v5966_v4 = vld [vmem:[#allocation11 + $0xc8] sm:$0xff]  ;;  %v2951_v15 = vld [vmem:[#allocation10 + $0xc0] sm:$0xff] }
 0x56b   :  { %v2952_v8 = vld [vmem:[#allocation10 + $0xc8] sm:$0xff]  ;;  %v5972_v61 = vld [vmem:[#allocation11 + $0xb8] sm:$0xff] }
 0x56c   :  { %2050 = vst [vmem:[#allocation13 + $0x48] sm:$0xff] %v2044_v25  ;;  %3737 = vtanh.f32 %v2285_v32  ;;  %6745 = vst [vmem:[#allocation48_spill] sm:$0xff] %v5972_v61  ;;  %v2950_v25 = vld [vmem:[#allocation10 + $0xb8] sm:$0xff]  ;;  %v5975_v32 = vld [vmem:[#allocation11 + $0xb0] sm:$0xff] }
 0x56d   :  { %3739 = vtanh.f32 %v2284_v30  ;;  %v5969_v30 = vld [vmem:[#allocation11 + $0xc0] sm:$0xff]  ;;  %6746 = vst [vmem:[#allocation49_spill] sm:$0xff] %v5975_v32 }
 0x579   :  { %v3738_v26 = vpop.eup %3737 }
 0x57a   :  { %v3740_v19 = vpop.eup %3739  ;;  %2428 = vmatprep.mubr.f32.mxu1 %v3738_v26  ;;  %2666 = vmatprep.mubr.f32.mxu0 %v3738_v26  ;;  %v2949_v26 = vld [vmem:[#allocation10 + $0xb0] sm:$0xff] }
 0x57b   :  { %2429 = vmatmul.mubr.f32.vlgmr.msra.gmra.mxu1 %v3740_v19  ;;  %2667 = vmatmul.mubr.f32.vlgmr.msra.gmra.mxu0 %v3740_v19  ;;  %v2948_v19 = vld [vmem:[#allocation10 + $0xa8] sm:$0xff] }
 0x57c   :  { %2754 = vmatpush1.msra.mxu1 %v5953_v51  ;;  %2992 = vmatpush1.msra.mxu0 %v2957_v40  ;;  %v5978_v40 = vld [vmem:[#allocation11 + $0xa8] sm:$0xff] }
 0x57d   :  { %2755 = vmatprep.subr.mxu1 %v5955_v57  ;;  %2993 = vmatprep.subr.mxu0 %v2956_v59  ;;  %6747 = vst [vmem:[#allocation50_spill] sm:$0xff] %v5978_v40  ;;  %v5981_v59 = vld [vmem:[#allocation11 + $0xa0] sm:$0xff] }
 0x57e   :  { %2756 = vmatpush1.msra.mxu1 %v5957_v55  ;;  %2994 = vmatpush1.msra.mxu0 %v2955_v60  ;;  %6748 = vst [vmem:[#allocation51_spill] sm:$0xff] %v5981_v59  ;;  %v2947_v60 = vld [vmem:[#allocation10 + $0xa0] sm:$0xff] }
 0x57f   :  { %2757 = vmatprep.subr.mxu1 %v5960_v47  ;;  %2995 = vmatprep.subr.mxu0 %v2954_v13  ;;  %v5984_v13 = vld [vmem:[#allocation11 + $0x98] sm:$0xff] }
 0x580   :  { %2758 = vmatpush1.msra.mxu1 %v5963_v43  ;;  %2996 = vmatpush1.msra.mxu0 %v2953_v28  ;;  %6749 = vst [vmem:[#allocation52_spill] sm:$0xff] %v5984_v13  ;;  %v2946_v28 = vld [vmem:[#allocation10 + $0x98] sm:$0xff] }
 0x581   :  { %2759 = vmatprep.subr.mxu1 %v5966_v4  ;;  %2997 = vmatprep.subr.mxu0 %v2952_v8  ;;  %v5987_v8 = vld [vmem:[#allocation11 + $0x90] sm:$0xff] }
 0x582   :  { %2760 = vmatpush1.msra.mxu1 %v5969_v30  ;;  %2998 = vmatpush1.msra.mxu0 %v2951_v15  ;;  %6750 = vst [vmem:[#allocation53_spill] sm:$0xff] %v5987_v8  ;;  %v2945_v15 = vld [vmem:[#allocation10 + $0x90] sm:$0xff] }
 0x583   :  { %2761 = vmatprep.subr.mxu1 %v5972_v61  ;;  %2999 = vmatprep.subr.mxu0 %v2950_v25  ;;  %v5990_v61 = vld [vmem:[#allocation11 + $0x88] sm:$0xff] }
 0x584   :  { %2762 = vmatpush1.msra.mxu1 %v5975_v32  ;;  %3000 = vmatpush1.msra.mxu0 %v2949_v26  ;;  %6751 = vst [vmem:[#allocation55_spill] sm:$0xff] %v5990_v61  ;;  %v2944_v25 = vld [vmem:[#allocation10 + $0x88] sm:$0xff]  ;;  %v5993_v32 = vld [vmem:[#allocation11 + $0x80] sm:$0xff] }
 0x585   :  { %2763 = vmatprep.subr.mxu1 %v5978_v40  ;;  %3001 = vmatprep.subr.mxu0 %v2948_v19  ;;  %6752 = vst [vmem:[#allocation57_spill] sm:$0xff] %v5993_v32  ;;  %v2943_v26 = vld [vmem:[#allocation10 + $0x80] sm:$0xff]  ;;  %v5996_v40 = vld [vmem:[#allocation11 + $0x78] sm:$0xff] }
 0x586   :  { %2764 = vmatpush1.msra.mxu1 %v5981_v59  ;;  %3002 = vmatpush1.msra.mxu0 %v2947_v60  ;;  %6753 = vst [vmem:[#allocation59_spill] sm:$0xff] %v5996_v40  ;;  %v2942_v19 = vld [vmem:[#allocation10 + $0x78] sm:$0xff]  ;;  %v5999_v59 = vld [vmem:[#allocation11 + $0x70] sm:$0xff] }
 0x587   :  { %2765 = vmatprep.subr.mxu1 %v5984_v13  ;;  %3003 = vmatprep.subr.mxu0 %v2946_v28  ;;  %6754 = vst [vmem:[#allocation61_spill] sm:$0xff] %v5999_v59  ;;  %v2941_v60 = vld [vmem:[#allocation10 + $0x70] sm:$0xff]  ;;  %v6002_v13 = vld [vmem:[#allocation11 + $0x68] sm:$0xff] }
 0x588   :  { %2766 = vmatpush1.msra.mxu1 %v5987_v8  ;;  %3004 = vmatpush1.msra.mxu0 %v2945_v15  ;;  %v2940_v28 = vld [vmem:[#allocation10 + $0x68] sm:$0xff]  ;;  %v6005_v8 = vld [vmem:[#allocation11 + $0x60] sm:$0xff] }
 0x589   :  { %2767 = vmatprep.subr.mxu1 %v5990_v61  ;;  %3005 = vmatprep.subr.mxu0 %v2944_v25  ;;  %v2939_v15 = vld [vmem:[#allocation10 + $0x60] sm:$0xff]  ;;  %v6008_v61 = vld [vmem:[#allocation11 + $0x58] sm:$0xff] }
 0x58a   :  { %2768 = vmatpush1.msra.mxu1 %v5993_v32  ;;  %3006 = vmatpush1.msra.mxu0 %v2943_v26  ;;  %v2938_v25 = vld [vmem:[#allocation10 + $0x58] sm:$0xff]  ;;  %v6011_v32 = vld [vmem:[#allocation11 + $0x50] sm:$0xff] }
 0x58b   :  { %2769 = vmatprep.subr.mxu1 %v5996_v40  ;;  %3007 = vmatprep.subr.mxu0 %v2942_v19  ;;  %v2937_v26 = vld [vmem:[#allocation10 + $0x50] sm:$0xff]  ;;  %v6014_v40 = vld [vmem:[#allocation11 + $0x48] sm:$0xff] }
 0x58c   :  { %2770 = vmatpush1.msra.mxu1 %v5999_v59  ;;  %3008 = vmatpush1.msra.mxu0 %v2941_v60  ;;  %v2936_v19 = vld [vmem:[#allocation10 + $0x48] sm:$0xff]  ;;  %v6017_v59 = vld [vmem:[#allocation11 + $0x40] sm:$0xff]  ;;  %v6020_v60 = vld [vmem:[#allocation11 + $0x38] sm:$0xff] }
 0x58d   :  { %2771 = vmatprep.subr.mxu1 %v6002_v13  ;;  %3009 = vmatprep.subr.mxu0 %v2940_v28  ;;  %v6023_v28 = vld [vmem:[#allocation11 + $0x30] sm:$0xff] }
 0x58e   :  { %2772 = vmatpush1.msra.mxu1 %v6005_v8  ;;  %3010 = vmatpush1.msra.mxu0 %v2939_v15  ;;  %v6027_v15 = vld [vmem:[#allocation11 + $0x28] sm:$0xff] }
 0x58f   :  { %2773 = vmatprep.subr.mxu1 %v6008_v61  ;;  %3011 = vmatprep.subr.mxu0 %v2938_v25  ;;  %v6031_v25 = vld [vmem:[#allocation11 + $0x20] sm:$0xff] }
 0x590   :  { %2774 = vmatpush1.msra.mxu1 %v6011_v32  ;;  %3012 = vmatpush1.msra.mxu0 %v2937_v26  ;;  %v6035_v26 = vld [vmem:[#allocation11 + $0x18] sm:$0xff] }
 0x591   :  { %2775 = vmatprep.subr.mxu1 %v6014_v40  ;;  %3013 = vmatprep.subr.mxu0 %v2936_v19  ;;  %v6039_v19 = vld [vmem:[#allocation11 + $0x10] sm:$0xff] }
 0x592   :  { %2776 = vmatpush1.msra.mxu1 %v6017_v59  ;;  %3014 = vmatpush1.msra.mxu0 %v5741_v35  ;;  %v6043_v35 = vld [vmem:[#allocation11 + $0x8] sm:$0xff] }
 0x593   :  { %2777 = vmatprep.subr.mxu1 %v6020_v60  ;;  %3015 = vmatprep.subr.mxu0 %v5745_v42  ;;  %v6047_v42 = vld [vmem:[#allocation11] sm:$0xff] }
 0x594   :  { %2778 = vmatpush1.msra.mxu1 %v6023_v28  ;;  %3016 = vmatpush1.msra.mxu0 %v5749_v3  ;;  %v6051_v3 = vld [vmem:[#allocation11 + $0x1f8] sm:$0xff] }
 0x595   :  { %2779 = vmatprep.subr.mxu1 %v6027_v15  ;;  %3017 = vmatprep.subr.mxu0 %v5753_v49  ;;  %v6055_v49 = vld [vmem:[#allocation11 + $0x1f0] sm:$0xff] }
 0x596   :  { %2780 = vmatpush1.msra.mxu1 %v6031_v25  ;;  %3018 = vmatpush1.msra.mxu0 %v5757_v9  ;;  %v6059_v9 = vld [vmem:[#allocation11 + $0x1e8] sm:$0xff] }
 0x597   :  { %2781 = vmatprep.subr.mxu1 %v6035_v26  ;;  %3019 = vmatprep.subr.mxu0 %v5761_v23  ;;  %v6063_v23 = vld [vmem:[#allocation11 + $0x1e0] sm:$0xff] }
 0x598   :  { %2782 = vmatpush1.msra.mxu1 %v6039_v19  ;;  %3020 = vmatpush1.msra.mxu0 %v5765_v33  ;;  %v6067_v33 = vld [vmem:[#allocation11 + $0x1d8] sm:$0xff] }
 0x599   :  { %2783 = vmatprep.subr.mxu1 %v6043_v35  ;;  %3021 = vmatprep.subr.mxu0 %v5769_v11  ;;  %v6071_v11 = vld [vmem:[#allocation11 + $0x1d0] sm:$0xff] }
 0x59a   :  { %2784 = vmatpush1.msra.mxu1 %v6047_v42  ;;  %3022 = vmatpush1.msra.mxu0 %v5773_v39  ;;  %v6075_v39 = vld [vmem:[#allocation11 + $0x1c8] sm:$0xff] }
 0x59b   :  { %2785 = vmatprep.subr.mxu1 %v6051_v3  ;;  %3023 = vmatprep.subr.mxu0 %v5777_v41  ;;  %v6079_v41 = vld [vmem:[#allocation11 + $0x1c0] sm:$0xff] }
 0x59c   :  { %2786 = vmatpush2.msra.mxu1 %v6055_v49  ;;  %3024 = vmatpush2.msra.mxu0 %v5781_v52  ;;  %v6083_v52 = vld [vmem:[#allocation11 + $0x1b8] sm:$0xff] }
 0x59d   :  { %2787 = vmatprep.subr.mxu1 %v6059_v9  ;;  %3025 = vmatprep.subr.mxu0 %v5785_v29  ;;  %v6087_v29 = vld [vmem:[#allocation11 + $0x1b0] sm:$0xff] }
 0x59e   :  { %2788 = vmatpush2.msra.mxu1 %v6063_v23  ;;  %3026 = vmatpush2.msra.mxu0 %v5789_v1  ;;  %v6091_v1 = vld [vmem:[#allocation11 + $0x1a8] sm:$0xff] }
 0x59f   :  { %2789 = vmatprep.subr.mxu1 %v6067_v33  ;;  %3027 = vmatprep.subr.mxu0 %v5793_v31  ;;  %v6095_v31 = vld [vmem:[#allocation11 + $0x1a0] sm:$0xff] }
 0x5a0   :  { %2790 = vmatpush2.msra.mxu1 %v6071_v11  ;;  %3028 = vmatpush2.msra.mxu0 %v5797_v2  ;;  %v2449_v2 = vld [vmem:[%s2448_s14] ss:$8 sm:$0x3]  ;;  %s2516_s14 = sand.u32 7, %s6119_s20 }
 0x5a1   :  { %2791 = vmatprep.subr.mxu1 %v6075_v39  ;;  %3029 = vmatprep.subr.mxu0 %v5801_v36  ;;  %2450 = vst.msk [vmem:[#allocation2] ss:$8 sm:$0x3] %vm4184_vm0, %v2449_v2  ;;  %v2461_v36 = vld [vmem:[%s2460_s4] ss:$8 sm:$0x3]  ;;  %s2519_s21 = sadd.s32 %s3698_s11, %s2516_s14 }
 0x5a2   :  { %2792 = vmatpush2.msra.mxu1 %v6079_v41  ;;  %3030 = vmatpush2.msra.mxu0 %v5805_v21  ;;  %2462 = vst.msk [vmem:[#allocation2 + $0x1] ss:$8 sm:$0x3] %vm4184_vm0, %v2461_v36  ;;  %v2473_v21 = vld [vmem:[%s2472_s16] ss:$8 sm:$0x3] }
 0x5a3   :  { %2793 = vmatprep.subr.mxu1 %v6083_v52  ;;  %3031 = vmatprep.subr.mxu0 %v5809_v22  ;;  %2474 = vst.msk [vmem:[#allocation2 + $0x2] ss:$8 sm:$0x3] %vm4184_vm0, %v2473_v21  ;;  %v6144_v22 = vld [vmem:[#allocation11 + $0x198] sm:$0xff]  ;;  %s2520_s20 = scalar_lea.vmem [#allocation7], %s2519_s21  ;;  %s3699_s4 = sshll.u32 %s2525_s24, 4 }
 0x5a4   :  { %2794 = vmatpush2.msra.mxu1 %v6087_v29  ;;  %3032 = vmatpush2.msra.mxu0 %v5813_v6  ;;  %v2485_v6 = vld [vmem:[%s2484_s17] ss:$8 sm:$0x3]  ;;  %s2531_s23 = sadd.s32 %s3699_s4, %s2528_s22  ;;  %s6281_s17 = sld [smem:[#allocation3 + $0x2f]] }
 0x5a5   :  { %2795 = vmatprep.subr.mxu1 %v6091_v1  ;;  %3033 = vmatprep.subr.mxu0 %v5817_v10  ;;  %v6149_v10 = vld [vmem:[#allocation11 + $0x190] sm:$0xff]  ;;  %2486 = vst.msk [vmem:[#allocation2 + $0x3] ss:$8 sm:$0x3] %vm4184_vm0, %v2485_v6  ;;  %s2532_s15 = scalar_lea.vmem [#allocation7], %s2531_s23  ;;  %v6214_v2 = vld [vmem:[#allocation11 + $0x100] sm:$0xff] }
 0x5a6   :  { %2796 = vmatpush2.msra.mxu1 %v6095_v31  ;;  %3034 = vmatpush2.msra.mxu0 %v5821_v38  ;;  %v6155_v38 = vld [vmem:[#allocation11 + $0x188] sm:$0xff]  ;;  %6761 = vst [vmem:[#allocation58_spill] sm:$0xff] %v6214_v2  ;;  %v2352_v36 = vld [vmem:[%s6348_s5] sm:$0x3]  ;;  %s3701_s11 = sshll.u32 %s2842_s0, 4  ;;  %s2866_s4 = sshra.s32 %s6275_s28, 3 }
 0x5a7   :  { %3035 = vmatprep.subr.mxu0 %v5870_v63  ;;  %2797 = vmatprep.subr.mxu1 %v6144_v22  ;;  %v2497_v63 = vld [vmem:[%s2496_s8] ss:$8 sm:$0x3]  ;;  %v2357_v21 = vrot.slane %v2352_v36, %v4759_v58  ;;  %s3700_s8 = sshll.u32 %s2830_s25, 4  ;;  %s2848_s21 = sadd.s32 %s3701_s11, %s2845_s10 }
 0x5a8   :  { %3036 = vmatpush2.msra.mxu0 %v5875_v44  ;;  %2798 = vmatpush2.msra.mxu1 %v6149_v10  ;;  %v6159_v44 = vld [vmem:[#allocation11 + $0x180] sm:$0xff]  ;;  %2498 = vst.msk [vmem:[#allocation2 + $0x4] ss:$8 sm:$0x3] %vm4184_vm0, %v2497_v63  ;;  %v2361_v63 = vrot.slane %v2352_v36, %v4764_v24  ;;  %s2836_s9 = sadd.s32 %s3700_s8, %s2833_s18  ;;  %s2849_s24 = scalar_lea.vmem [#allocation7], %s2848_s21 }
 0x5a9   :  { %3037 = vmatprep.subr.mxu0 %v5881_v48  ;;  %2799 = vmatprep.subr.mxu1 %v6155_v38  ;;  %v6165_v48 = vld [vmem:[#allocation11 + $0x178] sm:$0xff]  ;;  %s2837_s14 = scalar_lea.vmem [#allocation7], %s2836_s9  ;;  %s2869_s23 = sand.u32 7, %s6275_s28 }
 0x5aa   :  { %3038 = vmatpush2.msra.mxu0 %v5885_v53  ;;  %2800 = vmatpush2.msra.mxu1 %v6159_v44  ;;  %v6168_v53 = vld [vmem:[#allocation11 + $0x170] sm:$0xff]  ;;  %s3703_s3 = sshll.u32 %s2866_s4, 4  ;;  %s2878_s16 = sshra.s32 %s6278_s29, 3 }
 0x5ab   :  { %3039 = vmatprep.subr.mxu0 %v5891_v5  ;;  %2801 = vmatprep.subr.mxu1 %v6165_v48  ;;  %v2509_v5 = vld [vmem:[%s2508_s12] ss:$8 sm:$0x3]  ;;  %s2854_s12 = sshra.s32 %s6272_s27, 3  ;;  %s2872_s30 = sadd.s32 %s3703_s3, %s2869_s23 }
 0x5ac   :  { %3040 = vmatpush2.msra.mxu0 %v5894_v12  ;;  %2802 = vmatpush2.msra.mxu1 %v6168_v53  ;;  %v6171_v12 = vld [vmem:[#allocation11 + $0x168] sm:$0xff]  ;;  %2510 = vst.msk [vmem:[#allocation2 + $0x5] ss:$8 sm:$0x3] %vm4184_vm0, %v2509_v5  ;;  %s3704_s27 = sshll.u32 %s2878_s16, 4  ;;  %s2873_s28 = scalar_lea.vmem [#allocation7], %s2872_s30 }
 0x5ad   :  { %3041 = vmatprep.subr.mxu0 %v5897_v27  ;;  %2803 = vmatprep.subr.mxu1 %v6171_v12  ;;  %v6176_v27 = vld [vmem:[#allocation11 + $0x160] sm:$0xff]  ;;  %s2884_s25 = sadd.s32 %s3704_s27, %s2881_s26  ;;  %s2890_s18 = sshra.s32 %s6281_s17, 3 }
 0x5ae   :  { %3042 = vmatpush2.msra.mxu0 %v5902_v46  ;;  %v6178_v46 = vld [vmem:[#allocation11 + $0x158] sm:$0xff]  ;;  %2804 = vmatpush2.msra.mxu1 %v6176_v27  ;;  %s2893_s8 = sand.u32 7, %s6281_s17  ;;  %s2885_s9 = scalar_lea.vmem [#allocation7], %s2884_s25 }
 0x5af   :  { %3043 = vmatprep.subr.mxu0 %v5904_v16  ;;  %v6180_v16 = vld [vmem:[#allocation11 + $0x150] sm:$0xff]  ;;  %2805 = vmatprep.subr.mxu1 %v6178_v46  ;;  %s3705_s0 = sshll.u32 %s2890_s18, 4  ;;  %s2902_s10 = sshra.s32 %s6284_s19, 3 }
 0x5b0   :  { %3044 = vmatpush2.msra.mxu0 %v5906_v18  ;;  %v2521_v18 = vld [vmem:[%s2520_s20] ss:$8 sm:$0x3]  ;;  %2806 = vmatpush2.msra.mxu1 %v6180_v16  ;;  %s3702_s20 = sshll.u32 %s2854_s12, 4  ;;  %s2896_s29 = sadd.s32 %s3705_s0, %s2893_s8 }
 0x5b1   :  { %3045 = vmatprep.subr.mxu0 %v5909_v62  ;;  %v6183_v62 = vld [vmem:[#allocation11 + $0x148] sm:$0xff]  ;;  %2522 = vst.msk [vmem:[#allocation2 + $0x6] ss:$8 sm:$0x3] %vm4184_vm0, %v2521_v18  ;;  %s2860_s22 = sadd.s32 %s3702_s20, %s2857_s1  ;;  %s3706_s11 = sshll.u32 %s2902_s10, 4 }
 0x5b2   :  { %3046 = vmatpush2.msra.mxu0 %v5914_v14  ;;  %v6188_v14 = vld [vmem:[#allocation11 + $0x140] sm:$0xff]  ;;  %2807 = vmatprep.subr.mxu1 %v6183_v62  ;;  %s2897_s12 = scalar_lea.vmem [#allocation7], %s2896_s29  ;;  %s3641_s1 = sld [smem:[#allocation3 + $0x3f]] }
 0x5b3   :  { %3047 = vmatprep.subr.mxu0 %v5917_v45  ;;  %v6191_v45 = vld [vmem:[#allocation11 + $0x138] sm:$0xff]  ;;  %2808 = vmatpush2.msra.mxu1 %v6188_v14  ;;  %s3900_s3 = smov [#allocation14]  }
 0x5b4   :  { %3048 = vmatpush2.msra.mxu0 %v5920_v7  ;;  %v6194_v7 = vld [vmem:[#allocation11 + $0x130] sm:$0xff]  ;;  %2809 = vmatprep.subr.mxu1 %v6191_v45  ;;  %s3238_s16 = sshll.u32 %s3900_s3, 4  ;;  %s3239_s16 = int_to_ptr.vmem [resolvable:$true] %s3238_s16 }
 0x5b5   :  { %3049 = vmatprep.subr.mxu0 %v5923_v54  ;;  %6755 = vst [vmem:[#allocation63_spill] sm:$0xff] %v6194_v7  ;;  %v6197_v54 = vld [vmem:[#allocation11 + $0x128] sm:$0xff]  ;;  %2810 = vmatpush2.msra.mxu1 %v6194_v7  ;;  %s3841_s30 = scalar_lea.vmem %s3239_s16, 256  ;;  %p3846_p12 = scmp.lt.s32.totalorder %s3239_s16, %s3239_s16 }
 0x5b6   :  { %3050 = vmatpush2.msra.mxu0 %v5926_v37  ;;  %6756 = vst [vmem:[#allocation65_spill] sm:$0xff] %v6197_v54  ;;  %v6200_v37 = vld [vmem:[#allocation11 + $0x120] sm:$0xff]  ;;  %2811 = vmatprep.subr.mxu1 %v6197_v54  ;;  %p3842_p11 = scmp.ne.s32.totalorder %s3239_s16, %s3841_s30  ;;  %p3847_p13 = scmp.lt.s32.totalorder %s3841_s30, %s3841_s30 }
 0x5b7   :  { %3051 = vmatprep.subr.mxu0 %v5929_v20  ;;  %6757 = vst [vmem:[#allocation66_spill] sm:$0xff] %v6200_v37  ;;  %v6203_v20 = vld [vmem:[#allocation11 + $0x118] sm:$0xff]  ;;  %2812 = vmatpush2.msra.mxu1 %v6200_v37 }
 0x5b8   :  { %3052 = vmatpush2.msra.mxu0 %v5932_v56  ;;  %6758 = vst [vmem:[#allocation37_spill] sm:$0xff] %v6203_v20  ;;  %v6206_v56 = vld [vmem:[#allocation11 + $0x110] sm:$0xff]  ;;  %2813 = vmatprep.subr.mxu1 %v6203_v20  ;;  %s2914_s17 = sshra.s32 %s3641_s1, 3  ;;  %p3848_p0 = por %p3847_p13, %p3846_p12 }
 0x5b9   :  { %3053 = vmatprep.subr.mxu0 %v5935_v17  ;;  %6759 = vst [vmem:[#allocation54_spill] sm:$0xff] %v6206_v56  ;;  %v2533_v17 = vld [vmem:[%s2532_s15] ss:$8 sm:$0x3]  ;;  %2814 = vmatpush2.msra.mxu1 %v6206_v56  ;;  %s2861_s15 = scalar_lea.vmem [#allocation7], %s2860_s22  ;;  %s3707_s22 = sshll.u32 %s2914_s17, 4 }
 0x5ba   :  { %3054 = vmatpush2.msra.mxu0 %v5942_v0  ;;  %v6209_v0 = vld [vmem:[#allocation11 + $0x108] sm:$0xff]  ;;  %2534 = vst.msk [vmem:[#allocation2 + $0x7] ss:$8 sm:$0x3] %vm4184_vm0, %v2533_v17  ;;  %p3849_p1 = pnand %p3848_p0, %p3842_p11 }
 0x5bb   :  { %6760 = vst [vmem:[#allocation56_spill] sm:$0xff] %v6209_v0  ;;  %2815 = vmatprep.subr.mxu1 %v6209_v0 }
 0x5bc   :  { %2816 = vmatpush2.msra.mxu1 %v6214_v2 }
 0x5bd   :  { %3142 = vmatprep.subr.mxu1 %v5945_v50 }
 0x5c1   :  { %v2536_v6 = vld [vmem:[#allocation2] sm:$0xff]  ;;  %v2537_v17 = vld [vmem:[#allocation2 + $0x8] sm:$0xff] }
 0x63b   :  { %v2430_v5 = vpop.f32.mrf.mxu1  ;;  %v2668_v18 = vpop.f32.mrf.mxu0 }
 0x63c   :  { %v2431_v20 = vadd.f32 %v2430_v5, %v2357_v21  ;;  %v2673_v56 = vadd.f32 %v2668_v18, %v2536_v6 }
 0x63d   :  { %v2432_v37 = vpop.f32.mrf.mxu1  ;;  %v2670_v0 = vpop.f32.mrf.mxu0 }
 0x63e   :  { %2438 = vst [vmem:[#allocation13 + $0x50] sm:$0xff] %v2431_v20  ;;  %v2433_v2 = vadd.f32 %v2432_v37, %v2361_v63  ;;  %v2674_v54 = vadd.f32 %v2670_v0, %v2537_v17  ;;  %v6763_v37 = vld [vmem:[#allocation49_spill] sm:$0xff]  ;;  %v6764_v20 = vld [vmem:[#allocation50_spill] sm:$0xff] }
 0x640   :  { %2439 = vst [vmem:[#allocation13 + $0x58] sm:$0xff] %v2433_v2  ;;  %3741 = vtanh.f32 %v2674_v54  ;;  %v6762_v54 = vld [vmem:[#allocation48_spill] sm:$0xff] }
 0x641   :  { %3743 = vtanh.f32 %v2673_v56 }
 0x64d   :  { %v3742_v50 = vpop.eup %3741 }
 0x64e   :  { %v3744_v7 = vpop.eup %3743  ;;  %2817 = vmatprep.mubr.f32.mxu1 %v3742_v50  ;;  %3055 = vmatprep.mubr.f32.mxu0 %v3742_v50 }
 0x64f   :  { %2818 = vmatmul.mubr.f32.vlgmr.msra.gmra.mxu1 %v3744_v7  ;;  %3056 = vmatmul.mubr.f32.vlgmr.msra.gmra.mxu0 %v3744_v7  ;;  %v6765_v7 = vld [vmem:[#allocation51_spill] sm:$0xff] }
 0x650   :  { %3143 = vmatpush1.msra.mxu1 %v5953_v51  ;;  %v6766_v51 = vld [vmem:[#allocation52_spill] sm:$0xff] }
 0x651   :  { %3144 = vmatprep.subr.mxu1 %v5955_v57  ;;  %v6767_v57 = vld [vmem:[#allocation53_spill] sm:$0xff] }
 0x652   :  { %3145 = vmatpush1.msra.mxu1 %v5957_v55  ;;  %v6768_v55 = vld [vmem:[#allocation55_spill] sm:$0xff] }
 0x653   :  { %3146 = vmatprep.subr.mxu1 %v5960_v47  ;;  %v6769_v47 = vld [vmem:[#allocation57_spill] sm:$0xff] }
 0x654   :  { %3147 = vmatpush1.msra.mxu1 %v5963_v43  ;;  %v6770_v43 = vld [vmem:[#allocation59_spill] sm:$0xff] }
 0x655   :  { %3148 = vmatprep.subr.mxu1 %v5966_v4  ;;  %v6771_v4 = vld [vmem:[#allocation61_spill] sm:$0xff] }
 0x656   :  { %3149 = vmatpush1.msra.mxu1 %v5969_v30  ;;  %v2838_v30 = vld [vmem:[%s2837_s14] ss:$8 sm:$0x3]  ;;  %s2905_s14 = sand.u32 7, %s6284_s19 }
 0x657   :  { %3150 = vmatprep.subr.mxu1 %v6762_v54  ;;  %2839 = vst.msk [vmem:[#allocation2] ss:$8 sm:$0x3] %vm4184_vm0, %v2838_v30  ;;  %s2908_s21 = sadd.s32 %s3706_s11, %s2905_s14 }
 0x658   :  { %3151 = vmatpush1.msra.mxu1 %v6763_v37  ;;  %s2909_s20 = scalar_lea.vmem [#allocation7], %s2908_s21 }
 0x659   :  { %3152 = vmatprep.subr.mxu1 %v6764_v20 }
 0x65a   :  { %3153 = vmatpush1.msra.mxu1 %v6765_v7 }
 0x65b   :  { %3154 = vmatprep.subr.mxu1 %v6766_v51 }
 0x65c   :  { %3155 = vmatpush1.msra.mxu1 %v6767_v57 }
 0x65d   :  { %3156 = vmatprep.subr.mxu1 %v6768_v55 }
 0x65e   :  { %3157 = vmatpush1.msra.mxu1 %v6769_v47 }
 0x65f   :  { %3158 = vmatprep.subr.mxu1 %v6770_v43 }
 0x660   :  { %3159 = vmatpush1.msra.mxu1 %v6771_v4 }
 0x661   :  { %3160 = vmatprep.subr.mxu1 %v6002_v13  ;;  %v6775_v13 = vld [vmem:[#allocation37_spill] sm:$0xff] }
 0x662   :  { %3161 = vmatpush1.msra.mxu1 %v6005_v8  ;;  %v2862_v8 = vld [vmem:[%s2861_s15] ss:$8 sm:$0x3] }
 0x663   :  { %3162 = vmatprep.subr.mxu1 %v6008_v61  ;;  %v6772_v61 = vld [vmem:[#allocation63_spill] sm:$0xff]  ;;  %2863 = vst.msk [vmem:[#allocation2 + $0x2] ss:$8 sm:$0x3] %vm4184_vm0, %v2862_v8 }
 0x664   :  { %3163 = vmatpush1.msra.mxu1 %v6011_v32  ;;  %v6773_v32 = vld [vmem:[#allocation65_spill] sm:$0xff] }
 0x665   :  { %3164 = vmatprep.subr.mxu1 %v6014_v40  ;;  %v2850_v40 = vld [vmem:[%s2849_s24] ss:$8 sm:$0x3]  ;;  %s2917_s24 = sand.u32 7, %s3641_s1 }
 0x666   :  { %3165 = vmatpush1.msra.mxu1 %v6017_v59  ;;  %v6774_v59 = vld [vmem:[#allocation66_spill] sm:$0xff]  ;;  %2851 = vst.msk [vmem:[#allocation2 + $0x1] ss:$8 sm:$0x3] %vm4184_vm0, %v2850_v40  ;;  %s2920_s4 = sadd.s32 %s3707_s22, %s2917_s24 }
 0x667   :  { %3166 = vmatprep.subr.mxu1 %v6020_v60  ;;  %v6776_v60 = vld [vmem:[#allocation54_spill] sm:$0xff]  ;;  %s2921_s23 = scalar_lea.vmem [#allocation7], %s2920_s4 }
 0x668   :  { %3167 = vmatpush1.msra.mxu1 %v6023_v28  ;;  %v6777_v28 = vld [vmem:[#allocation56_spill] sm:$0xff] }
 0x669   :  { %3168 = vmatprep.subr.mxu1 %v6027_v15  ;;  %v6778_v15 = vld [vmem:[#allocation58_spill] sm:$0xff] }
 0x66a   :  { %3169 = vmatpush1.msra.mxu1 %v6031_v25  ;;  %v2874_v25 = vld [vmem:[%s2873_s28] ss:$8 sm:$0x3] }
 0x66b   :  { %3170 = vmatprep.subr.mxu1 %v6035_v26  ;;  %2875 = vst.msk [vmem:[#allocation2 + $0x3] ss:$8 sm:$0x3] %vm4184_vm0, %v2874_v25  ;;  %v2886_v26 = vld [vmem:[%s2885_s9] ss:$8 sm:$0x3] }
 0x66c   :  { %3171 = vmatpush1.msra.mxu1 %v6039_v19  ;;  %2887 = vst.msk [vmem:[#allocation2 + $0x4] ss:$8 sm:$0x3] %vm4184_vm0, %v2886_v26  ;;  %v2898_v19 = vld [vmem:[%s2897_s12] ss:$8 sm:$0x3] }
 0x66d   :  { %3172 = vmatprep.subr.mxu1 %v6043_v35  ;;  %2899 = vst.msk [vmem:[#allocation2 + $0x5] ss:$8 sm:$0x3] %vm4184_vm0, %v2898_v19  ;;  %v2910_v35 = vld [vmem:[%s2909_s20] ss:$8 sm:$0x3] }
 0x66e   :  { %3173 = vmatpush1.msra.mxu1 %v6047_v42  ;;  %2911 = vst.msk [vmem:[#allocation2 + $0x6] ss:$8 sm:$0x3] %vm4184_vm0, %v2910_v35  ;;  %v2922_v42 = vld [vmem:[%s2921_s23] ss:$8 sm:$0x3] }
 0x66f   :  { %3174 = vmatprep.subr.mxu1 %v6051_v3  ;;  %2923 = vst.msk [vmem:[#allocation2 + $0x7] ss:$8 sm:$0x3] %vm4184_vm0, %v2922_v42  ;;  %v2741_v3 = vld [vmem:[%s6348_s5] sm:$0x3] }
 0x670   :  { %3175 = vmatpush2.msra.mxu1 %v6055_v49  ;;  %v2746_v49 = vrot.slane %v2741_v3, %v4759_v58 }
 0x671   :  { %3176 = vmatprep.subr.mxu1 %v6059_v9 }
 0x672   :  { %3177 = vmatpush2.msra.mxu1 %v6063_v23  ;;  %v2750_v23 = vrot.slane %v2741_v3, %v4764_v24 }
 0x673   :  { %3178 = vmatprep.subr.mxu1 %v6067_v33 }
 0x674   :  { %3179 = vmatpush2.msra.mxu1 %v6071_v11 }
 0x675   :  { %3180 = vmatprep.subr.mxu1 %v6075_v39 }
 0x676   :  { %3181 = vmatpush2.msra.mxu1 %v6079_v41  ;;  %v2925_v9 = vld [vmem:[#allocation2] sm:$0xff]  ;;  %v2926_v39 = vld [vmem:[#allocation2 + $0x8] sm:$0xff] }
 0x677   :  { %3182 = vmatprep.subr.mxu1 %v6083_v52 }
 0x678   :  { %3183 = vmatpush2.msra.mxu1 %v6087_v29 }
 0x679   :  { %3184 = vmatprep.subr.mxu1 %v6091_v1 }
 0x67a   :  { %3185 = vmatpush2.msra.mxu1 %v6095_v31 }
 0x67b   :  { %3186 = vmatprep.subr.mxu1 %v6144_v22 }
 0x67c   :  { %3187 = vmatpush2.msra.mxu1 %v6149_v10 }
 0x67d   :  { %3188 = vmatprep.subr.mxu1 %v6155_v38 }
 0x67e   :  { %3189 = vmatpush2.msra.mxu1 %v6159_v44 }
 0x67f   :  { %3190 = vmatprep.subr.mxu1 %v6165_v48 }
 0x680   :  { %3191 = vmatpush2.msra.mxu1 %v6168_v53 }
 0x681   :  { %3192 = vmatprep.subr.mxu1 %v6171_v12 }
 0x682   :  { %3193 = vmatpush2.msra.mxu1 %v6176_v27 }
 0x683   :  { %3194 = vmatprep.subr.mxu1 %v6178_v46 }
 0x684   :  { %3195 = vmatpush2.msra.mxu1 %v6180_v16 }
 0x685   :  { %3196 = vmatprep.subr.mxu1 %v6183_v62 }
 0x686   :  { %3197 = vmatpush2.msra.mxu1 %v6188_v14 }
 0x687   :  { %3198 = vmatprep.subr.mxu1 %v6191_v45 }
 0x688   :  { %3199 = vmatpush2.msra.mxu1 %v6772_v61 }
 0x689   :  { %3200 = vmatprep.subr.mxu1 %v6773_v32 }
 0x68a   :  { %3201 = vmatpush2.msra.mxu1 %v6774_v59 }
 0x68b   :  { %3202 = vmatprep.subr.mxu1 %v6775_v13 }
 0x68c   :  { %3203 = vmatpush2.msra.mxu1 %v6776_v60 }
 0x68d   :  { %3204 = vmatprep.subr.mxu1 %v6777_v28 }
 0x68e   :  { %3205 = vmatpush2.msra.mxu1 %v6778_v15 }
 0x70f   :  { %v2819_v33 = vpop.f32.mrf.mxu1  ;;  %v3057_v11 = vpop.f32.mrf.mxu0 }
 0x710   :  { %v2820_v41 = vadd.f32 %v2819_v33, %v2746_v49  ;;  %v3062_v52 = vadd.f32 %v3057_v11, %v2925_v9 }
 0x711   :  { %v2821_v29 = vpop.f32.mrf.mxu1  ;;  %v3059_v1 = vpop.f32.mrf.mxu0 }
 0x712   :  { %2827 = vst [vmem:[#allocation13 + $0x60] sm:$0xff] %v2820_v41  ;;  %3745 = vtanh.f32 %v3062_v52  ;;  %v2822_v34 = vadd.f32 %v2821_v29, %v2750_v23  ;;  %v3063_v31 = vadd.f32 %v3059_v1, %v2926_v39 }
 0x714   :  { %2828 = vst [vmem:[#allocation13 + $0x68] sm:$0xff] %v2822_v34  ;;  %3747 = vtanh.f32 %v3063_v31 }
 0x71f   :  { %v3746_v22 = vpop.eup %3745 }
 0x720   :  { %3218 = vst [vmem:[#allocation14] sm:$0xff] %v3746_v22 }
 0x721   :  { %v3748_v10 = vpop.eup %3747 }
 0x722   :  { %3219 = vst [vmem:[#allocation14 + $0x8] sm:$0xff] %v3748_v10  ;;  %3206 = vmatprep.mubr.f32.mxu1 %v3748_v10 }
 0x723   :  { %3207 = vmatmul.mubr.f32.vlgmr.msra.gmra.mxu1 %v3746_v22 }
 0x724   :  { %3852 = shalt.err (!%p3849_p1)
}
 0x725   :  { %3241 = dma.vmem_to_hbm [thread:$0]  %s3239_s16, 256, %s6350_s7, [#allocation15]   ;;  %v3130_v38 = vld [vmem:[%s6348_s5] sm:$0x3] }
 0x726   :  { %v3135_v44 = vrot.slane %v3130_v38, %v4759_v58  ;;  %v3139_v48 = vrot.slane %v3130_v38, %v4764_v24  ;;  %s3901_s18 = smov [#allocation13]  }
 0x727   :  { %s3225_s8 = sshll.u32 %s3901_s18, 4  ;;  %s3226_s8 = int_to_ptr.vmem [resolvable:$true] %s3225_s8 }
 0x728   :  { %s3861_s9 = scalar_lea.vmem %s3226_s8, 2048  ;;  %p3866_p3 = scmp.lt.s32.totalorder %s3226_s8, %s3226_s8 }
 0x729   :  { %p3862_p2 = scmp.ne.s32.totalorder %s3226_s8, %s3861_s9  ;;  %p3867_p4 = scmp.lt.s32.totalorder %s3861_s9, %s3861_s9 }
 0x72b   :  { %p3868_p5 = por %p3867_p4, %p3866_p3 }
 0x72d   :  { %p3869_p6 = pnand %p3868_p5, %p3862_p2 }
 0x7e3   :  { %v3208_v53 = vpop.f32.mrf.mxu1 }
 0x7e4   :  { %v3209_v12 = vadd.f32 %v3208_v53, %v3135_v44 }
 0x7e5   :  { %v3210_v27 = vpop.f32.mrf.mxu1 }
 0x7e6   :  { %3216 = vst [vmem:[#allocation13 + $0x70] sm:$0xff] %v3209_v12  ;;  %v3211_v46 = vadd.f32 %v3210_v27, %v3139_v48 }
 0x7e8   :  { %3217 = vst [vmem:[#allocation13 + $0x78] sm:$0xff] %v3211_v46 }
 0x7e9   :  { %3872 = shalt.err (!%p3869_p6)
}
 0x7ea   :  { %3231 = dma.vmem_to_hbm [thread:$0]  %s3226_s8, 2048, %s6349_s6, [#allocation5], %s3896_s2, %s3896_s2, %s3897_s13  }
 0x7eb   :  { %3889 = dma.done.wait [#allocation5], 2048  }
 0x7ec   :  { %3890 = vsyncadd [#allocation5], 4294965248 }
 0x7ed   :  { %3891 = dma.done.wait [#allocation15], 256  }
 0x7ee   :  { %3892 = vsyncadd [#allocation15], 4294967040 }
 0x7ef   :  { %3248 = vsyncpa [#allocation4], 1 }
 0x7f0   :  { %3249 = vsyncpa [#allocation9], 1 }
 0x7f1   :  { %3250 = vsyncpa [#allocation12], 1 }
 0x7f2   :  { %3251 = vsyncpa [#allocation5], 1 }
 0x7f3   :  { %3252 = vsyncpa [#allocation15], 1 }
 0x7f4   :  { %3253 = vsyncpa [#allocation6], 1 }

</bundles_post_ra>
